<compile_context>
chip_gen: v7x
topology: tpu7x:2x2x1
jax: 0.10.0
libtpu: 0.0.40
codegen_flags: <defaults>
</compile_context>

<pallas_src>
import functools

import jax
import jax.numpy as jnp
from jax.experimental import pallas as pl
from jax.experimental.pallas import tpu as pltpu


def _conv1x1_kernel(x_ref, w_ref, b_ref, o_ref, *, bn, bias_in_smem):
    # x_ref: (bn, C, tl)   w_ref: (out_ch, C)
    # b_ref: SMEM (1,) scalar when bias_in_smem else VMEM (out_ch, 1)
    # o_ref: (bn, out_ch, tl)
    if bias_in_smem:
        bias = b_ref[0]            # scalar splat over the (out_ch, tl) tile
    else:
        bias = b_ref[...]          # (out_ch, 1) column, broadcast over lanes
    for i in range(bn):            # bn is small & static (images per step)
        acc = jnp.dot(
            w_ref[...],
            x_ref[i],
            preferred_element_type=jnp.float32,
            precision=jax.lax.Precision.HIGHEST,
        )
        o_ref[i] = (acc + bias).astype(o_ref.dtype)


def _largest_divisor_leq(n, target):
    target = max(1, min(n, int(target)))
    for d in range(target, 0, -1):
        if n % d == 0:
            return d
    return 1


def _device_has_multiple_tensorcores():
    # v7x has 2 TCs per chip; v4-style megacore also shards "parallel" grid
    # axes across cores.  Any failure to query -> assume single TC (safe).
    try:
        kind = jax.devices()[0].device_kind.lower()
    except Exception:
        return False
    return ("v7" in kind) or ("v4" in kind)


def conv1x1_pallas(x_nchw, weight, bias, *, max_tl=2048, images_per_step=None):
    """1x1 conv over channels, operating on native NCHW layout.

    x_nchw: (N, C, H, W) float32
    weight: (out_ch, C, 1, 1) float32  (PyTorch Conv2d layout)
    bias:   (out_ch,) float32
    returns (N, out_ch, H, W) float32
    """
    N, C, H, W = x_nchw.shape
    out_ch = weight.shape[0]
    L = H * W
    itemsize = jnp.dtype(x_nchw.dtype).itemsize

    # Pure reshapes — no data movement, no transposes.
    x3 = x_nchw.reshape(N, C, L)          # (N, C, L)
    w = weight.reshape(out_ch, C)         # (out_ch, C)

    # Spatial (lane) tiling: one shot if it fits, otherwise max_tl-wide tiles.
    # No padding/slicing in the wrapper — Pallas masks the ragged last tile.
    tl = L if L <= max_tl else max_tl     # max_tl is a multiple of 128
    n_l = pl.cdiv(L, tl)

    # Images per grid step.  Single-TC chips: fold the whole batch into one
    # step (fewer pipeline steps).  Multi-TC chips: keep >=2 steps over N so
    # both TensorCores get work via the "parallel" semantics.
    if images_per_step is None:
        if _device_has_multiple_tensorcores() and N > 1:
            bn = _largest_divisor_leq(N, max(1, N // 2))
        else:
            bn = N
    else:
        bn = _largest_divisor_leq(N, images_per_step)
    # Conservative VMEM budget (fits every generation's scoped default):
    vmem_budget = 10 * 1024 * 1024
    while bn > 1 and 2 * bn * (C + out_ch) * tl * itemsize > vmem_budget:
        bn = _largest_divisor_leq(N, bn // 2)

    grid = (N // bn, n_l)

    # Bias path: SMEM scalar for the module-default out_ch == 1, VMEM column
    # otherwise.
    bias_in_smem = out_ch == 1
    if bias_in_smem:
        b_arg = bias.reshape(out_ch)                       # (1,) in SMEM
        b_spec = pl.BlockSpec(memory_space=pltpu.MemorySpace.SMEM)
    else:
        b_arg = bias.reshape(out_ch, 1)                    # (out_ch, 1) in VMEM
        b_spec = pl.BlockSpec((out_ch, 1), lambda n, j: (0, 0))

    kernel = functools.partial(
        _conv1x1_kernel, bn=bn, bias_in_smem=bias_in_smem)

    # Advisory cost so XLA schedules the surrounding graph around this tiny op.
    cost = pl.CostEstimate(
        flops=2 * N * out_ch * C * L,
        transcendentals=0,
        bytes_accessed=(x3.size + w.size + bias.size + N * out_ch * L) * itemsize,
    )

    # Only raise the scoped-VMEM limit if a big custom tile actually needs it
    # (keeps v7x's 64 MiB physical / 32 MiB scoped default happy).
    vmem_needed = (2 * bn * (C + out_ch) * tl + 2 * out_ch * C) * itemsize + (1 << 16)
    cp_kwargs = dict(dimension_semantics=("parallel", "parallel"))
    if vmem_needed > 12 * 1024 * 1024:
        cp_kwargs["vmem_limit_bytes"] = int(min(64 * 1024 * 1024, 2 * vmem_needed))

    out3 = pl.pallas_call(
        kernel,
        out_shape=jax.ShapeDtypeStruct((N, out_ch, L), x3.dtype),
        grid_spec=pltpu.PrefetchScalarGridSpec(
            num_scalar_prefetch=0,
            grid=grid,
            in_specs=[
                # x tile: bn images x (C, tl) lanes of activations
                pl.BlockSpec((bn, C, tl), lambda n, j: (n, 0, j)),
                # full weight, resident across the grid
                pl.BlockSpec((out_ch, C), lambda n, j: (0, 0)),
                # bias (SMEM scalar or VMEM column)
                b_spec,
            ],
            # lane-dense output tile: last dim is tl (unmasked stores for
            # tl >= 128; full-extent exception keeps tiny maps legal too)
            out_specs=pl.BlockSpec((bn, out_ch, tl), lambda n, j: (n, 0, j)),
        ),
        compiler_params=pltpu.CompilerParams(**cp_kwargs),
        cost_estimate=cost,
    )(x3, w, b_arg)

    return out3.reshape(N, out_ch, H, W)


def multi_sample_classifier_forward(x, weight, bias, dropout_num=1):
    """Forward of MultiSampleClassifier.

    Default config (use=False): dropout_num=1, drop_prob=0 -> every
    DropBlock2D is the identity, and summing dropout_num identical conv
    outputs then dividing by dropout_num is exactly one conv.  No extra
    elementwise pass is emitted.
    """
    del dropout_num  # averaging identical terms is a no-op
    return conv1x1_pallas(x, weight, bias)


if __name__ == "__main__":
    # Module defaults: in_ch=320, out_ch=1, use=False -> dropout_num=1, drop_prob=0.
    N, C, H, W = 2, 320, 16, 16
    out_ch = 1

    key = jax.random.PRNGKey(0)
    kx, kw, kb = jax.random.split(key, 3)

    x = jax.random.normal(kx, (N, C, H, W), dtype=jnp.float32)
    # Deterministic Conv2d(320, 1, k=1) parameters (PyTorch layout (out_ch, in_ch, 1, 1)).
    bound = 1.0 / (C ** 0.5)
    weight = jax.random.uniform(kw, (out_ch, C, 1, 1), minval=-bound, maxval=bound,
                                dtype=jnp.float32)
    bias = jax.random.uniform(kb, (out_ch,), minval=-bound, maxval=bound,
                              dtype=jnp.float32)

    logits = multi_sample_classifier_forward(x, weight, bias, dropout_num=1)
    logits = jax.block_until_ready(logits)

    # Sanity check against plain-JAX reference (1x1 conv == einsum over channels).
    ref = jnp.einsum("nchw,oc->nohw", x, weight.reshape(out_ch, C),
                     precision=jax.lax.Precision.HIGHEST)
    ref = ref + bias.reshape(1, out_ch, 1, 1)
    assert logits.shape == (N, out_ch, H, W)
    assert jnp.allclose(logits, ref, atol=1e-4, rtol=1e-4)

    print("KERNEL_OK")
</pallas_src>

<mosaic_0001>
module attributes {stable_mosaic.version = 11 : i64} {
  func.func @_conv1x1_kernel(%arg0: i32, %arg1: i32, %arg2: memref<2x320x256xf32, #tpu.memory_space<vmem>>, %arg3: memref<1x320xf32, #tpu.memory_space<vmem>>, %arg4: memref<1xf32, #tpu.memory_space<smem>>, %arg5: memref<2x1x256xf32, #tpu.memory_space<vmem>>) attributes {dimension_semantics = [#tpu.dimension_semantics<parallel>, #tpu.dimension_semantics<parallel>], iteration_bounds = array<i64: 1, 1>, scalar_prefetch = 0 : i64, scratch_operands = 0 : i64, tpu.core_type = #tpu.core_type<tc>, window_params = [{transform_indices = @transform_0, window_bounds = array<i64: 2, 320, 256>}, {pipeline_mode = #tpu.pipeline_mode<synchronous>, transform_indices = @transform_1, window_bounds = array<i64: 1, 320>}, {transform_indices = @transform_2, window_bounds = array<i64: 1>}, {transform_indices = @transform_3, window_bounds = array<i64: 2, 1, 256>}]} {
    %c0 = arith.constant 0 : index
    %0 = memref.load %arg4[%c0] : memref<1xf32, #tpu.memory_space<smem>>
    %c0_0 = arith.constant 0 : index
    %c0_1 = arith.constant 0 : index
    %1 = vector.load %arg3[%c0_0, %c0_1] : memref<1x320xf32, #tpu.memory_space<vmem>>, vector<1x320xf32>
    %c0_2 = arith.constant 0 : index
    %c0_3 = arith.constant 0 : index
    %c0_4 = arith.constant 0 : index
    %2 = vector.load %arg2[%c0_2, %c0_3, %c0_4] : memref<2x320x256xf32, #tpu.memory_space<vmem>>, vector<1x320x256xf32>
    %3 = vector.shape_cast %2 : vector<1x320x256xf32> to vector<320x256xf32>
    %cst = arith.constant dense<0.000000e+00> : vector<1x256xf32>
    %4 = tpu.matmul %1, %3, %cst {dimension_numbers = #tpu.dot_dimension_numbers<[1], [0], [0], [1], [0, 0, 1, 1], [], []>, precision = #tpu.contract_precision<fp32>} : vector<1x320xf32>, vector<320x256xf32>, vector<1x256xf32> -> vector<1x256xf32>
    %5 = vector.broadcast %0 : f32 to vector<1x256xf32>
    %6 = arith.addf %4, %5 : vector<1x256xf32>
    %c0_5 = arith.constant 0 : index
    %c0_6 = arith.constant 0 : index
    %c0_7 = arith.constant 0 : index
    %7 = vector.load %arg5[%c0_5, %c0_6, %c0_7] : memref<2x1x256xf32, #tpu.memory_space<vmem>>, vector<1x1x256xf32>
    %8 = vector.shape_cast %7 : vector<1x1x256xf32> to vector<1x256xf32>
    %9 = vector.shape_cast %6 : vector<1x256xf32> to vector<1x1x256xf32>
    tpu.vector_store %arg5[%c0_5, %c0_6, %c0_7], %9 {strides = array<i32>} : memref<2x1x256xf32, #tpu.memory_space<vmem>>, vector<1x1x256xf32>,
    %c0_8 = arith.constant 0 : index
    %c0_9 = arith.constant 0 : index
    %10 = vector.load %arg3[%c0_8, %c0_9] : memref<1x320xf32, #tpu.memory_space<vmem>>, vector<1x320xf32>
    %c1 = arith.constant 1 : index
    %c0_10 = arith.constant 0 : index
    %c0_11 = arith.constant 0 : index
    %11 = vector.load %arg2[%c1, %c0_10, %c0_11] : memref<2x320x256xf32, #tpu.memory_space<vmem>>, vector<1x320x256xf32>
    %12 = vector.shape_cast %11 : vector<1x320x256xf32> to vector<320x256xf32>
    %cst_12 = arith.constant dense<0.000000e+00> : vector<1x256xf32>
    %13 = tpu.matmul %10, %12, %cst_12 {dimension_numbers = #tpu.dot_dimension_numbers<[1], [0], [0], [1], [0, 0, 1, 1], [], []>, precision = #tpu.contract_precision<fp32>} : vector<1x320xf32>, vector<320x256xf32>, vector<1x256xf32> -> vector<1x256xf32>
    %14 = vector.broadcast %0 : f32 to vector<1x256xf32>
    %15 = arith.addf %13, %14 : vector<1x256xf32>
    %c1_13 = arith.constant 1 : index
    %c0_14 = arith.constant 0 : index
    %c0_15 = arith.constant 0 : index
    %16 = vector.load %arg5[%c1_13, %c0_14, %c0_15] : memref<2x1x256xf32, #tpu.memory_space<vmem>>, vector<1x1x256xf32>
    %17 = vector.shape_cast %16 : vector<1x1x256xf32> to vector<1x256xf32>
    %18 = vector.shape_cast %15 : vector<1x256xf32> to vector<1x1x256xf32>
    tpu.vector_store %arg5[%c1_13, %c0_14, %c0_15], %18 {strides = array<i32>} : memref<2x1x256xf32, #tpu.memory_space<vmem>>, vector<1x1x256xf32>,
    return
  }
  func.func @transform_0(%arg0: i32, %arg1: i32) -> (i32, i32, i32) {
    %c0_i32 = arith.constant 0 : i32
    %c0_i32_0 = arith.constant 0 : i32
    return %arg0, %c0_i32, %arg1 : i32, i32, i32
  }
  func.func @transform_1(%arg0: i32, %arg1: i32) -> (i32, i32) {
    %c0_i32 = arith.constant 0 : i32
    %c0_i32_0 = arith.constant 0 : i32
    %c0_i32_1 = arith.constant 0 : i32
    return %c0_i32, %c0_i32_0 : i32, i32
  }
  func.func @transform_2(%arg0: i32, %arg1: i32) -> i32 {
    %c0_i32 = arith.constant 0 : i32
    %c0_i32_0 = arith.constant 0 : i32
    return %c0_i32 : i32
  }
  func.func @transform_3(%arg0: i32, %arg1: i32) -> (i32, i32, i32) {
    %c0_i32 = arith.constant 0 : i32
    %c0_i32_0 = arith.constant 0 : i32
    return %arg0, %c0_i32, %arg1 : i32, i32, i32
  }
}

</mosaic_0001>

<bundles_post_ra>
// kernel: tpu_custom_call.1
= control target key start
LH: loop header
LB: loop body
LE: loop exit
PB: predicated region body
PF: predicated region fallthrough
CT: control target
= control target key end

     0   :  { %9 = vsyncpa [#allocation4], 0  ;;  %s7355_s0 = inlined_call_operand.hbm [shape: f32[2,320,256], index: 0, kind: input, shape index: {}]   ;;  %s7356_s1 = inlined_call_operand.vmem [shape: f32[1,320], index: 1, kind: input, shape index: {}]   ;;  %s7357_s2 = inlined_call_operand.<no memory space> [shape: f32[1], index: 2, kind: input, shape index: {}]   ;;  %s7358_s3 = inlined_call_operand.hbm [shape: f32[2,1,256], index: 3, kind: output, shape index: {}]  }
   0x1   :  { %10 = vsyncpa [#allocation5], 0  ;;  %s5218_s12 = smov [#allocation3]   ;;  %s5170_s16 = scalar_lea.hbm %s7355_s0, 20480 }
   0x2   :  { %s16_s13 = sshll.u32 %s5218_s12, 4  ;;  %p5171_p0 = scmp.ne.s32.totalorder %s7355_s0, %s5170_s16  ;;  %s17_s13 = int_to_ptr.vmem [resolvable:$true] %s16_s13 }
   0x3   :  { %p5174_p1 = scmp.lt.u32.totalorder %s5170_s16, %s7355_s0 }
   0x5   :  { %p5176_p2 = pnand %p5174_p1, %p5171_p0 }
   0x7   :  { %5179 = shalt.err (!%p5176_p2)
}
   0x8   :  { %s5180_s21 = scalar_lea.vmem %s17_s13, 20480  ;;  %p5185_p4 = scmp.lt.s32.totalorder %s17_s13, %s17_s13 }
   0x9   :  { %p5181_p3 = scmp.ne.s32.totalorder %s17_s13, %s5180_s21  ;;  %p5186_p5 = scmp.lt.s32.totalorder %s5180_s21, %s5180_s21 }
   0xb   :  { %p5187_p6 = por %p5186_p5, %p5185_p4 }
   0xd   :  { %p5188_p7 = pnand %p5187_p6, %p5181_p3 }
   0xf   :  { %5191 = shalt.err (!%p5188_p7)
}
  0x10   :  { %s5219_s22 = smov 256   ;;  %s5220_s23 = smov 16  }
  0x11   :  { %22 = dma.hbm_to_vmem [thread:$0]  %s7355_s0, 20480, %s17_s13, [#allocation4], %s5219_s22, %s5219_s22, %s5220_s23  }
  0x12   :  { %5214 = dma.done.wait [#allocation4], 20480  }
  0x13   :  { %5215 = vsyncadd [#allocation4], 4294946816  ;;  %v7359_v0 = vlaneseq  ;;  %v33_v2 = vld [vmem:[#allocation3 + $0x8] sm:$0xff]  ;;  %v35_v3 = vld [vmem:[#allocation3 + $0x18] sm:$0xff]  ;;  %vm128_vm0 = vcmask 523264   ;;  %s5223_s7 = smov [#allocation6]  }
  0x14   :  { %v2088_v4 = vld [vmem:[#allocation3 + $0x288] sm:$0xff]  ;;  %v131_v6 = vand.u32 4294901760, %v33_v2  ;;  %v135_v7 = vand.u32 4294901760, %v35_v3  ;;  %v2090_v8 = vld [vmem:[#allocation3 + $0x298] sm:$0xff]  ;;  %v32_v10 = vld [vmem:[#allocation3] sm:$0xff]  ;;  %s4140_s8 = sshll.u32 %s5223_s7, 4  ;;  %s4141_s8 = int_to_ptr.vmem [resolvable:$true] %s4140_s8 }
  0x15   :  { %v5259_v1 = vshrl.u32 %v7359_v0, 7  ;;  %v2184_v9 = vand.u32 4294901760, %v2088_v4  ;;  %v34_v11 = vld [vmem:[#allocation3 + $0x10] sm:$0xff]  ;;  %v2188_v12 = vand.u32 4294901760, %v2090_v8  ;;  %v133_v13 = vand.u32 4294901760, %v32_v10  ;;  %v2087_v15 = vld [vmem:[#allocation3 + $0x280] sm:$0xff]  ;;  %p5197_p9 = scmp.lt.s32.totalorder %s4141_s8, %s4141_s8 }
  0x16   :  { %v137_v14 = vand.u32 4294901760, %v34_v11  ;;  %v2089_v16 = vld [vmem:[#allocation3 + $0x290] sm:$0xff]  ;;  %v37_v17 = vld [vmem:[#allocation3 + $0x28] sm:$0xff]  ;;  %v5262_v18 = vpack.c.bf16 %v135_v7, %v131_v6  ;;  %v5264_v19 = vsub.f32 %v33_v2, %v131_v6  ;;  %v5266_v20 = vsub.f32 %v35_v3, %v135_v7  ;;  %v39_v22 = vld [vmem:[#allocation3 + $0x38] sm:$0xff] }
  0x17   :  { %7928 = vst [vmem:[#allocation9_spill] sm:$0xff] %v5259_v1  ;;  %v5268_v21 = vsub.f32 %v2088_v4, %v2184_v9  ;;  %v2092_v23 = vld [vmem:[#allocation3 + $0x2a8] sm:$0xff]  ;;  %v2094_v24 = vld [vmem:[#allocation3 + $0x2b8] sm:$0xff]  ;;  %v5270_v25 = vpack.c.bf16 %v2188_v12, %v2184_v9  ;;  %v5272_v26 = vsub.f32 %v2090_v8, %v2188_v12  ;;  %v5276_v28 = vsub.f32 %v32_v10, %v133_v13  ;;  %v36_v29 = vld [vmem:[#allocation3 + $0x20] sm:$0xff] }
  0x18   :  { %7929 = vst [vmem:[#allocation10_spill] sm:$0xff] %v5262_v18  ;;  %7930 = vst [vmem:[#allocation11_spill] sm:$0xff] %v5264_v19  ;;  %v5274_v27 = vpack.c.bf16 %v137_v14, %v133_v13  ;;  %4153 = vmatprep.subr.bf16.mxu0 %v5262_v18  ;;  %v5279_v30 = vsub.f32 %v34_v11, %v137_v14  ;;  %v2186_v31 = vand.u32 4294901760, %v2087_v15  ;;  %v2190_v32 = vand.u32 4294901760, %v2089_v16  ;;  %v38_v34 = vld [vmem:[#allocation3 + $0x30] sm:$0xff]  ;;  %v2091_v39 = vld [vmem:[#allocation3 + $0x2a0] sm:$0xff] }
  0x19   :  { %7931 = vst [vmem:[#allocation12_spill] sm:$0xff] %v5266_v20  ;;  %7932 = vst [vmem:[#allocation13_spill] sm:$0xff] %v5268_v21  ;;  %v139_v33 = vand.u32 4294901760, %v37_v17  ;;  %4633 = vmatprep.subr.bf16.mxu1 %v5270_v25  ;;  %v143_v35 = vand.u32 4294901760, %v39_v22  ;;  %v2192_v36 = vand.u32 4294901760, %v2092_v23  ;;  %v2196_v37 = vand.u32 4294901760, %v2094_v24 }
  0x1a   :  { %7933 = vst [vmem:[#allocation14_spill] sm:$0xff] %v5270_v25  ;;  %7934 = vst [vmem:[#allocation15_spill] sm:$0xff] %v5272_v26  ;;  %4155 = vmatpush1.bf16.msra.mxu0 %v5274_v27  ;;  %v141_v38 = vand.u32 4294901760, %v36_v29  ;;  %v2093_v40 = vld [vmem:[#allocation3 + $0x2b0] sm:$0xff]  ;;  %v5283_v41 = vpack.c.bf16 %v2190_v32, %v2186_v31  ;;  %v5285_v42 = vsub.f32 %v2087_v15, %v2186_v31  ;;  %v41_v45 = vld [vmem:[#allocation3 + $0x48] sm:$0xff]  ;;  %v145_v54 = vand.u32 4294901760, %v38_v34 }
  0x1b   :  { %7935 = vst [vmem:[#allocation16_spill] sm:$0xff] %v5274_v27  ;;  %7936 = vst [vmem:[#allocation17_spill] sm:$0xff] %v5276_v28  ;;  %v5287_v43 = vsub.f32 %v2089_v16, %v2190_v32  ;;  %v5289_v44 = vsub.f32 %v37_v17, %v139_v33  ;;  %v43_v46 = vld [vmem:[#allocation3 + $0x58] sm:$0xff]  ;;  %v2096_v47 = vld [vmem:[#allocation3 + $0x2c8] sm:$0xff]  ;;  %v5291_v48 = vpack.c.bf16 %v143_v35, %v139_v33  ;;  %v2194_v56 = vand.u32 4294901760, %v2091_v39 }
  0x1c   :  { %7937 = vst [vmem:[#allocation18_spill] sm:$0xff] %v5279_v30  ;;  %7938 = vst [vmem:[#allocation19_spill] sm:$0xff] %v5283_v41  ;;  %v5293_v49 = vsub.f32 %v39_v22, %v143_v35  ;;  %v5295_v50 = vpack.c.bf16 %v2196_v37, %v2192_v36  ;;  %v5297_v51 = vsub.f32 %v2092_v23, %v2192_v36  ;;  %v2098_v52 = vld [vmem:[#allocation3 + $0x2d8] sm:$0xff]  ;;  %4635 = vmatpush1.bf16.msra.mxu1 %v5283_v41  ;;  %v40_v61 = vld [vmem:[#allocation3 + $0x40] sm:$0xff] }
  0x1d   :  { %7939 = vst [vmem:[#allocation20_spill] sm:$0xff] %v5285_v42  ;;  %7940 = vst [vmem:[#allocation21_spill] sm:$0xff] %v5287_v43  ;;  %v5300_v53 = vsub.f32 %v2094_v24, %v2196_v37  ;;  %v5302_v55 = vsub.f32 %v36_v29, %v141_v38  ;;  %4157 = vmatprep.subr.bf16.mxu0 %v5291_v48  ;;  %v2198_v57 = vand.u32 4294901760, %v2093_v40  ;;  %v147_v58 = vand.u32 4294901760, %v41_v45  ;;  %v42_v62 = vld [vmem:[#allocation3 + $0x50] sm:$0xff]  ;;  %v2095_v6 = vld [vmem:[#allocation3 + $0x2c0] sm:$0xff] }
  0x1e   :  { %7941 = vst [vmem:[#allocation22_spill] sm:$0xff] %v5289_v44  ;;  %7942 = vst [vmem:[#allocation23_spill] sm:$0xff] %v5291_v48  ;;  %4637 = vmatprep.subr.bf16.mxu1 %v5295_v50  ;;  %v151_v59 = vand.u32 4294901760, %v43_v46  ;;  %v2200_v60 = vand.u32 4294901760, %v2096_v47  ;;  %v5306_v63 = vpack.c.bf16 %v145_v54, %v141_v38  ;;  %v5308_v2 = vsub.f32 %v38_v34, %v145_v54  ;;  %v2097_v7 = vld [vmem:[#allocation3 + $0x2d0] sm:$0xff]  ;;  %v45_v8 = vld [vmem:[#allocation3 + $0x68] sm:$0xff] }
  0x1f   :  { %7943 = vst [vmem:[#allocation24_spill] sm:$0xff] %v5293_v49  ;;  %7944 = vst [vmem:[#allocation25_spill] sm:$0xff] %v5295_v50  ;;  %v5310_v3 = vsub.f32 %v2091_v39, %v2194_v56  ;;  %v2204_v4 = vand.u32 4294901760, %v2098_v52  ;;  %v5312_v9 = vpack.c.bf16 %v2198_v57, %v2194_v56  ;;  %v5314_v10 = vsub.f32 %v2093_v40, %v2198_v57  ;;  %v47_v13 = vld [vmem:[#allocation3 + $0x78] sm:$0xff]  ;;  %v2100_v14 = vld [vmem:[#allocation3 + $0x2e8] sm:$0xff] }
  0x20   :  { %7945 = vst [vmem:[#allocation26_spill] sm:$0xff] %v5297_v51  ;;  %7946 = vst [vmem:[#allocation27_spill] sm:$0xff] %v5300_v53  ;;  %v5316_v11 = vpack.c.bf16 %v151_v59, %v147_v58  ;;  %v5318_v12 = vsub.f32 %v41_v45, %v147_v58  ;;  %v2102_v15 = vld [vmem:[#allocation3 + $0x2f8] sm:$0xff]  ;;  %4159 = vmatpush1.bf16.msra.mxu0 %v5306_v63  ;;  %v5321_v16 = vsub.f32 %v43_v46, %v151_v59  ;;  %v44_v37 = vld [vmem:[#allocation3 + $0x60] sm:$0xff] }
  0x21   :  { %7947 = vst [vmem:[#allocation28_spill] sm:$0xff] %v5302_v55  ;;  %7948 = vst [vmem:[#allocation29_spill] sm:$0xff] %v5306_v63  ;;  %v5323_v17 = vpack.c.bf16 %v2204_v4, %v2200_v60  ;;  %v5325_v22 = vsub.f32 %v2096_v47, %v2200_v60  ;;  %v5327_v23 = vsub.f32 %v2098_v52, %v2204_v4  ;;  %4639 = vmatpush1.bf16.msra.mxu1 %v5312_v9  ;;  %v46_v46 = vld [vmem:[#allocation3 + $0x70] sm:$0xff]  ;;  %v2099_v47 = vld [vmem:[#allocation3 + $0x2e0] sm:$0xff] }
  0x22   :  { %7949 = vst [vmem:[#allocation30_spill] sm:$0xff] %v5308_v2  ;;  %7950 = vst [vmem:[#allocation31_spill] sm:$0xff] %v5310_v3  ;;  %4161 = vmatprep.subr.bf16.mxu0 %v5316_v11  ;;  %v149_v24 = vand.u32 4294901760, %v40_v61  ;;  %v153_v29 = vand.u32 4294901760, %v42_v62  ;;  %v2202_v31 = vand.u32 4294901760, %v2095_v6  ;;  %v2206_v32 = vand.u32 4294901760, %v2097_v7 }
  0x23   :  { %7951 = vst [vmem:[#allocation32_spill] sm:$0xff] %v5312_v9  ;;  %7952 = vst [vmem:[#allocation33_spill] sm:$0xff] %v5314_v10  ;;  %4641 = vmatprep.subr.bf16.mxu1 %v5323_v17  ;;  %v155_v33 = vand.u32 4294901760, %v45_v8  ;;  %v159_v34 = vand.u32 4294901760, %v47_v13  ;;  %v2208_v35 = vand.u32 4294901760, %v2100_v14  ;;  %v2212_v36 = vand.u32 4294901760, %v2102_v15 }
  0x24   :  { %7953 = vst [vmem:[#allocation34_spill] sm:$0xff] %v5316_v11  ;;  %7954 = vst [vmem:[#allocation35_spill] sm:$0xff] %v5318_v12  ;;  %v5332_v38 = vpack.c.bf16 %v153_v29, %v149_v24  ;;  %v5334_v39 = vsub.f32 %v40_v61, %v149_v24  ;;  %v5336_v40 = vsub.f32 %v42_v62, %v153_v29  ;;  %v2101_v52 = vld [vmem:[#allocation3 + $0x2f0] sm:$0xff]  ;;  %v49_v59 = vld [vmem:[#allocation3 + $0x88] sm:$0xff]  ;;  %v2210_v29 = vand.u32 4294901760, %v2099_v47 }
  0x25   :  { %7955 = vst [vmem:[#allocation36_spill] sm:$0xff] %v5321_v16  ;;  %7956 = vst [vmem:[#allocation37_spill] sm:$0xff] %v5323_v17  ;;  %v5338_v45 = vpack.c.bf16 %v2206_v32, %v2202_v31  ;;  %v5340_v54 = vsub.f32 %v2095_v6, %v2202_v31  ;;  %v5342_v56 = vsub.f32 %v2097_v7, %v2206_v32  ;;  %v51_v60 = vld [vmem:[#allocation3 + $0x98] sm:$0xff]  ;;  %v2104_v4 = vld [vmem:[#allocation3 + $0x308] sm:$0xff]  ;;  %v157_v6 = vand.u32 4294901760, %v44_v37 }
  0x26   :  { %7957 = vst [vmem:[#allocation38_spill] sm:$0xff] %v5325_v22  ;;  %7958 = vst [vmem:[#allocation39_spill] sm:$0xff] %v5327_v23  ;;  %v5344_v57 = vpack.c.bf16 %v159_v34, %v155_v33  ;;  %v5346_v58 = vsub.f32 %v45_v8, %v155_v33  ;;  %4163 = vmatpush1.bf16.msra.mxu0 %v5332_v38  ;;  %v5350_v61 = vsub.f32 %v47_v13, %v159_v34  ;;  %v2106_v32 = vld [vmem:[#allocation3 + $0x318] sm:$0xff]  ;;  %v48_v5 = vld [vmem:[#allocation3 + $0x80] sm:$0xff] }
  0x27   :  { %7959 = vst [vmem:[#allocation40_spill] sm:$0xff] %v5332_v38  ;;  %7960 = vst [vmem:[#allocation41_spill] sm:$0xff] %v5334_v39  ;;  %4643 = vmatpush1.bf16.msra.mxu1 %v5338_v45  ;;  %v5352_v62 = vpack.c.bf16 %v2212_v36, %v2208_v35  ;;  %v5354_v24 = vsub.f32 %v2100_v14, %v2208_v35  ;;  %v5357_v7 = vsub.f32 %v2102_v15, %v2212_v36  ;;  %v2103_v14 = vld [vmem:[#allocation3 + $0x300] sm:$0xff]  ;;  %v53_v17 = vld [vmem:[#allocation3 + $0xa8] sm:$0xff] }
  0x28   :  { %7961 = vst [vmem:[#allocation42_spill] sm:$0xff] %v5336_v40  ;;  %7962 = vst [vmem:[#allocation43_spill] sm:$0xff] %v5338_v45  ;;  %4165 = vmatprep.subr.bf16.mxu0 %v5344_v57  ;;  %v161_v8 = vand.u32 4294901760, %v46_v46  ;;  %v2214_v31 = vand.u32 4294901760, %v2101_v52  ;;  %v5360_v33 = vsub.f32 %v44_v37, %v157_v6  ;;  %v163_v0 = vand.u32 4294901760, %v49_v59  ;;  %v50_v45 = vld [vmem:[#allocation3 + $0x90] sm:$0xff] }
  0x29   :  { %7963 = vst [vmem:[#allocation44_spill] sm:$0xff] %v5340_v54  ;;  %7964 = vst [vmem:[#allocation45_spill] sm:$0xff] %v5342_v56  ;;  %4645 = vmatprep.subr.bf16.mxu1 %v5352_v62  ;;  %v167_v13 = vand.u32 4294901760, %v51_v60  ;;  %v2216_v34 = vand.u32 4294901760, %v2104_v4  ;;  %v5368_v36 = vsub.f32 %v2099_v47, %v2210_v29  ;;  %v55_v9 = vld [vmem:[#allocation3 + $0xb8] sm:$0xff]  ;;  %v165_v47 = vand.u32 4294901760, %v48_v5 }
  0x2a   :  { %7965 = vst [vmem:[#allocation46_spill] sm:$0xff] %v5344_v57  ;;  %7966 = vst [vmem:[#allocation47_spill] sm:$0xff] %v5346_v58  ;;  %v5362_v35 = vpack.c.bf16 %v161_v8, %v157_v6  ;;  %v5364_v38 = vsub.f32 %v46_v46, %v161_v8  ;;  %v5366_v15 = vpack.c.bf16 %v2214_v31, %v2210_v29  ;;  %v2105_v57 = vld [vmem:[#allocation3 + $0x310] sm:$0xff]  ;;  %v2220_v46 = vand.u32 4294901760, %v2106_v32  ;;  %v2108_v41 = vld [vmem:[#allocation3 + $0x328] sm:$0xff] }
  0x2b   :  { %7967 = vst [vmem:[#allocation48_spill] sm:$0xff] %v5350_v61  ;;  %7968 = vst [vmem:[#allocation49_spill] sm:$0xff] %v5352_v62  ;;  %v5370_v62 = vsub.f32 %v2101_v52, %v2214_v31  ;;  %v5372_v37 = vpack.c.bf16 %v167_v13, %v163_v0  ;;  %v5374_v11 = vsub.f32 %v49_v59, %v163_v0  ;;  %v169_v8 = vand.u32 4294901760, %v50_v45  ;;  %v2110_v0 = vld [vmem:[#allocation3 + $0x338] sm:$0xff]  ;;  %v2107_v48 = vld [vmem:[#allocation3 + $0x320] sm:$0xff] }
  0x2c   :  { %7969 = vst [vmem:[#allocation50_spill] sm:$0xff] %v5354_v24  ;;  %7970 = vst [vmem:[#allocation51_spill] sm:$0xff] %v5357_v7  ;;  %v5376_v63 = vsub.f32 %v51_v60, %v167_v13  ;;  %4167 = vmatpush1.bf16.msra.mxu0 %v5362_v35  ;;  %4647 = vmatpush1.bf16.msra.mxu1 %v5366_v15  ;;  %v5380_v6 = vsub.f32 %v2104_v4, %v2216_v34  ;;  %v2218_v29 = vand.u32 4294901760, %v2103_v14  ;;  %v52_v4 = vld [vmem:[#allocation3 + $0xa0] sm:$0xff] }
  0x2d   :  { %7971 = vst [vmem:[#allocation52_spill] sm:$0xff] %v5360_v33  ;;  %7972 = vst [vmem:[#allocation53_spill] sm:$0xff] %v5362_v35  ;;  %4169 = vmatprep.subr.bf16.mxu0 %v5372_v37  ;;  %v2222_v52 = vand.u32 4294901760, %v2105_v57  ;;  %v171_v31 = vand.u32 4294901760, %v53_v17  ;;  %v175_v50 = vand.u32 4294901760, %v55_v9  ;;  %v5383_v59 = vpack.c.bf16 %v2220_v46, %v2216_v34  ;;  %v54_v35 = vld [vmem:[#allocation3 + $0xb0] sm:$0xff] }
  0x2e   :  { %7973 = vst [vmem:[#allocation54_spill] sm:$0xff] %v5364_v38  ;;  %7974 = vst [vmem:[#allocation55_spill] sm:$0xff] %v5366_v15  ;;  %v5385_v60 = vsub.f32 %v2106_v32, %v2220_v46  ;;  %v5387_v13 = vpack.c.bf16 %v169_v8, %v165_v47  ;;  %v5389_v15 = vsub.f32 %v48_v5, %v165_v47  ;;  %v57_v34 = vld [vmem:[#allocation3 + $0xc8] sm:$0xff]  ;;  %v173_v47 = vand.u32 4294901760, %v52_v4 }
  0x2f   :  { %7975 = vst [vmem:[#allocation56_spill] sm:$0xff] %v5368_v36  ;;  %7976 = vst [vmem:[#allocation57_spill] sm:$0xff] %v5370_v62  ;;  %v5391_v27 = vsub.f32 %v50_v45, %v169_v8  ;;  %v5395_v25 = vsub.f32 %v2103_v14, %v2218_v29  ;;  %v5397_v18 = vsub.f32 %v2105_v57, %v2222_v52  ;;  %4649 = vmatprep.subr.bf16.mxu1 %v5383_v59 }
  0x30   :  { %7977 = vst [vmem:[#allocation58_spill] sm:$0xff] %v5372_v37  ;;  %7978 = vst [vmem:[#allocation59_spill] sm:$0xff] %v5374_v11  ;;  %v5393_v37 = vpack.c.bf16 %v2222_v52, %v2218_v29  ;;  %4171 = vmatpush1.bf16.msra.mxu0 %v5387_v13  ;;  %v5401_v5 = vpack.c.bf16 %v175_v50, %v171_v31  ;;  %v5403_v32 = vsub.f32 %v53_v17, %v171_v31 }
  0x31   :  { %7979 = vst [vmem:[#allocation60_spill] sm:$0xff] %v5376_v63  ;;  %7980 = vst [vmem:[#allocation61_spill] sm:$0xff] %v5380_v6  ;;  %v2109_v6 = vld [vmem:[#allocation3 + $0x330] sm:$0xff]  ;;  %v59_v63 = vld [vmem:[#allocation3 + $0xd8] sm:$0xff]  ;;  %v5405_v46 = vsub.f32 %v55_v9, %v175_v50  ;;  %v2224_v45 = vand.u32 4294901760, %v2108_v41  ;;  %v2228_v14 = vand.u32 4294901760, %v2110_v0  ;;  %v5417_v31 = vsub.f32 %v52_v4, %v173_v47 }
  0x32   :  { %7981 = vst [vmem:[#allocation62_spill] sm:$0xff] %v5383_v59  ;;  %7982 = vst [vmem:[#allocation63_spill] sm:$0xff] %v5385_v60  ;;  %4651 = vmatpush1.bf16.msra.mxu1 %v5393_v37  ;;  %v177_v57 = vand.u32 4294901760, %v54_v35  ;;  %v2226_v8 = vand.u32 4294901760, %v2107_v48  ;;  %4173 = vmatprep.subr.bf16.mxu0 %v5401_v5  ;;  %v2230_v52 = vand.u32 4294901760, %v2109_v6  ;;  %v179_v59 = vand.u32 4294901760, %v57_v34 }
  0x33   :  { %7983 = vst [vmem:[#allocation64_spill] sm:$0xff] %v5387_v13  ;;  %7984 = vst [vmem:[#allocation65_spill] sm:$0xff] %v5389_v15  ;;  %v5409_v29 = vsub.f32 %v2108_v41, %v2224_v45  ;;  %v183_v13 = vand.u32 4294901760, %v59_v63  ;;  %v5411_v17 = vpack.c.bf16 %v2228_v14, %v2224_v45  ;;  %v5413_v50 = vsub.f32 %v2110_v0, %v2228_v14  ;;  %v2113_v15 = vld [vmem:[#allocation3 + $0x350] sm:$0xff]  ;;  %v61_v45 = vld [vmem:[#allocation3 + $0xe8] sm:$0xff] }
  0x34   :  { %7985 = vst [vmem:[#allocation66_spill] sm:$0xff] %v5391_v27  ;;  %7986 = vst [vmem:[#allocation67_spill] sm:$0xff] %v5393_v37  ;;  %v5415_v9 = vpack.c.bf16 %v177_v57, %v173_v47  ;;  %v56_v37 = vld [vmem:[#allocation3 + $0xc0] sm:$0xff]  ;;  %v5419_v27 = vsub.f32 %v54_v35, %v177_v57  ;;  %v5421_v41 = vpack.c.bf16 %v2230_v52, %v2226_v8  ;;  %v63_v60 = vld [vmem:[#allocation3 + $0xf8] sm:$0xff] }
  0x35   :  { %7987 = vst [vmem:[#allocation68_spill] sm:$0xff] %v5395_v25  ;;  %7988 = vst [vmem:[#allocation69_spill] sm:$0xff] %v5397_v18  ;;  %v2112_v18 = vld [vmem:[#allocation3 + $0x348] sm:$0xff]  ;;  %v2114_v25 = vld [vmem:[#allocation3 + $0x358] sm:$0xff]  ;;  %4653 = vmatprep.subr.bf16.mxu1 %v5411_v17  ;;  %v5429_v0 = vpack.c.bf16 %v183_v13, %v179_v59  ;;  %v5431_v4 = vsub.f32 %v57_v34, %v179_v59  ;;  %v5433_v14 = vsub.f32 %v59_v63, %v183_v13 }
  0x36   :  { %7989 = vst [vmem:[#allocation70_spill] sm:$0xff] %v5401_v5  ;;  %7990 = vst [vmem:[#allocation71_spill] sm:$0xff] %v5403_v32  ;;  %v2111_v32 = vld [vmem:[#allocation3 + $0x340] sm:$0xff]  ;;  %v5423_v5 = vsub.f32 %v2107_v48, %v2226_v8  ;;  %4175 = vmatpush1.bf16.msra.mxu0 %v5415_v9  ;;  %v2232_v35 = vand.u32 4294901760, %v2112_v18  ;;  %4655 = vmatpush1.bf16.msra.mxu1 %v5421_v41  ;;  %v2236_v48 = vand.u32 4294901760, %v2114_v25  ;;  %v181_v47 = vand.u32 4294901760, %v56_v37 }
  0x37   :  { %7991 = vst [vmem:[#allocation72_spill] sm:$0xff] %v5405_v46  ;;  %7992 = vst [vmem:[#allocation73_spill] sm:$0xff] %v5409_v29  ;;  %v58_v46 = vld [vmem:[#allocation3 + $0xd0] sm:$0xff]  ;;  %v5425_v29 = vsub.f32 %v2109_v6, %v2230_v52  ;;  %v2234_v57 = vand.u32 4294901760, %v2111_v32  ;;  %4177 = vmatprep.subr.bf16.mxu0 %v5429_v0  ;;  %v2238_v52 = vand.u32 4294901760, %v2113_v15 }
  0x38   :  { %7993 = vst [vmem:[#allocation74_spill] sm:$0xff] %v5411_v17  ;;  %7994 = vst [vmem:[#allocation75_spill] sm:$0xff] %v5413_v50  ;;  %v185_v6 = vand.u32 4294901760, %v58_v46  ;;  %v5437_v8 = vsub.f32 %v2112_v18, %v2232_v35  ;;  %v187_v17 = vand.u32 4294901760, %v61_v45  ;;  %v5439_v59 = vpack.c.bf16 %v2236_v48, %v2232_v35  ;;  %v65_v35 = vld [vmem:[#allocation3 + $0x108] sm:$0xff]  ;;  %v67_v50 = vld [vmem:[#allocation3 + $0x118] sm:$0xff] }
  0x39   :  { %7995 = vst [vmem:[#allocation76_spill] sm:$0xff] %v5415_v9  ;;  %7996 = vst [vmem:[#allocation77_spill] sm:$0xff] %v5417_v31  ;;  %v191_v9 = vand.u32 4294901760, %v63_v60  ;;  %v5441_v63 = vsub.f32 %v2114_v25, %v2236_v48  ;;  %v5445_v34 = vsub.f32 %v56_v37, %v181_v47  ;;  %v5449_v18 = vpack.c.bf16 %v2238_v52, %v2234_v57  ;;  %v2117_v31 = vld [vmem:[#allocation3 + $0x370] sm:$0xff] }
  0x3a   :  { %7997 = vst [vmem:[#allocation78_spill] sm:$0xff] %v5419_v27  ;;  %7998 = vst [vmem:[#allocation79_spill] sm:$0xff] %v5421_v41  ;;  %v5443_v13 = vpack.c.bf16 %v185_v6, %v181_v47  ;;  %v60_v41 = vld [vmem:[#allocation3 + $0xe0] sm:$0xff]  ;;  %v5447_v27 = vsub.f32 %v58_v46, %v185_v6  ;;  %4657 = vmatprep.subr.bf16.mxu1 %v5439_v59  ;;  %v5459_v37 = vsub.f32 %v61_v45, %v187_v17 }
  0x3b   :  { %7999 = vst [vmem:[#allocation80_spill] sm:$0xff] %v5423_v5  ;;  %8000 = vst [vmem:[#allocation81_spill] sm:$0xff] %v5425_v29  ;;  %v2116_v29 = vld [vmem:[#allocation3 + $0x368] sm:$0xff]  ;;  %v2118_v5 = vld [vmem:[#allocation3 + $0x378] sm:$0xff]  ;;  %v5457_v25 = vpack.c.bf16 %v191_v9, %v187_v17  ;;  %v5461_v48 = vsub.f32 %v63_v60, %v191_v9  ;;  %4659 = vmatpush1.bf16.msra.mxu1 %v5449_v18  ;;  %v189_v47 = vand.u32 4294901760, %v60_v41 }
  0x3c   :  { %8001 = vst [vmem:[#allocation82_spill] sm:$0xff] %v5429_v0  ;;  %8002 = vst [vmem:[#allocation83_spill] sm:$0xff] %v5431_v4  ;;  %v2115_v4 = vld [vmem:[#allocation3 + $0x360] sm:$0xff]  ;;  %v5451_v0 = vsub.f32 %v2111_v32, %v2234_v57  ;;  %4179 = vmatpush1.bf16.msra.mxu0 %v5443_v13  ;;  %v2240_v46 = vand.u32 4294901760, %v2116_v29  ;;  %v2244_v32 = vand.u32 4294901760, %v2118_v5 }
  0x3d   :  { %8003 = vst [vmem:[#allocation84_spill] sm:$0xff] %v5433_v14  ;;  %8004 = vst [vmem:[#allocation85_spill] sm:$0xff] %v5437_v8  ;;  %v62_v14 = vld [vmem:[#allocation3 + $0xf0] sm:$0xff]  ;;  %v5453_v8 = vsub.f32 %v2113_v15, %v2238_v52  ;;  %v2242_v6 = vand.u32 4294901760, %v2115_v4  ;;  %4181 = vmatprep.subr.bf16.mxu0 %v5457_v25  ;;  %v2246_v52 = vand.u32 4294901760, %v2117_v31  ;;  %v5473_v45 = vsub.f32 %v60_v41, %v189_v47 }
  0x3e   :  { %8005 = vst [vmem:[#allocation86_spill] sm:$0xff] %v5439_v59  ;;  %8006 = vst [vmem:[#allocation87_spill] sm:$0xff] %v5441_v63  ;;  %v193_v15 = vand.u32 4294901760, %v62_v14  ;;  %v5465_v57 = vsub.f32 %v2116_v29, %v2240_v46  ;;  %v195_v59 = vand.u32 4294901760, %v65_v35  ;;  %v5467_v17 = vpack.c.bf16 %v2244_v32, %v2240_v46  ;;  %v69_v46 = vld [vmem:[#allocation3 + $0x128] sm:$0xff]  ;;  %v71_v63 = vld [vmem:[#allocation3 + $0x138] sm:$0xff] }
  0x3f   :  { %8007 = vst [vmem:[#allocation88_spill] sm:$0xff] %v5443_v13  ;;  %8008 = vst [vmem:[#allocation89_spill] sm:$0xff] %v5445_v34  ;;  %v199_v13 = vand.u32 4294901760, %v67_v50  ;;  %v5469_v60 = vsub.f32 %v2118_v5, %v2244_v32  ;;  %v5477_v29 = vpack.c.bf16 %v2246_v52, %v2242_v6  ;;  %v2121_v34 = vld [vmem:[#allocation3 + $0x390] sm:$0xff] }
  0x40   :  { %8009 = vst [vmem:[#allocation90_spill] sm:$0xff] %v5447_v27  ;;  %8010 = vst [vmem:[#allocation91_spill] sm:$0xff] %v5449_v18  ;;  %v5471_v9 = vpack.c.bf16 %v193_v15, %v189_v47  ;;  %v64_v18 = vld [vmem:[#allocation3 + $0x100] sm:$0xff]  ;;  %v5475_v27 = vsub.f32 %v62_v14, %v193_v15  ;;  %4661 = vmatprep.subr.bf16.mxu1 %v5467_v17  ;;  %v5487_v41 = vsub.f32 %v65_v35, %v195_v59 }
  0x41   :  { %8011 = vst [vmem:[#allocation92_spill] sm:$0xff] %v5451_v0  ;;  %8012 = vst [vmem:[#allocation93_spill] sm:$0xff] %v5453_v8  ;;  %v2120_v8 = vld [vmem:[#allocation3 + $0x388] sm:$0xff]  ;;  %v2122_v0 = vld [vmem:[#allocation3 + $0x398] sm:$0xff]  ;;  %v5485_v5 = vpack.c.bf16 %v199_v13, %v195_v59  ;;  %v5489_v32 = vsub.f32 %v67_v50, %v199_v13  ;;  %4663 = vmatpush1.bf16.msra.mxu1 %v5477_v29  ;;  %v197_v47 = vand.u32 4294901760, %v64_v18 }
  0x42   :  { %8013 = vst [vmem:[#allocation94_spill] sm:$0xff] %v5457_v25  ;;  %8014 = vst [vmem:[#allocation95_spill] sm:$0xff] %v5459_v37  ;;  %v2119_v37 = vld [vmem:[#allocation3 + $0x380] sm:$0xff]  ;;  %v5479_v25 = vsub.f32 %v2115_v4, %v2242_v6  ;;  %4183 = vmatpush1.bf16.msra.mxu0 %v5471_v9  ;;  %v2248_v14 = vand.u32 4294901760, %v2120_v8  ;;  %v2252_v4 = vand.u32 4294901760, %v2122_v0 }
  0x43   :  { %8015 = vst [vmem:[#allocation96_spill] sm:$0xff] %v5461_v48  ;;  %8016 = vst [vmem:[#allocation97_spill] sm:$0xff] %v5465_v57  ;;  %v66_v48 = vld [vmem:[#allocation3 + $0x110] sm:$0xff]  ;;  %v5481_v57 = vsub.f32 %v2117_v31, %v2246_v52  ;;  %v2250_v15 = vand.u32 4294901760, %v2119_v37  ;;  %4185 = vmatprep.subr.bf16.mxu0 %v5485_v5  ;;  %v2254_v52 = vand.u32 4294901760, %v2121_v34  ;;  %v5501_v35 = vsub.f32 %v64_v18, %v197_v47 }
  0x44   :  { %8017 = vst [vmem:[#allocation98_spill] sm:$0xff] %v5467_v17  ;;  %8018 = vst [vmem:[#allocation99_spill] sm:$0xff] %v5469_v60  ;;  %v201_v31 = vand.u32 4294901760, %v66_v48  ;;  %v5493_v6 = vsub.f32 %v2120_v8, %v2248_v14  ;;  %v203_v17 = vand.u32 4294901760, %v69_v46  ;;  %v5495_v59 = vpack.c.bf16 %v2252_v4, %v2248_v14  ;;  %v73_v14 = vld [vmem:[#allocation3 + $0x148] sm:$0xff]  ;;  %v75_v60 = vld [vmem:[#allocation3 + $0x158] sm:$0xff] }
  0x45   :  { %8019 = vst [vmem:[#allocation100_spill] sm:$0xff] %v5471_v9  ;;  %8020 = vst [vmem:[#allocation101_spill] sm:$0xff] %v5473_v45  ;;  %v207_v9 = vand.u32 4294901760, %v71_v63  ;;  %v5497_v50 = vsub.f32 %v2122_v0, %v2252_v4  ;;  %v5505_v8 = vpack.c.bf16 %v2254_v52, %v2250_v15  ;;  %v2125_v45 = vld [vmem:[#allocation3 + $0x3b0] sm:$0xff] }
  0x46   :  { %8021 = vst [vmem:[#allocation102_spill] sm:$0xff] %v5475_v27  ;;  %8022 = vst [vmem:[#allocation103_spill] sm:$0xff] %v5477_v29  ;;  %v5499_v13 = vpack.c.bf16 %v201_v31, %v197_v47  ;;  %v68_v29 = vld [vmem:[#allocation3 + $0x120] sm:$0xff]  ;;  %v5503_v27 = vsub.f32 %v66_v48, %v201_v31  ;;  %4665 = vmatprep.subr.bf16.mxu1 %v5495_v59  ;;  %v5515_v18 = vsub.f32 %v69_v46, %v203_v17 }
  0x47   :  { %8023 = vst [vmem:[#allocation104_spill] sm:$0xff] %v5479_v25  ;;  %8024 = vst [vmem:[#allocation105_spill] sm:$0xff] %v5481_v57  ;;  %v2124_v57 = vld [vmem:[#allocation3 + $0x3a8] sm:$0xff]  ;;  %v2126_v25 = vld [vmem:[#allocation3 + $0x3b8] sm:$0xff]  ;;  %v5513_v0 = vpack.c.bf16 %v207_v9, %v203_v17  ;;  %v5517_v4 = vsub.f32 %v71_v63, %v207_v9  ;;  %4667 = vmatpush1.bf16.msra.mxu1 %v5505_v8  ;;  %v205_v47 = vand.u32 4294901760, %v68_v29 }
  0x48   :  { %8025 = vst [vmem:[#allocation106_spill] sm:$0xff] %v5485_v5  ;;  %8026 = vst [vmem:[#allocation107_spill] sm:$0xff] %v5487_v41  ;;  %v2123_v41 = vld [vmem:[#allocation3 + $0x3a0] sm:$0xff]  ;;  %v5507_v5 = vsub.f32 %v2119_v37, %v2250_v15  ;;  %4187 = vmatpush1.bf16.msra.mxu0 %v5499_v13  ;;  %v2256_v48 = vand.u32 4294901760, %v2124_v57  ;;  %v2260_v37 = vand.u32 4294901760, %v2126_v25 }
  0x49   :  { %8027 = vst [vmem:[#allocation108_spill] sm:$0xff] %v5489_v32  ;;  %8028 = vst [vmem:[#allocation109_spill] sm:$0xff] %v5493_v6  ;;  %v70_v32 = vld [vmem:[#allocation3 + $0x130] sm:$0xff]  ;;  %v5509_v6 = vsub.f32 %v2121_v34, %v2254_v52  ;;  %v2258_v31 = vand.u32 4294901760, %v2123_v41  ;;  %4189 = vmatprep.subr.bf16.mxu0 %v5513_v0  ;;  %v2262_v52 = vand.u32 4294901760, %v2125_v45  ;;  %v5529_v46 = vsub.f32 %v68_v29, %v205_v47 }
  0x4a   :  { %8029 = vst [vmem:[#allocation110_spill] sm:$0xff] %v5495_v59  ;;  %8030 = vst [vmem:[#allocation111_spill] sm:$0xff] %v5497_v50  ;;  %v209_v34 = vand.u32 4294901760, %v70_v32  ;;  %v5521_v15 = vsub.f32 %v2124_v57, %v2256_v48  ;;  %v211_v59 = vand.u32 4294901760, %v73_v14  ;;  %v5523_v17 = vpack.c.bf16 %v2260_v37, %v2256_v48  ;;  %v77_v48 = vld [vmem:[#allocation3 + $0x168] sm:$0xff]  ;;  %v79_v50 = vld [vmem:[#allocation3 + $0x178] sm:$0xff] }
  0x4b   :  { %8031 = vst [vmem:[#allocation112_spill] sm:$0xff] %v5499_v13  ;;  %8032 = vst [vmem:[#allocation113_spill] sm:$0xff] %v5501_v35  ;;  %v215_v13 = vand.u32 4294901760, %v75_v60  ;;  %v5525_v63 = vsub.f32 %v2126_v25, %v2260_v37  ;;  %v5533_v57 = vpack.c.bf16 %v2262_v52, %v2258_v31  ;;  %v2129_v35 = vld [vmem:[#allocation3 + $0x3d0] sm:$0xff] }
  0x4c   :  { %8033 = vst [vmem:[#allocation114_spill] sm:$0xff] %v5503_v27  ;;  %8034 = vst [vmem:[#allocation115_spill] sm:$0xff] %v5505_v8  ;;  %v5527_v9 = vpack.c.bf16 %v209_v34, %v205_v47  ;;  %v72_v8 = vld [vmem:[#allocation3 + $0x140] sm:$0xff]  ;;  %v5531_v27 = vsub.f32 %v70_v32, %v209_v34  ;;  %4669 = vmatprep.subr.bf16.mxu1 %v5523_v17  ;;  %v5543_v29 = vsub.f32 %v73_v14, %v211_v59 }
  0x4d   :  { %8035 = vst [vmem:[#allocation116_spill] sm:$0xff] %v5507_v5  ;;  %8036 = vst [vmem:[#allocation117_spill] sm:$0xff] %v5509_v6  ;;  %v2128_v6 = vld [vmem:[#allocation3 + $0x3c8] sm:$0xff]  ;;  %v2130_v5 = vld [vmem:[#allocation3 + $0x3d8] sm:$0xff]  ;;  %v5541_v25 = vpack.c.bf16 %v215_v13, %v211_v59  ;;  %v5545_v37 = vsub.f32 %v75_v60, %v215_v13  ;;  %4671 = vmatpush1.bf16.msra.mxu1 %v5533_v57  ;;  %v213_v47 = vand.u32 4294901760, %v72_v8 }
  0x4e   :  { %8037 = vst [vmem:[#allocation118_spill] sm:$0xff] %v5513_v0  ;;  %8038 = vst [vmem:[#allocation119_spill] sm:$0xff] %v5515_v18  ;;  %v2127_v18 = vld [vmem:[#allocation3 + $0x3c0] sm:$0xff]  ;;  %v5535_v0 = vsub.f32 %v2123_v41, %v2258_v31  ;;  %4191 = vmatpush1.bf16.msra.mxu0 %v5527_v9  ;;  %v2264_v32 = vand.u32 4294901760, %v2128_v6  ;;  %v2268_v41 = vand.u32 4294901760, %v2130_v5 }
  0x4f   :  { %8039 = vst [vmem:[#allocation120_spill] sm:$0xff] %v5517_v4  ;;  %8040 = vst [vmem:[#allocation121_spill] sm:$0xff] %v5521_v15  ;;  %v74_v4 = vld [vmem:[#allocation3 + $0x150] sm:$0xff]  ;;  %v5537_v15 = vsub.f32 %v2125_v45, %v2262_v52  ;;  %v2266_v34 = vand.u32 4294901760, %v2127_v18  ;;  %4193 = vmatprep.subr.bf16.mxu0 %v5541_v25  ;;  %v2270_v52 = vand.u32 4294901760, %v2129_v35  ;;  %v5557_v14 = vsub.f32 %v72_v8, %v213_v47 }
  0x50   :  { %8041 = vst [vmem:[#allocation122_spill] sm:$0xff] %v5523_v17  ;;  %8042 = vst [vmem:[#allocation123_spill] sm:$0xff] %v5525_v63  ;;  %v217_v45 = vand.u32 4294901760, %v74_v4  ;;  %v5549_v31 = vsub.f32 %v2128_v6, %v2264_v32  ;;  %v219_v17 = vand.u32 4294901760, %v77_v48  ;;  %v5551_v59 = vpack.c.bf16 %v2268_v41, %v2264_v32  ;;  %v81_v32 = vld [vmem:[#allocation3 + $0x188] sm:$0xff]  ;;  %v83_v63 = vld [vmem:[#allocation3 + $0x198] sm:$0xff] }
  0x51   :  { %8043 = vst [vmem:[#allocation124_spill] sm:$0xff] %v5527_v9  ;;  %8044 = vst [vmem:[#allocation125_spill] sm:$0xff] %v5529_v46  ;;  %v223_v9 = vand.u32 4294901760, %v79_v50  ;;  %v5553_v60 = vsub.f32 %v2130_v5, %v2268_v41  ;;  %v5561_v6 = vpack.c.bf16 %v2270_v52, %v2266_v34  ;;  %v2133_v46 = vld [vmem:[#allocation3 + $0x3f0] sm:$0xff] }
  0x52   :  { %8045 = vst [vmem:[#allocation126_spill] sm:$0xff] %v5531_v27  ;;  %8046 = vst [vmem:[#allocation127_spill] sm:$0xff] %v5533_v57  ;;  %v5555_v13 = vpack.c.bf16 %v217_v45, %v213_v47  ;;  %v76_v57 = vld [vmem:[#allocation3 + $0x160] sm:$0xff]  ;;  %v5559_v27 = vsub.f32 %v74_v4, %v217_v45  ;;  %4673 = vmatprep.subr.bf16.mxu1 %v5551_v59  ;;  %v5571_v8 = vsub.f32 %v77_v48, %v219_v17 }
  0x53   :  { %8047 = vst [vmem:[#allocation128_spill] sm:$0xff] %v5535_v0  ;;  %8048 = vst [vmem:[#allocation129_spill] sm:$0xff] %v5537_v15  ;;  %v2132_v15 = vld [vmem:[#allocation3 + $0x3e8] sm:$0xff]  ;;  %v2134_v0 = vld [vmem:[#allocation3 + $0x3f8] sm:$0xff]  ;;  %v5569_v5 = vpack.c.bf16 %v223_v9, %v219_v17  ;;  %v5573_v41 = vsub.f32 %v79_v50, %v223_v9  ;;  %4675 = vmatpush1.bf16.msra.mxu1 %v5561_v6  ;;  %v221_v47 = vand.u32 4294901760, %v76_v57 }
  0x54   :  { %8049 = vst [vmem:[#allocation130_spill] sm:$0xff] %v5541_v25  ;;  %8050 = vst [vmem:[#allocation131_spill] sm:$0xff] %v5543_v29  ;;  %v2131_v29 = vld [vmem:[#allocation3 + $0x3e0] sm:$0xff]  ;;  %v5563_v25 = vsub.f32 %v2127_v18, %v2266_v34  ;;  %4195 = vmatpush1.bf16.msra.mxu0 %v5555_v13  ;;  %v2272_v4 = vand.u32 4294901760, %v2132_v15  ;;  %v2276_v18 = vand.u32 4294901760, %v2134_v0 }
  0x55   :  { %8051 = vst [vmem:[#allocation132_spill] sm:$0xff] %v5545_v37  ;;  %8052 = vst [vmem:[#allocation133_spill] sm:$0xff] %v5549_v31  ;;  %v78_v37 = vld [vmem:[#allocation3 + $0x170] sm:$0xff]  ;;  %v5565_v31 = vsub.f32 %v2129_v35, %v2270_v52  ;;  %v2274_v45 = vand.u32 4294901760, %v2131_v29  ;;  %4197 = vmatprep.subr.bf16.mxu0 %v5569_v5  ;;  %v2278_v52 = vand.u32 4294901760, %v2133_v46  ;;  %v5585_v48 = vsub.f32 %v76_v57, %v221_v47 }
  0x56   :  { %8053 = vst [vmem:[#allocation134_spill] sm:$0xff] %v5551_v59  ;;  %8054 = vst [vmem:[#allocation135_spill] sm:$0xff] %v5553_v60  ;;  %v225_v35 = vand.u32 4294901760, %v78_v37  ;;  %v5577_v34 = vsub.f32 %v2132_v15, %v2272_v4  ;;  %v227_v59 = vand.u32 4294901760, %v81_v32  ;;  %v5579_v17 = vpack.c.bf16 %v2276_v18, %v2272_v4  ;;  %v85_v4 = vld [vmem:[#allocation3 + $0x1a8] sm:$0xff]  ;;  %v87_v60 = vld [vmem:[#allocation3 + $0x1b8] sm:$0xff] }
  0x57   :  { %8055 = vst [vmem:[#allocation136_spill] sm:$0xff] %v5555_v13  ;;  %8056 = vst [vmem:[#allocation137_spill] sm:$0xff] %v5557_v14  ;;  %v231_v13 = vand.u32 4294901760, %v83_v63  ;;  %v5581_v50 = vsub.f32 %v2134_v0, %v2276_v18  ;;  %v5589_v15 = vpack.c.bf16 %v2278_v52, %v2274_v45  ;;  %v2137_v14 = vld [vmem:[#allocation3 + $0x410] sm:$0xff] }
  0x58   :  { %8057 = vst [vmem:[#allocation138_spill] sm:$0xff] %v5559_v27  ;;  %8058 = vst [vmem:[#allocation139_spill] sm:$0xff] %v5561_v6  ;;  %v5583_v9 = vpack.c.bf16 %v225_v35, %v221_v47  ;;  %v80_v6 = vld [vmem:[#allocation3 + $0x180] sm:$0xff]  ;;  %v5587_v27 = vsub.f32 %v78_v37, %v225_v35  ;;  %4677 = vmatprep.subr.bf16.mxu1 %v5579_v17  ;;  %v5599_v57 = vsub.f32 %v81_v32, %v227_v59 }
  0x59   :  { %8059 = vst [vmem:[#allocation140_spill] sm:$0xff] %v5563_v25  ;;  %8060 = vst [vmem:[#allocation141_spill] sm:$0xff] %v5565_v31  ;;  %v2136_v31 = vld [vmem:[#allocation3 + $0x408] sm:$0xff]  ;;  %v2138_v25 = vld [vmem:[#allocation3 + $0x418] sm:$0xff]  ;;  %v5597_v0 = vpack.c.bf16 %v231_v13, %v227_v59  ;;  %v5601_v18 = vsub.f32 %v83_v63, %v231_v13  ;;  %4679 = vmatpush1.bf16.msra.mxu1 %v5589_v15  ;;  %v229_v47 = vand.u32 4294901760, %v80_v6 }
  0x5a   :  { %8061 = vst [vmem:[#allocation142_spill] sm:$0xff] %v5569_v5  ;;  %8062 = vst [vmem:[#allocation143_spill] sm:$0xff] %v5571_v8  ;;  %v2135_v8 = vld [vmem:[#allocation3 + $0x400] sm:$0xff]  ;;  %v5591_v5 = vsub.f32 %v2131_v29, %v2274_v45  ;;  %4199 = vmatpush1.bf16.msra.mxu0 %v5583_v9  ;;  %v2280_v37 = vand.u32 4294901760, %v2136_v31  ;;  %v2284_v29 = vand.u32 4294901760, %v2138_v25 }
  0x5b   :  { %8063 = vst [vmem:[#allocation144_spill] sm:$0xff] %v5573_v41  ;;  %8064 = vst [vmem:[#allocation145_spill] sm:$0xff] %v5577_v34  ;;  %v82_v41 = vld [vmem:[#allocation3 + $0x190] sm:$0xff]  ;;  %v5593_v34 = vsub.f32 %v2133_v46, %v2278_v52  ;;  %v2282_v35 = vand.u32 4294901760, %v2135_v8  ;;  %4201 = vmatprep.subr.bf16.mxu0 %v5597_v0  ;;  %v2286_v52 = vand.u32 4294901760, %v2137_v14  ;;  %v5613_v32 = vsub.f32 %v80_v6, %v229_v47 }
  0x5c   :  { %8065 = vst [vmem:[#allocation146_spill] sm:$0xff] %v5579_v17  ;;  %8066 = vst [vmem:[#allocation147_spill] sm:$0xff] %v5581_v50  ;;  %v233_v46 = vand.u32 4294901760, %v82_v41  ;;  %v5605_v45 = vsub.f32 %v2136_v31, %v2280_v37  ;;  %v235_v17 = vand.u32 4294901760, %v85_v4  ;;  %v5607_v59 = vpack.c.bf16 %v2284_v29, %v2280_v37  ;;  %v89_v37 = vld [vmem:[#allocation3 + $0x1c8] sm:$0xff]  ;;  %v91_v50 = vld [vmem:[#allocation3 + $0x1d8] sm:$0xff] }
  0x5d   :  { %8067 = vst [vmem:[#allocation148_spill] sm:$0xff] %v5583_v9  ;;  %8068 = vst [vmem:[#allocation149_spill] sm:$0xff] %v5585_v48  ;;  %v239_v9 = vand.u32 4294901760, %v87_v60  ;;  %v5609_v63 = vsub.f32 %v2138_v25, %v2284_v29  ;;  %v5617_v31 = vpack.c.bf16 %v2286_v52, %v2282_v35  ;;  %v2141_v48 = vld [vmem:[#allocation3 + $0x430] sm:$0xff] }
  0x5e   :  { %8069 = vst [vmem:[#allocation150_spill] sm:$0xff] %v5587_v27  ;;  %8070 = vst [vmem:[#allocation151_spill] sm:$0xff] %v5589_v15  ;;  %v5611_v13 = vpack.c.bf16 %v233_v46, %v229_v47  ;;  %v84_v15 = vld [vmem:[#allocation3 + $0x1a0] sm:$0xff]  ;;  %v5615_v27 = vsub.f32 %v82_v41, %v233_v46  ;;  %4681 = vmatprep.subr.bf16.mxu1 %v5607_v59  ;;  %v5627_v6 = vsub.f32 %v85_v4, %v235_v17 }
  0x5f   :  { %8071 = vst [vmem:[#allocation152_spill] sm:$0xff] %v5591_v5  ;;  %8072 = vst [vmem:[#allocation153_spill] sm:$0xff] %v5593_v34  ;;  %v2140_v34 = vld [vmem:[#allocation3 + $0x428] sm:$0xff]  ;;  %v2142_v5 = vld [vmem:[#allocation3 + $0x438] sm:$0xff]  ;;  %v5625_v25 = vpack.c.bf16 %v239_v9, %v235_v17  ;;  %v5629_v29 = vsub.f32 %v87_v60, %v239_v9  ;;  %4683 = vmatpush1.bf16.msra.mxu1 %v5617_v31  ;;  %v237_v47 = vand.u32 4294901760, %v84_v15 }
  0x60   :  { %8073 = vst [vmem:[#allocation154_spill] sm:$0xff] %v5597_v0  ;;  %8074 = vst [vmem:[#allocation155_spill] sm:$0xff] %v5599_v57  ;;  %v2139_v57 = vld [vmem:[#allocation3 + $0x420] sm:$0xff]  ;;  %v5619_v0 = vsub.f32 %v2135_v8, %v2282_v35  ;;  %4203 = vmatpush1.bf16.msra.mxu0 %v5611_v13  ;;  %v2288_v41 = vand.u32 4294901760, %v2140_v34  ;;  %v2292_v8 = vand.u32 4294901760, %v2142_v5 }
  0x61   :  { %8075 = vst [vmem:[#allocation156_spill] sm:$0xff] %v5601_v18  ;;  %8076 = vst [vmem:[#allocation157_spill] sm:$0xff] %v5605_v45  ;;  %v86_v18 = vld [vmem:[#allocation3 + $0x1b0] sm:$0xff]  ;;  %v5621_v45 = vsub.f32 %v2137_v14, %v2286_v52  ;;  %v2290_v46 = vand.u32 4294901760, %v2139_v57  ;;  %4205 = vmatprep.subr.bf16.mxu0 %v5625_v25  ;;  %v2294_v52 = vand.u32 4294901760, %v2141_v48  ;;  %v5641_v4 = vsub.f32 %v84_v15, %v237_v47 }
  0x62   :  { %8077 = vst [vmem:[#allocation158_spill] sm:$0xff] %v5607_v59  ;;  %8078 = vst [vmem:[#allocation159_spill] sm:$0xff] %v5609_v63  ;;  %v241_v14 = vand.u32 4294901760, %v86_v18  ;;  %v5633_v35 = vsub.f32 %v2140_v34, %v2288_v41  ;;  %v243_v59 = vand.u32 4294901760, %v89_v37  ;;  %v5635_v17 = vpack.c.bf16 %v2292_v8, %v2288_v41  ;;  %v93_v41 = vld [vmem:[#allocation3 + $0x1e8] sm:$0xff]  ;;  %v95_v63 = vld [vmem:[#allocation3 + $0x1f8] sm:$0xff] }
  0x63   :  { %8079 = vst [vmem:[#allocation160_spill] sm:$0xff] %v5611_v13  ;;  %8080 = vst [vmem:[#allocation161_spill] sm:$0xff] %v5613_v32  ;;  %v247_v13 = vand.u32 4294901760, %v91_v50  ;;  %v5637_v60 = vsub.f32 %v2142_v5, %v2292_v8  ;;  %v5645_v34 = vpack.c.bf16 %v2294_v52, %v2290_v46  ;;  %v2145_v32 = vld [vmem:[#allocation3 + $0x450] sm:$0xff] }
  0x64   :  { %8081 = vst [vmem:[#allocation162_spill] sm:$0xff] %v5615_v27  ;;  %8082 = vst [vmem:[#allocation163_spill] sm:$0xff] %v5617_v31  ;;  %v5639_v9 = vpack.c.bf16 %v241_v14, %v237_v47  ;;  %v88_v31 = vld [vmem:[#allocation3 + $0x1c0] sm:$0xff]  ;;  %v5643_v27 = vsub.f32 %v86_v18, %v241_v14  ;;  %4685 = vmatprep.subr.bf16.mxu1 %v5635_v17  ;;  %v5655_v15 = vsub.f32 %v89_v37, %v243_v59 }
  0x65   :  { %8083 = vst [vmem:[#allocation164_spill] sm:$0xff] %v5619_v0  ;;  %8084 = vst [vmem:[#allocation165_spill] sm:$0xff] %v5621_v45  ;;  %v2144_v45 = vld [vmem:[#allocation3 + $0x448] sm:$0xff]  ;;  %v2146_v0 = vld [vmem:[#allocation3 + $0x458] sm:$0xff]  ;;  %v5653_v5 = vpack.c.bf16 %v247_v13, %v243_v59  ;;  %v5657_v8 = vsub.f32 %v91_v50, %v247_v13  ;;  %4687 = vmatpush1.bf16.msra.mxu1 %v5645_v34  ;;  %v245_v47 = vand.u32 4294901760, %v88_v31 }
  0x66   :  { %8085 = vst [vmem:[#allocation166_spill] sm:$0xff] %v5625_v25  ;;  %8086 = vst [vmem:[#allocation167_spill] sm:$0xff] %v5627_v6  ;;  %v2143_v6 = vld [vmem:[#allocation3 + $0x440] sm:$0xff]  ;;  %v5647_v25 = vsub.f32 %v2139_v57, %v2290_v46  ;;  %4207 = vmatpush1.bf16.msra.mxu0 %v5639_v9  ;;  %v2296_v18 = vand.u32 4294901760, %v2144_v45  ;;  %v2300_v57 = vand.u32 4294901760, %v2146_v0 }
  0x67   :  { %8087 = vst [vmem:[#allocation168_spill] sm:$0xff] %v5629_v29  ;;  %8088 = vst [vmem:[#allocation169_spill] sm:$0xff] %v5633_v35  ;;  %v90_v29 = vld [vmem:[#allocation3 + $0x1d0] sm:$0xff]  ;;  %v5649_v35 = vsub.f32 %v2141_v48, %v2294_v52  ;;  %v2298_v14 = vand.u32 4294901760, %v2143_v6  ;;  %4209 = vmatprep.subr.bf16.mxu0 %v5653_v5  ;;  %v2302_v52 = vand.u32 4294901760, %v2145_v32  ;;  %v5669_v37 = vsub.f32 %v88_v31, %v245_v47 }
  0x68   :  { %8089 = vst [vmem:[#allocation170_spill] sm:$0xff] %v5635_v17  ;;  %8090 = vst [vmem:[#allocation171_spill] sm:$0xff] %v5637_v60  ;;  %v249_v48 = vand.u32 4294901760, %v90_v29  ;;  %v5661_v46 = vsub.f32 %v2144_v45, %v2296_v18  ;;  %v251_v17 = vand.u32 4294901760, %v93_v41  ;;  %v5663_v59 = vpack.c.bf16 %v2300_v57, %v2296_v18 }
  0x69   :  { %8091 = vst [vmem:[#allocation172_spill] sm:$0xff] %v5639_v9  ;;  %8092 = vst [vmem:[#allocation173_spill] sm:$0xff] %v5641_v4  ;;  %v255_v9 = vand.u32 4294901760, %v95_v63  ;;  %v5665_v50 = vsub.f32 %v2146_v0, %v2300_v57  ;;  %v5673_v45 = vpack.c.bf16 %v2302_v52, %v2298_v14  ;;  %v2149_v4 = vld [vmem:[#allocation3 + $0x470] sm:$0xff]  ;;  %v31_v0 = vld [vmem:[%s7356_s1] sm:$0x7] }
  0x6a   :  { %8093 = vst [vmem:[#allocation174_spill] sm:$0xff] %v5643_v27  ;;  %8094 = vst [vmem:[#allocation175_spill] sm:$0xff] %v5645_v34  ;;  %v5667_v13 = vpack.c.bf16 %v249_v48, %v245_v47  ;;  %v92_v34 = vld [vmem:[#allocation3 + $0x1e0] sm:$0xff]  ;;  %v5671_v27 = vsub.f32 %v90_v29, %v249_v48  ;;  %4689 = vmatprep.subr.bf16.mxu1 %v5663_v59  ;;  %v5686_v18 = vsub.f32 %v93_v41, %v251_v17 }
  0x6b   :  { %8095 = vst [vmem:[#allocation176_spill] sm:$0xff] %v5647_v25  ;;  %8096 = vst [vmem:[#allocation177_spill] sm:$0xff] %v5649_v35  ;;  %v2148_v35 = vld [vmem:[#allocation3 + $0x468] sm:$0xff]  ;;  %v2150_v25 = vld [vmem:[#allocation3 + $0x478] sm:$0xff]  ;;  %v5684_v31 = vpack.c.bf16 %v255_v9, %v251_v17  ;;  %v5688_v29 = vsub.f32 %v95_v63, %v255_v9  ;;  %4691 = vmatpush1.bf16.msra.mxu1 %v5673_v45  ;;  %v116_v17 = vsub.s32 0, %v5259_v1 }
  0x6c   :  { %8097 = vst [vmem:[#allocation178_spill] sm:$0xff] %v5653_v5  ;;  %8098 = vst [vmem:[#allocation179_spill] sm:$0xff] %v5655_v15  ;;  %v2147_v15 = vld [vmem:[#allocation3 + $0x460] sm:$0xff]  ;;  %v5675_v5 = vsub.f32 %v2143_v6, %v2298_v14  ;;  %4211 = vmatpush1.bf16.msra.mxu0 %v5667_v13  ;;  %v2304_v57 = vand.u32 4294901760, %v2148_v35  ;;  %v253_v6 = vand.u32 4294901760, %v92_v34 }
  0x6d   :  { %8099 = vst [vmem:[#allocation180_spill] sm:$0xff] %v5657_v8  ;;  %8100 = vst [vmem:[#allocation181_spill] sm:$0xff] %v5661_v46  ;;  %v94_v8 = vld [vmem:[#allocation3 + $0x1f0] sm:$0xff]  ;;  %v5677_v46 = vsub.f32 %v2145_v32, %v2302_v52  ;;  %v2308_v32 = vand.u32 4294901760, %v2150_v25  ;;  %v2306_v48 = vand.u32 4294901760, %v2147_v15  ;;  %4213 = vmatprep.subr.bf16.mxu0 %v5684_v31  ;;  %v2310_v52 = vand.u32 4294901760, %v2149_v4 }
  0x6e   :  { %8101 = vst [vmem:[#allocation182_spill] sm:$0xff] %v5663_v59  ;;  %8102 = vst [vmem:[#allocation183_spill] sm:$0xff] %v5665_v50  ;;  %v257_v47 = vand.u32 4294901760, %v94_v8  ;;  %v5692_v14 = vsub.f32 %v2148_v35, %v2304_v57  ;;  %v2085_v63 = vld [vmem:[%s7356_s1] sm:$0x7] }
  0x6f   :  { %8103 = vst [vmem:[#allocation184_spill] sm:$0xff] %v5667_v13  ;;  %8104 = vst [vmem:[#allocation185_spill] sm:$0xff] %v5669_v37  ;;  %v8113_v13 = vsub.s32 1, %v5259_v1  ;;  %v5700_v9 = vpack.c.bf16 %v2308_v32, %v2304_v57  ;;  %v5702_v41 = vsub.f32 %v2150_v25, %v2308_v32  ;;  %v7569_v25 = vand.u32 4294901760, %v5264_v19 }
  0x70   :  { %8105 = vst [vmem:[#allocation186_spill] sm:$0xff] %v5671_v27  ;;  %8106 = vst [vmem:[#allocation187_spill] sm:$0xff] %v5673_v45  ;;  %v5704_v45 = vpack.c.bf16 %v257_v47, %v253_v6  ;;  %v5708_v35 = vsub.f32 %v94_v8, %v257_v47  ;;  %v7574_v32 = vand.u32 4294901760, %v5266_v20 }
  0x71   :  { %8107 = vst [vmem:[#allocation188_spill] sm:$0xff] %v5675_v5  ;;  %8108 = vst [vmem:[#allocation189_spill] sm:$0xff] %v5677_v46  ;;  %v121_v59 = vrot.slane %v31_v0, %v8113_v13  ;;  %v5714_v13 = vsub.f32 %v2149_v4, %v2310_v52  ;;  %4693 = vmatprep.subr.bf16.mxu1 %v5700_v9  ;;  %v7580_v4 = vand.u32 4294901760, %v5272_v26 }
  0x72   :  { %8109 = vst [vmem:[#allocation190_spill] sm:$0xff] %v5684_v31  ;;  %8110 = vst [vmem:[#allocation191_spill] sm:$0xff] %v5686_v18  ;;  %v5710_v31 = vpack.c.bf16 %v2310_v52, %v2306_v48  ;;  %4215 = vmatpush1.bf16.msra.mxu0 %v5704_v45  ;;  %v291_v52 = vsub.f32 %v5266_v20, %v7574_v32 }
  0x73   :  { %8111 = vst [vmem:[#allocation192_spill] sm:$0xff] %v5688_v29  ;;  %8112 = vst [vmem:[#allocation193_spill] sm:$0xff] %v5692_v14  ;;  %v5706_v29 = vsub.f32 %v92_v34, %v253_v6  ;;  %v5712_v14 = vsub.f32 %v2147_v15, %v2306_v48  ;;  %v5718_v57 = vand.u32 4294901760, %v121_v59  ;;  %v8123_v34 = vsub.s32 1, %v5259_v1 }
  0x74   :  { %8114 = vst [vmem:[#allocation194_spill] sm:$0xff] %v5700_v9  ;;  %8115 = vst [vmem:[#allocation195_spill] sm:$0xff] %v5702_v41  ;;  %4695 = vmatpush1.bf16.msra.mxu1 %v5710_v31  ;;  %v7581_v15 = vand.u32 4294901760, %v5268_v21  ;;  %v117_v6 = vrot.slane %v31_v0, %v116_v17  ;;  %v279_v48 = vsub.f32 %v5264_v19, %v7569_v25  ;;  %v292_v9 = vand.u32 4294901760, %v291_v52 }
  0x75   :  { %8116 = vst [vmem:[#allocation196_spill] sm:$0xff] %v5704_v45  ;;  %8117 = vst [vmem:[#allocation197_spill] sm:$0xff] %v5706_v29  ;;  %v2175_v8 = vrot.slane %v2085_v63, %v8123_v34  ;;  %v5728_v47 = vsub.f32 %v121_v59, %v5718_v57  ;;  %v2344_v0 = vsub.f32 %v5272_v26, %v7580_v4  ;;  %v7588_v52 = vand.u32 4294901760, %v5279_v30 }
  0x76   :  { %8118 = vst [vmem:[#allocation198_spill] sm:$0xff] %v5708_v35  ;;  %8119 = vst [vmem:[#allocation199_spill] sm:$0xff] %v5710_v31  ;;  %v2332_v34 = vsub.f32 %v5268_v21, %v7581_v15  ;;  %v5744_v59 = vand.u32 4294901760, %v117_v6  ;;  %v7586_v31 = vand.u32 4294901760, %v5276_v28  ;;  %v280_v45 = vand.u32 4294901760, %v279_v48 }
  0x77   :  { %8120 = vst [vmem:[#allocation200_spill] sm:$0xff] %v5712_v14  ;;  %8121 = vst [vmem:[#allocation201_spill] sm:$0xff] %v5714_v13  ;;  %v5736_v1 = vand.u32 4294901760, %v2175_v8  ;;  %v7587_v25 = vand.u32 4294901760, %v5728_v47  ;;  %v2345_v19 = vand.u32 4294901760, %v2344_v0  ;;  %v2171_v21 = vrot.slane %v2085_v63, %v116_v17 }
  0x78   :  { %8122 = vst [vmem:[#allocation202_spill] sm:$0xff] %v5718_v57  ;;  %8124 = vst [vmem:[#allocation203_spill] sm:$0xff] %v5728_v47  ;;  %v2333_v20 = vand.u32 4294901760, %v2332_v34  ;;  %v5752_v13 = vsub.f32 %v117_v6, %v5744_v59  ;;  %v285_v4 = vsub.f32 %v5276_v28, %v7586_v31  ;;  %v4216_v26 = vpack.c.bf16 %v292_v9, %v280_v45 }
  0x79   :  { %8125 = vst [vmem:[#allocation204_spill] sm:$0xff] %v5736_v1  ;;  %8126 = vst [vmem:[#allocation205_spill] sm:$0xff] %v5744_v59  ;;  %v5749_v32 = vsub.f32 %v2175_v8, %v5736_v1  ;;  %v262_v15 = vsub.f32 %v5728_v47, %v7587_v25  ;;  %v297_v25 = vsub.f32 %v5279_v30, %v7588_v52  ;;  %v7590_v45 = vand.u32 4294901760, %v5285_v42  ;;  %v8139_v47 = vld [vmem:[#allocation72_spill] sm:$0xff] }
  0x7a   :  { %8128 = vst [vmem:[#allocation207_spill] sm:$0xff] %v5752_v13  ;;  %v4696_v8 = vpack.c.bf16 %v2345_v19, %v2333_v20  ;;  %v7589_v34 = vand.u32 4294901760, %v5752_v13  ;;  %v286_v0 = vand.u32 4294901760, %v285_v4  ;;  %4217 = vmatprep.subr.bf16.mxu0 %v4216_v26  ;;  %v5773_v20 = vand.u32 4294901760, %v2171_v21 }
  0x7b   :  { %8127 = vst [vmem:[#allocation206_spill] sm:$0xff] %v5749_v32  ;;  %v7591_v48 = vand.u32 4294901760, %v5749_v32  ;;  %v263_v6 = vand.u32 4294901760, %v262_v15  ;;  %v7594_v63 = vand.u32 4294901760, %v5287_v43  ;;  %v7599_v26 = vand.u32 4294901760, %v5289_v44 }
  0x7c   :  { %4697 = vmatprep.subr.bf16.mxu1 %v4696_v8  ;;  %v268_v19 = vsub.f32 %v5752_v13, %v7589_v34  ;;  %8129 = vst [vmem:[#allocation208_spill] sm:$0xff] %v5773_v20  ;;  %v298_v9 = vand.u32 4294901760, %v297_v25  ;;  %v2338_v15 = vsub.f32 %v5285_v42, %v7590_v45  ;;  %v7598_v4 = vand.u32 4294901760, %v5293_v49 }
  0x7d   :  { %v2315_v31 = vsub.f32 %v5749_v32, %v7591_v48  ;;  %264 = vmatprep.mubr.f32.mxu0 %v263_v6  ;;  %v5782_v52 = vsub.f32 %v2171_v21, %v5773_v20  ;;  %v2350_v34 = vsub.f32 %v5287_v43, %v7594_v63  ;;  %v303_v6 = vsub.f32 %v5289_v44, %v7599_v26 }
  0x7e   :  { %v269_v8 = vand.u32 4294901760, %v268_v19  ;;  %v2339_v25 = vand.u32 4294901760, %v2338_v15  ;;  %v315_v45 = vsub.f32 %v5293_v49, %v7598_v4  ;;  %v7597_v19 = vand.u32 4294901760, %v5297_v51 }
  0x7f   :  { %v2316_v17 = vand.u32 4294901760, %v2315_v31  ;;  %8130 = vst [vmem:[#allocation209_spill] sm:$0xff] %v5782_v52  ;;  %v4218_v31 = vpack.c.bf16 %v298_v9, %v286_v0  ;;  %v7602_v21 = vand.u32 4294901760, %v5782_v52  ;;  %v2351_v48 = vand.u32 4294901760, %v2350_v34 }
  0x80   :  { %270 = vmatmul.mubr.f32.vlgmr.msra.gmra.mrb[0].mxu0 %v269_v8  ;;  %v304_v13 = vand.u32 4294901760, %v303_v6  ;;  %v7604_v63 = vand.u32 4294901760, %v5300_v53  ;;  %v316_v32 = vand.u32 4294901760, %v315_v45  ;;  %v2356_v0 = vsub.f32 %v5297_v51, %v7597_v19 }
  0x81   :  { %2317 = vmatprep.mubr.f32.mxu1 %v2316_v17  ;;  %4219 = vmatpush1.bf16.msra.mxu0 %v4218_v31  ;;  %v7603_v17 = vand.u32 4294901760, %v5302_v55  ;;  %v7612_v9 = vand.u32 4294901760, %v5308_v2  ;;  %v2321_v15 = vsub.f32 %v5782_v52, %v7602_v21  ;;  %v4698_v34 = vpack.c.bf16 %v2351_v48, %v2339_v25 }
  0x82   :  { %661 = vmatprep.mubr.f32.mxu0 %v5718_v57  ;;  %v2368_v8 = vsub.f32 %v5300_v53, %v7604_v63  ;;  %v7605_v45 = vand.u32 4294901760, %v5310_v3  ;;  %v4220_v6 = vpack.c.bf16 %v316_v32, %v304_v13  ;;  %v2357_v31 = vand.u32 4294901760, %v2356_v0 }
  0x83   :  { %v309_v19 = vsub.f32 %v5302_v55, %v7603_v17  ;;  %v321_v4 = vsub.f32 %v5308_v2, %v7612_v9  ;;  %v2322_v26 = vand.u32 4294901760, %v2321_v15  ;;  %v7606_v25 = vand.u32 4294901760, %v5314_v10 }
  0x84   :  { %v2369_v57 = vand.u32 4294901760, %v2368_v8  ;;  %v2362_v48 = vsub.f32 %v5310_v3, %v7605_v45  ;;  %4221 = vmatprep.subr.bf16.mxu0 %v4220_v6  ;;  %v7609_v32 = vand.u32 4294901760, %v5318_v12  ;;  %v7607_v0 = vand.u32 4294901760, %v5321_v16 }
  0x85   :  { %v310_v21 = vand.u32 4294901760, %v309_v19  ;;  %v322_v13 = vand.u32 4294901760, %v321_v4  ;;  %2323 = vmatmul.mubr.f32.vlgmr.msra.gmra.mrb[0].mxu1 %v2322_v26  ;;  %v2374_v15 = vsub.f32 %v5314_v10, %v7606_v25  ;;  %v7608_v8 = vand.u32 4294901760, %v5325_v22 }
  0x86   :  { %v4700_v17 = vpack.c.bf16 %v2369_v57, %v2357_v31  ;;  %v2363_v63 = vand.u32 4294901760, %v2362_v48  ;;  %4699 = vmatpush1.bf16.msra.mxu1 %v4698_v34  ;;  %v327_v19 = vsub.f32 %v5318_v12, %v7609_v32  ;;  %v339_v4 = vsub.f32 %v5321_v16, %v7607_v0  ;;  %2714 = vmatprep.mubr.f32.mxu1 %v5736_v1 }
  0x87   :  { %v4222_v45 = vpack.c.bf16 %v322_v13, %v310_v21  ;;  %v7610_v26 = vand.u32 4294901760, %v5327_v23  ;;  %v2375_v57 = vand.u32 4294901760, %v2374_v15  ;;  %v2380_v6 = vsub.f32 %v5325_v22, %v7608_v8 }
  0x88   :  { %4701 = vmatprep.subr.bf16.mxu1 %v4700_v17  ;;  %v7611_v21 = vand.u32 4294901760, %v5334_v39  ;;  %v7619_v34 = vand.u32 4294901760, %v5336_v40  ;;  %v328_v31 = vand.u32 4294901760, %v327_v19  ;;  %v340_v48 = vand.u32 4294901760, %v339_v4 }
  0x89   :  { %4223 = vmatpush1.bf16.msra.mxu0 %v4222_v45  ;;  %v2392_v13 = vsub.f32 %v5327_v23, %v7610_v26  ;;  %v7614_v25 = vand.u32 4294901760, %v5340_v54  ;;  %v4702_v0 = vpack.c.bf16 %v2375_v57, %v2363_v63  ;;  %v2381_v17 = vand.u32 4294901760, %v2380_v6 }
  0x8a   :  { %v333_v15 = vsub.f32 %v5334_v39, %v7611_v21  ;;  %v345_v8 = vsub.f32 %v5336_v40, %v7619_v34  ;;  %v4224_v32 = vpack.c.bf16 %v340_v48, %v328_v31  ;;  %v7613_v4 = vand.u32 4294901760, %v5342_v56 }
  0x8b   :  { %v2393_v45 = vand.u32 4294901760, %v2392_v13  ;;  %v2386_v19 = vsub.f32 %v5340_v54, %v7614_v25  ;;  %4703 = vmatpush1.bf16.msra.mxu1 %v4702_v0  ;;  %v7617_v57 = vand.u32 4294901760, %v5346_v58  ;;  %v7615_v6 = vand.u32 4294901760, %v5350_v61 }
  0x8c   :  { %v334_v26 = vand.u32 4294901760, %v333_v15  ;;  %v346_v63 = vand.u32 4294901760, %v345_v8  ;;  %4225 = vmatprep.subr.bf16.mxu0 %v4224_v32  ;;  %v2398_v31 = vsub.f32 %v5342_v56, %v7613_v4  ;;  %v7616_v48 = vand.u32 4294901760, %v5354_v24 }
  0x8d   :  { %v4704_v21 = vpack.c.bf16 %v2393_v45, %v2381_v17  ;;  %v2387_v9 = vand.u32 4294901760, %v2386_v19  ;;  %v351_v0 = vsub.f32 %v5346_v58, %v7617_v57  ;;  %v363_v8 = vsub.f32 %v5350_v61, %v7615_v6 }
  0x8e   :  { %v4226_v13 = vpack.c.bf16 %v346_v63, %v334_v26  ;;  %v7618_v15 = vand.u32 4294901760, %v5357_v7  ;;  %v2399_v32 = vand.u32 4294901760, %v2398_v31  ;;  %v2404_v17 = vsub.f32 %v5354_v24, %v7616_v48 }
  0x8f   :  { %4705 = vmatprep.subr.bf16.mxu1 %v4704_v21  ;;  %v7620_v45 = vand.u32 4294901760, %v5360_v33  ;;  %v7623_v26 = vand.u32 4294901760, %v5364_v38  ;;  %v352_v19 = vand.u32 4294901760, %v351_v0  ;;  %v364_v63 = vand.u32 4294901760, %v363_v8 }
  0x90   :  { %4227 = vmatpush1.bf16.msra.mxu0 %v4226_v13  ;;  %v2416_v4 = vsub.f32 %v5357_v7, %v7618_v15  ;;  %v7624_v25 = vand.u32 4294901760, %v5368_v36  ;;  %v4706_v6 = vpack.c.bf16 %v2399_v32, %v2387_v9  ;;  %v2405_v21 = vand.u32 4294901760, %v2404_v17  ;;  %v8131_v17 = vld [vmem:[#allocation60_spill] sm:$0xff] }
  0x91   :  { %v357_v31 = vsub.f32 %v5360_v33, %v7620_v45  ;;  %v369_v48 = vsub.f32 %v5364_v38, %v7623_v26  ;;  %v4228_v57 = vpack.c.bf16 %v364_v63, %v352_v19  ;;  %v7625_v8 = vand.u32 4294901760, %v5370_v62  ;;  %v8132_v19 = vld [vmem:[#allocation61_spill] sm:$0xff] }
  0x92   :  { %v2417_v13 = vand.u32 4294901760, %v2416_v4  ;;  %v2410_v0 = vsub.f32 %v5368_v36, %v7624_v25  ;;  %4707 = vmatpush1.bf16.msra.mxu1 %v4706_v6  ;;  %v7628_v32 = vand.u32 4294901760, %v5374_v11  ;;  %v7629_v34 = vand.u32 4294901760, %v8131_v17 }
  0x93   :  { %v358_v15 = vand.u32 4294901760, %v357_v31  ;;  %v370_v9 = vand.u32 4294901760, %v369_v48  ;;  %4229 = vmatprep.subr.bf16.mxu0 %v4228_v57  ;;  %v2422_v4 = vsub.f32 %v5370_v62, %v7625_v8  ;;  %v7634_v63 = vand.u32 4294901760, %v8132_v19  ;;  %v8133_v31 = vld [vmem:[#allocation63_spill] sm:$0xff]  ;;  %v8135_v8 = vld [vmem:[#allocation66_spill] sm:$0xff] }
  0x94   :  { %v4708_v45 = vpack.c.bf16 %v2417_v13, %v2405_v21  ;;  %v2411_v1 = vand.u32 4294901760, %v2410_v0  ;;  %v375_v6 = vsub.f32 %v5374_v11, %v7628_v32  ;;  %v387_v48 = vsub.f32 %v8131_v17, %v7629_v34  ;;  %v8134_v13 = vld [vmem:[#allocation65_spill] sm:$0xff]  ;;  %v8136_v34 = vld [vmem:[#allocation68_spill] sm:$0xff] }
  0x95   :  { %v4230_v26 = vpack.c.bf16 %v370_v9, %v358_v15  ;;  %v7636_v25 = vand.u32 4294901760, %v8133_v31  ;;  %v2423_v57 = vand.u32 4294901760, %v2422_v4  ;;  %v2428_v21 = vsub.f32 %v8132_v19, %v7634_v63 }
  0x96   :  { %4709 = vmatprep.subr.bf16.mxu1 %v4708_v45  ;;  %v7641_v0 = vand.u32 4294901760, %v8134_v13  ;;  %v7643_v15 = vand.u32 4294901760, %v8135_v8  ;;  %v376_v9 = vand.u32 4294901760, %v375_v6  ;;  %v388_v52 = vand.u32 4294901760, %v387_v48  ;;  %v8137_v48 = vld [vmem:[#allocation69_spill] sm:$0xff] }
  0x97   :  { %4231 = vmatpush1.bf16.msra.mxu0 %v4230_v26  ;;  %v2440_v32 = vsub.f32 %v8133_v31, %v7636_v25  ;;  %v7644_v62 = vand.u32 4294901760, %v8136_v34  ;;  %v4710_v36 = vpack.c.bf16 %v2423_v57, %v2411_v1  ;;  %v2429_v45 = vand.u32 4294901760, %v2428_v21  ;;  %v8138_v57 = vld [vmem:[#allocation71_spill] sm:$0xff] }
  0x98   :  { %v381_v4 = vsub.f32 %v8134_v13, %v7641_v0  ;;  %v393_v63 = vsub.f32 %v8135_v8, %v7643_v15  ;;  %v4232_v19 = vpack.c.bf16 %v388_v52, %v376_v9  ;;  %v7645_v25 = vand.u32 4294901760, %v8137_v48 }
  0x99   :  { %v2441_v26 = vand.u32 4294901760, %v2440_v32  ;;  %v2434_v6 = vsub.f32 %v8136_v34, %v7644_v62  ;;  %4711 = vmatpush1.bf16.msra.mxu1 %v4710_v36  ;;  %v7647_v21 = vand.u32 4294901760, %v8138_v57  ;;  %v7648_v17 = vand.u32 4294901760, %v8139_v47  ;;  %v8140_v32 = vld [vmem:[#allocation73_spill] sm:$0xff] }
  0x9a   :  { %v382_v31 = vand.u32 4294901760, %v381_v4  ;;  %v394_v1 = vand.u32 4294901760, %v393_v63  ;;  %4233 = vmatprep.subr.bf16.mxu0 %v4232_v19  ;;  %v2446_v52 = vsub.f32 %v8137_v48, %v7645_v25  ;;  %v7651_v9 = vand.u32 4294901760, %v8140_v32  ;;  %v8141_v4 = vld [vmem:[#allocation75_spill] sm:$0xff]  ;;  %v8143_v25 = vld [vmem:[#allocation78_spill] sm:$0xff] }
  0x9b   :  { %v4712_v0 = vpack.c.bf16 %v2441_v26, %v2429_v45  ;;  %v2435_v13 = vand.u32 4294901760, %v2434_v6  ;;  %v399_v36 = vsub.f32 %v8138_v57, %v7647_v21  ;;  %v411_v63 = vsub.f32 %v8139_v47, %v7648_v17  ;;  %v8142_v26 = vld [vmem:[#allocation77_spill] sm:$0xff]  ;;  %v8144_v17 = vld [vmem:[#allocation80_spill] sm:$0xff] }
  0x9c   :  { %v4234_v15 = vpack.c.bf16 %v394_v1, %v382_v31  ;;  %v7653_v62 = vand.u32 4294901760, %v8141_v4  ;;  %v2447_v19 = vand.u32 4294901760, %v2446_v52  ;;  %v2452_v45 = vsub.f32 %v8140_v32, %v7651_v9  ;;  %v8147_v57 = vld [vmem:[#allocation84_spill] sm:$0xff] }
  0x9d   :  { %4713 = vmatprep.subr.bf16.mxu1 %v4712_v0  ;;  %v7657_v6 = vand.u32 4294901760, %v8142_v26  ;;  %v7659_v31 = vand.u32 4294901760, %v8143_v25  ;;  %v400_v1 = vand.u32 4294901760, %v399_v36  ;;  %v412_v48 = vand.u32 4294901760, %v411_v63  ;;  %v8145_v63 = vld [vmem:[#allocation81_spill] sm:$0xff] }
  0x9e   :  { %4235 = vmatpush1.bf16.msra.mxu0 %v4234_v15  ;;  %v2464_v21 = vsub.f32 %v8141_v4, %v7653_v62  ;;  %v7660_v34 = vand.u32 4294901760, %v8144_v17  ;;  %v4714_v47 = vpack.c.bf16 %v2447_v19, %v2435_v13  ;;  %v2453_v0 = vand.u32 4294901760, %v2452_v45  ;;  %v8146_v19 = vld [vmem:[#allocation83_spill] sm:$0xff] }
  0x9f   :  { %v405_v52 = vsub.f32 %v8142_v26, %v7657_v6  ;;  %v417_v9 = vsub.f32 %v8143_v25, %v7659_v31  ;;  %v4236_v32 = vpack.c.bf16 %v412_v48, %v400_v1  ;;  %v7661_v62 = vand.u32 4294901760, %v8145_v63 }
  0xa0   :  { %v2465_v15 = vand.u32 4294901760, %v2464_v21  ;;  %v2458_v36 = vsub.f32 %v8144_v17, %v7660_v34  ;;  %4715 = vmatpush1.bf16.msra.mxu1 %v4714_v47  ;;  %v7663_v45 = vand.u32 4294901760, %v8146_v19  ;;  %v7664_v8 = vand.u32 4294901760, %v8147_v57  ;;  %v8148_v21 = vld [vmem:[#allocation85_spill] sm:$0xff] }
  0xa1   :  { %v406_v4 = vand.u32 4294901760, %v405_v52  ;;  %v418_v13 = vand.u32 4294901760, %v417_v9  ;;  %4237 = vmatprep.subr.bf16.mxu0 %v4236_v32  ;;  %v2470_v48 = vsub.f32 %v8145_v63, %v7661_v62  ;;  %v7667_v1 = vand.u32 4294901760, %v8148_v21  ;;  %v8149_v52 = vld [vmem:[#allocation87_spill] sm:$0xff]  ;;  %v8151_v62 = vld [vmem:[#allocation90_spill] sm:$0xff] }
  0xa2   :  { %v4716_v6 = vpack.c.bf16 %v2465_v15, %v2453_v0  ;;  %v2459_v26 = vand.u32 4294901760, %v2458_v36  ;;  %v423_v47 = vsub.f32 %v8146_v19, %v7663_v45  ;;  %v435_v9 = vsub.f32 %v8147_v57, %v7664_v8  ;;  %v8150_v15 = vld [vmem:[#allocation89_spill] sm:$0xff]  ;;  %v8152_v8 = vld [vmem:[#allocation92_spill] sm:$0xff] }
  0xa3   :  { %v4238_v31 = vpack.c.bf16 %v418_v13, %v406_v4  ;;  %v7669_v34 = vand.u32 4294901760, %v8149_v52  ;;  %v2471_v32 = vand.u32 4294901760, %v2470_v48  ;;  %v2476_v0 = vsub.f32 %v8148_v21, %v7667_v1  ;;  %v8155_v19 = vld [vmem:[#allocation96_spill] sm:$0xff] }
  0xa4   :  { %4717 = vmatprep.subr.bf16.mxu1 %v4716_v6  ;;  %v7673_v36 = vand.u32 4294901760, %v8150_v15  ;;  %v7675_v4 = vand.u32 4294901760, %v8151_v62  ;;  %v424_v13 = vand.u32 4294901760, %v423_v47  ;;  %v436_v63 = vand.u32 4294901760, %v435_v9  ;;  %v8153_v9 = vld [vmem:[#allocation93_spill] sm:$0xff] }
  0xa5   :  { %4239 = vmatpush1.bf16.msra.mxu0 %v4238_v31  ;;  %v2488_v45 = vsub.f32 %v8149_v52, %v7669_v34  ;;  %v7676_v17 = vand.u32 4294901760, %v8152_v8  ;;  %v4718_v57 = vpack.c.bf16 %v2471_v32, %v2459_v26  ;;  %v2477_v6 = vand.u32 4294901760, %v2476_v0  ;;  %v8154_v32 = vld [vmem:[#allocation95_spill] sm:$0xff] }
  0xa6   :  { %v429_v48 = vsub.f32 %v8150_v15, %v7673_v36  ;;  %v441_v1 = vsub.f32 %v8151_v62, %v7675_v4  ;;  %v4240_v21 = vpack.c.bf16 %v436_v63, %v424_v13  ;;  %v7677_v34 = vand.u32 4294901760, %v8153_v9 }
  0xa7   :  { %v2489_v31 = vand.u32 4294901760, %v2488_v45  ;;  %v2482_v47 = vsub.f32 %v8152_v8, %v7676_v17  ;;  %4719 = vmatpush1.bf16.msra.mxu1 %v4718_v57  ;;  %v7679_v0 = vand.u32 4294901760, %v8154_v32  ;;  %v7680_v25 = vand.u32 4294901760, %v8155_v19  ;;  %v8156_v45 = vld [vmem:[#allocation97_spill] sm:$0xff] }
  0xa8   :  { %v430_v52 = vand.u32 4294901760, %v429_v48  ;;  %v442_v26 = vand.u32 4294901760, %v441_v1  ;;  %4241 = vmatprep.subr.bf16.mxu0 %v4240_v21  ;;  %v2494_v63 = vsub.f32 %v8153_v9, %v7677_v34  ;;  %v7683_v13 = vand.u32 4294901760, %v8156_v45  ;;  %v8157_v48 = vld [vmem:[#allocation99_spill] sm:$0xff]  ;;  %v8159_v34 = vld [vmem:[#allocation102_spill] sm:$0xff] }
  0xa9   :  { %v4720_v36 = vpack.c.bf16 %v2489_v31, %v2477_v6  ;;  %v2483_v15 = vand.u32 4294901760, %v2482_v47  ;;  %v447_v57 = vsub.f32 %v8154_v32, %v7679_v0  ;;  %v459_v1 = vsub.f32 %v8155_v19, %v7680_v25  ;;  %v8158_v31 = vld [vmem:[#allocation101_spill] sm:$0xff]  ;;  %v8160_v25 = vld [vmem:[#allocation104_spill] sm:$0xff] }
  0xaa   :  { %v4242_v4 = vpack.c.bf16 %v442_v26, %v430_v52  ;;  %v7685_v17 = vand.u32 4294901760, %v8157_v48  ;;  %v2495_v21 = vand.u32 4294901760, %v2494_v63  ;;  %v2500_v6 = vsub.f32 %v8156_v45, %v7683_v13  ;;  %v8163_v32 = vld [vmem:[#allocation108_spill] sm:$0xff] }
  0xab   :  { %4721 = vmatprep.subr.bf16.mxu1 %v4720_v36  ;;  %v7689_v47 = vand.u32 4294901760, %v8158_v31  ;;  %v7691_v52 = vand.u32 4294901760, %v8159_v34  ;;  %v448_v26 = vand.u32 4294901760, %v447_v57  ;;  %v460_v9 = vand.u32 4294901760, %v459_v1  ;;  %v8161_v1 = vld [vmem:[#allocation105_spill] sm:$0xff] }
  0xac   :  { %4243 = vmatpush1.bf16.msra.mxu0 %v4242_v4  ;;  %v2512_v0 = vsub.f32 %v8157_v48, %v7685_v17  ;;  %v7692_v8 = vand.u32 4294901760, %v8160_v25  ;;  %v4722_v19 = vpack.c.bf16 %v2495_v21, %v2483_v15  ;;  %v2501_v36 = vand.u32 4294901760, %v2500_v6  ;;  %v8162_v21 = vld [vmem:[#allocation107_spill] sm:$0xff] }
  0xad   :  { %v453_v63 = vsub.f32 %v8158_v31, %v7689_v47  ;;  %v465_v13 = vsub.f32 %v8159_v34, %v7691_v52  ;;  %v4244_v45 = vpack.c.bf16 %v460_v9, %v448_v26  ;;  %v7693_v17 = vand.u32 4294901760, %v8161_v1 }
  0xae   :  { %v2513_v4 = vand.u32 4294901760, %v2512_v0  ;;  %v2506_v57 = vsub.f32 %v8160_v25, %v7692_v8  ;;  %4723 = vmatpush1.bf16.msra.mxu1 %v4722_v19  ;;  %v7695_v6 = vand.u32 4294901760, %v8162_v21  ;;  %v7696_v62 = vand.u32 4294901760, %v8163_v32  ;;  %v8164_v0 = vld [vmem:[#allocation109_spill] sm:$0xff] }
  0xaf   :  { %v454_v48 = vand.u32 4294901760, %v453_v63  ;;  %v466_v15 = vand.u32 4294901760, %v465_v13  ;;  %4245 = vmatprep.subr.bf16.mxu0 %v4244_v45  ;;  %v2518_v9 = vsub.f32 %v8161_v1, %v7693_v17  ;;  %v7699_v26 = vand.u32 4294901760, %v8164_v0  ;;  %v8165_v63 = vld [vmem:[#allocation111_spill] sm:$0xff]  ;;  %v8167_v17 = vld [vmem:[#allocation114_spill] sm:$0xff] }
  0xb0   :  { %v4724_v47 = vpack.c.bf16 %v2513_v4, %v2501_v36  ;;  %v2507_v31 = vand.u32 4294901760, %v2506_v57  ;;  %v471_v19 = vsub.f32 %v8162_v21, %v7695_v6  ;;  %v483_v13 = vsub.f32 %v8163_v32, %v7696_v62  ;;  %v8166_v4 = vld [vmem:[#allocation113_spill] sm:$0xff]  ;;  %v8168_v62 = vld [vmem:[#allocation116_spill] sm:$0xff] }
  0xb1   :  { %v4246_v52 = vpack.c.bf16 %v466_v15, %v454_v48  ;;  %v7701_v8 = vand.u32 4294901760, %v8165_v63  ;;  %v2519_v45 = vand.u32 4294901760, %v2518_v9  ;;  %v2524_v36 = vsub.f32 %v8164_v0, %v7699_v26  ;;  %v8171_v21 = vld [vmem:[#allocation120_spill] sm:$0xff] }
  0xb2   :  { %4725 = vmatprep.subr.bf16.mxu1 %v4724_v47  ;;  %v7705_v57 = vand.u32 4294901760, %v8166_v4  ;;  %v7707_v48 = vand.u32 4294901760, %v8167_v17  ;;  %v472_v15 = vand.u32 4294901760, %v471_v19  ;;  %v484_v1 = vand.u32 4294901760, %v483_v13  ;;  %v8169_v13 = vld [vmem:[#allocation117_spill] sm:$0xff] }
  0xb3   :  { %4247 = vmatpush1.bf16.msra.mxu0 %v4246_v52  ;;  %v2536_v6 = vsub.f32 %v8165_v63, %v7701_v8  ;;  %v7708_v25 = vand.u32 4294901760, %v8168_v62  ;;  %v4726_v32 = vpack.c.bf16 %v2519_v45, %v2507_v31  ;;  %v2525_v47 = vand.u32 4294901760, %v2524_v36  ;;  %v8170_v45 = vld [vmem:[#allocation119_spill] sm:$0xff] }
  0xb4   :  { %v477_v9 = vsub.f32 %v8166_v4, %v7705_v57  ;;  %v489_v26 = vsub.f32 %v8167_v17, %v7707_v48  ;;  %v4248_v0 = vpack.c.bf16 %v484_v1, %v472_v15  ;;  %v7709_v8 = vand.u32 4294901760, %v8169_v13 }
  0xb5   :  { %v2537_v52 = vand.u32 4294901760, %v2536_v6  ;;  %v2530_v19 = vsub.f32 %v8168_v62, %v7708_v25  ;;  %4727 = vmatpush1.bf16.msra.mxu1 %v4726_v32  ;;  %v7711_v36 = vand.u32 4294901760, %v8170_v45  ;;  %v7712_v34 = vand.u32 4294901760, %v8171_v21  ;;  %v8172_v6 = vld [vmem:[#allocation121_spill] sm:$0xff]  ;;  %v8179_v62 = vld [vmem:[#allocation132_spill] sm:$0xff] }
  0xb6   :  { %v478_v63 = vand.u32 4294901760, %v477_v9  ;;  %v490_v31 = vand.u32 4294901760, %v489_v26  ;;  %4249 = vmatprep.subr.bf16.mxu0 %v4248_v0  ;;  %v2542_v1 = vsub.f32 %v8169_v13, %v7709_v8  ;;  %v7715_v15 = vand.u32 4294901760, %v8172_v6  ;;  %v8173_v9 = vld [vmem:[#allocation123_spill] sm:$0xff]  ;;  %v8175_v8 = vld [vmem:[#allocation126_spill] sm:$0xff] }
  0xb7   :  { %v4728_v57 = vpack.c.bf16 %v2537_v52, %v2525_v47  ;;  %v2531_v4 = vand.u32 4294901760, %v2530_v19  ;;  %v495_v32 = vsub.f32 %v8170_v45, %v7711_v36  ;;  %v507_v26 = vsub.f32 %v8171_v21, %v7712_v34  ;;  %v8174_v52 = vld [vmem:[#allocation125_spill] sm:$0xff]  ;;  %v8176_v34 = vld [vmem:[#allocation128_spill] sm:$0xff] }
  0xb8   :  { %v4250_v48 = vpack.c.bf16 %v490_v31, %v478_v63  ;;  %v7717_v25 = vand.u32 4294901760, %v8173_v9  ;;  %v2543_v0 = vand.u32 4294901760, %v2542_v1  ;;  %v2548_v47 = vsub.f32 %v8172_v6, %v7715_v15 }
  0xb9   :  { %4729 = vmatprep.subr.bf16.mxu1 %v4728_v57  ;;  %v7721_v19 = vand.u32 4294901760, %v8174_v52  ;;  %v7723_v63 = vand.u32 4294901760, %v8175_v8  ;;  %v496_v31 = vand.u32 4294901760, %v495_v32  ;;  %v508_v13 = vand.u32 4294901760, %v507_v26  ;;  %v8177_v26 = vld [vmem:[#allocation129_spill] sm:$0xff] }
  0xba   :  { %4251 = vmatpush1.bf16.msra.mxu0 %v4250_v48  ;;  %v2560_v36 = vsub.f32 %v8173_v9, %v7717_v25  ;;  %v7724_v21 = vand.u32 4294901760, %v8176_v34  ;;  %v4730_v45 = vpack.c.bf16 %v2543_v0, %v2531_v4  ;;  %v2549_v57 = vand.u32 4294901760, %v2548_v47  ;;  %v8178_v0 = vld [vmem:[#allocation131_spill] sm:$0xff] }
  0xbb   :  { %v501_v1 = vsub.f32 %v8174_v52, %v7721_v19  ;;  %v513_v15 = vsub.f32 %v8175_v8, %v7723_v63  ;;  %v4252_v6 = vpack.c.bf16 %v508_v13, %v496_v31  ;;  %v7725_v25 = vand.u32 4294901760, %v8177_v26 }
  0xbc   :  { %v2561_v48 = vand.u32 4294901760, %v2560_v36  ;;  %v2554_v32 = vsub.f32 %v8176_v34, %v7724_v21  ;;  %4731 = vmatpush1.bf16.msra.mxu1 %v4730_v45  ;;  %v7727_v47 = vand.u32 4294901760, %v8178_v0  ;;  %v7728_v17 = vand.u32 4294901760, %v8179_v62  ;;  %v8180_v36 = vld [vmem:[#allocation133_spill] sm:$0xff]  ;;  %v8187_v34 = vld [vmem:[#allocation144_spill] sm:$0xff] }
  0xbd   :  { %v502_v9 = vand.u32 4294901760, %v501_v1  ;;  %v514_v4 = vand.u32 4294901760, %v513_v15  ;;  %4253 = vmatprep.subr.bf16.mxu0 %v4252_v6  ;;  %v2566_v13 = vsub.f32 %v8177_v26, %v7725_v25  ;;  %v7731_v31 = vand.u32 4294901760, %v8180_v36  ;;  %v8181_v1 = vld [vmem:[#allocation135_spill] sm:$0xff]  ;;  %v8183_v25 = vld [vmem:[#allocation138_spill] sm:$0xff] }
  0xbe   :  { %v4732_v19 = vpack.c.bf16 %v2561_v48, %v2549_v57  ;;  %v2555_v52 = vand.u32 4294901760, %v2554_v32  ;;  %v519_v45 = vsub.f32 %v8178_v0, %v7727_v47  ;;  %v531_v15 = vsub.f32 %v8179_v62, %v7728_v17  ;;  %v8182_v48 = vld [vmem:[#allocation137_spill] sm:$0xff]  ;;  %v8184_v17 = vld [vmem:[#allocation140_spill] sm:$0xff] }
  0xbf   :  { %v4254_v63 = vpack.c.bf16 %v514_v4, %v502_v9  ;;  %v7733_v21 = vand.u32 4294901760, %v8181_v1  ;;  %v2567_v6 = vand.u32 4294901760, %v2566_v13  ;;  %v2572_v57 = vsub.f32 %v8180_v36, %v7731_v31 }
  0xc0   :  { %4733 = vmatprep.subr.bf16.mxu1 %v4732_v19  ;;  %v7737_v32 = vand.u32 4294901760, %v8182_v48  ;;  %v7739_v9 = vand.u32 4294901760, %v8183_v25  ;;  %v520_v4 = vand.u32 4294901760, %v519_v45  ;;  %v532_v26 = vand.u32 4294901760, %v531_v15  ;;  %v8185_v15 = vld [vmem:[#allocation141_spill] sm:$0xff] }
  0xc1   :  { %4255 = vmatpush1.bf16.msra.mxu0 %v4254_v63  ;;  %v2584_v47 = vsub.f32 %v8181_v1, %v7733_v21  ;;  %v7740_v62 = vand.u32 4294901760, %v8184_v17  ;;  %v4734_v0 = vpack.c.bf16 %v2567_v6, %v2555_v52  ;;  %v2573_v19 = vand.u32 4294901760, %v2572_v57  ;;  %v8186_v6 = vld [vmem:[#allocation143_spill] sm:$0xff] }
  0xc2   :  { %v525_v13 = vsub.f32 %v8182_v48, %v7737_v32  ;;  %v537_v31 = vsub.f32 %v8183_v25, %v7739_v9  ;;  %v4256_v36 = vpack.c.bf16 %v532_v26, %v520_v4  ;;  %v7741_v21 = vand.u32 4294901760, %v8185_v15 }
  0xc3   :  { %v2585_v63 = vand.u32 4294901760, %v2584_v47  ;;  %v2578_v45 = vsub.f32 %v8184_v17, %v7740_v62  ;;  %4735 = vmatpush1.bf16.msra.mxu1 %v4734_v0  ;;  %v7743_v57 = vand.u32 4294901760, %v8186_v6  ;;  %v7744_v8 = vand.u32 4294901760, %v8187_v34  ;;  %v8188_v47 = vld [vmem:[#allocation145_spill] sm:$0xff]  ;;  %v8195_v17 = vld [vmem:[#allocation156_spill] sm:$0xff] }
  0xc4   :  { %v526_v1 = vand.u32 4294901760, %v525_v13  ;;  %v538_v52 = vand.u32 4294901760, %v537_v31  ;;  %4257 = vmatprep.subr.bf16.mxu0 %v4256_v36  ;;  %v2590_v26 = vsub.f32 %v8185_v15, %v7741_v21  ;;  %v7747_v4 = vand.u32 4294901760, %v8188_v47  ;;  %v8189_v13 = vld [vmem:[#allocation147_spill] sm:$0xff]  ;;  %v8191_v21 = vld [vmem:[#allocation150_spill] sm:$0xff] }
  0xc5   :  { %v4736_v32 = vpack.c.bf16 %v2585_v63, %v2573_v19  ;;  %v2579_v48 = vand.u32 4294901760, %v2578_v45  ;;  %v543_v0 = vsub.f32 %v8186_v6, %v7743_v57  ;;  %v555_v31 = vsub.f32 %v8187_v34, %v7744_v8  ;;  %v8190_v63 = vld [vmem:[#allocation149_spill] sm:$0xff]  ;;  %v8192_v8 = vld [vmem:[#allocation152_spill] sm:$0xff] }
  0xc6   :  { %v4258_v9 = vpack.c.bf16 %v538_v52, %v526_v1  ;;  %v7749_v62 = vand.u32 4294901760, %v8189_v13  ;;  %v2591_v36 = vand.u32 4294901760, %v2590_v26  ;;  %v2596_v19 = vsub.f32 %v8188_v47, %v7747_v4 }
  0xc7   :  { %4737 = vmatprep.subr.bf16.mxu1 %v4736_v32  ;;  %v7753_v45 = vand.u32 4294901760, %v8190_v63  ;;  %v7755_v1 = vand.u32 4294901760, %v8191_v21  ;;  %v544_v52 = vand.u32 4294901760, %v543_v0  ;;  %v556_v15 = vand.u32 4294901760, %v555_v31  ;;  %v8193_v31 = vld [vmem:[#allocation153_spill] sm:$0xff] }
  0xc8   :  { %4259 = vmatpush1.bf16.msra.mxu0 %v4258_v9  ;;  %v2608_v57 = vsub.f32 %v8189_v13, %v7749_v62  ;;  %v7756_v34 = vand.u32 4294901760, %v8192_v8  ;;  %v4738_v6 = vpack.c.bf16 %v2591_v36, %v2579_v48  ;;  %v2597_v32 = vand.u32 4294901760, %v2596_v19  ;;  %v8194_v36 = vld [vmem:[#allocation155_spill] sm:$0xff] }
  0xc9   :  { %v549_v26 = vsub.f32 %v8190_v63, %v7753_v45  ;;  %v561_v4 = vsub.f32 %v8191_v21, %v7755_v1  ;;  %v4260_v47 = vpack.c.bf16 %v556_v15, %v544_v52  ;;  %v7757_v62 = vand.u32 4294901760, %v8193_v31 }
  0xca   :  { %v2609_v9 = vand.u32 4294901760, %v2608_v57  ;;  %v2602_v0 = vsub.f32 %v8192_v8, %v7756_v34  ;;  %4739 = vmatpush1.bf16.msra.mxu1 %v4738_v6  ;;  %v7759_v19 = vand.u32 4294901760, %v8194_v36  ;;  %v7760_v25 = vand.u32 4294901760, %v8195_v17  ;;  %v8196_v57 = vld [vmem:[#allocation157_spill] sm:$0xff]  ;;  %v8203_v8 = vld [vmem:[#allocation168_spill] sm:$0xff] }
  0xcb   :  { %v550_v13 = vand.u32 4294901760, %v549_v26  ;;  %v562_v48 = vand.u32 4294901760, %v561_v4  ;;  %4261 = vmatprep.subr.bf16.mxu0 %v4260_v47  ;;  %v2614_v15 = vsub.f32 %v8193_v31, %v7757_v62  ;;  %v7763_v52 = vand.u32 4294901760, %v8196_v57  ;;  %v8197_v26 = vld [vmem:[#allocation159_spill] sm:$0xff]  ;;  %v8199_v62 = vld [vmem:[#allocation162_spill] sm:$0xff] }
  0xcc   :  { %v4740_v45 = vpack.c.bf16 %v2609_v9, %v2597_v32  ;;  %v2603_v63 = vand.u32 4294901760, %v2602_v0  ;;  %v567_v6 = vsub.f32 %v8194_v36, %v7759_v19  ;;  %v579_v4 = vsub.f32 %v8195_v17, %v7760_v25  ;;  %v8198_v9 = vld [vmem:[#allocation161_spill] sm:$0xff]  ;;  %v8200_v25 = vld [vmem:[#allocation164_spill] sm:$0xff] }
  0xcd   :  { %v4262_v1 = vpack.c.bf16 %v562_v48, %v550_v13  ;;  %v7765_v34 = vand.u32 4294901760, %v8197_v26  ;;  %v2615_v47 = vand.u32 4294901760, %v2614_v15  ;;  %v2620_v32 = vsub.f32 %v8196_v57, %v7763_v52 }
  0xce   :  { %4741 = vmatprep.subr.bf16.mxu1 %v4740_v45  ;;  %v7769_v0 = vand.u32 4294901760, %v8198_v9  ;;  %v7771_v13 = vand.u32 4294901760, %v8199_v62  ;;  %v568_v48 = vand.u32 4294901760, %v567_v6  ;;  %v580_v31 = vand.u32 4294901760, %v579_v4  ;;  %v8201_v4 = vld [vmem:[#allocation165_spill] sm:$0xff] }
  0xcf   :  { %4263 = vmatpush1.bf16.msra.mxu0 %v4262_v1  ;;  %v2632_v19 = vsub.f32 %v8197_v26, %v7765_v34  ;;  %v7773_v17 = vand.u32 4294901760, %v8200_v25  ;;  %v4742_v36 = vpack.c.bf16 %v2615_v47, %v2603_v63  ;;  %v2621_v45 = vand.u32 4294901760, %v2620_v32  ;;  %v8202_v47 = vld [vmem:[#allocation167_spill] sm:$0xff] }
  0xd0   :  { %v573_v15 = vsub.f32 %v8198_v9, %v7769_v0  ;;  %v585_v52 = vsub.f32 %v8199_v62, %v7771_v13  ;;  %v4264_v57 = vpack.c.bf16 %v580_v31, %v568_v48  ;;  %v7772_v34 = vand.u32 4294901760, %v8201_v4 }
  0xd1   :  { %v2633_v1 = vand.u32 4294901760, %v2632_v19  ;;  %v2626_v6 = vsub.f32 %v8200_v25, %v7773_v17  ;;  %4743 = vmatpush1.bf16.msra.mxu1 %v4742_v36  ;;  %v7774_v32 = vand.u32 4294901760, %v8202_v47  ;;  %v7775_v21 = vand.u32 4294901760, %v8203_v8  ;;  %v8204_v19 = vld [vmem:[#allocation169_spill] sm:$0xff] }
  0xd2   :  { %v574_v26 = vand.u32 4294901760, %v573_v15  ;;  %v586_v63 = vand.u32 4294901760, %v585_v52  ;;  %4265 = vmatprep.subr.bf16.mxu0 %v4264_v57  ;;  %v2638_v31 = vsub.f32 %v8201_v4, %v7772_v34  ;;  %v7778_v48 = vand.u32 4294901760, %v8204_v19  ;;  %v8206_v34 = vld [vmem:[#allocation174_spill] sm:$0xff]  ;;  %v8210_v4 = vld [vmem:[#allocation180_spill] sm:$0xff] }
  0xd3   :  { %v4744_v0 = vpack.c.bf16 %v2633_v1, %v2621_v45  ;;  %v2627_v9 = vand.u32 4294901760, %v2626_v6  ;;  %v591_v36 = vsub.f32 %v8202_v47, %v7774_v32  ;;  %v603_v52 = vsub.f32 %v8203_v8, %v7775_v21  ;;  %v8205_v1 = vld [vmem:[#allocation173_spill] sm:$0xff]  ;;  %v8207_v21 = vld [vmem:[#allocation176_spill] sm:$0xff] }
  0xd4   :  { %v4266_v13 = vpack.c.bf16 %v586_v63, %v574_v26  ;;  %v7780_v15 = vand.u32 4294901760, %v5637_v60  ;;  %v2639_v57 = vand.u32 4294901760, %v2638_v31  ;;  %v2644_v45 = vsub.f32 %v8204_v19, %v7778_v48 }
  0xd5   :  { %4745 = vmatprep.subr.bf16.mxu1 %v4744_v0  ;;  %v7785_v6 = vand.u32 4294901760, %v8205_v1  ;;  %v7787_v26 = vand.u32 4294901760, %v8206_v34  ;;  %v592_v63 = vand.u32 4294901760, %v591_v36  ;;  %v604_v17 = vand.u32 4294901760, %v603_v52  ;;  %v8208_v52 = vld [vmem:[#allocation177_spill] sm:$0xff] }
  0xd6   :  { %4267 = vmatpush1.bf16.msra.mxu0 %v4266_v13  ;;  %v2656_v32 = vsub.f32 %v5637_v60, %v7780_v15  ;;  %v7789_v8 = vand.u32 4294901760, %v8207_v21  ;;  %v4746_v47 = vpack.c.bf16 %v2639_v57, %v2627_v9  ;;  %v2645_v0 = vand.u32 4294901760, %v2644_v45  ;;  %v8209_v57 = vld [vmem:[#allocation179_spill] sm:$0xff] }
  0xd7   :  { %v597_v31 = vsub.f32 %v8205_v1, %v7785_v6  ;;  %v609_v48 = vsub.f32 %v8206_v34, %v7787_v26  ;;  %v4268_v19 = vpack.c.bf16 %v604_v17, %v592_v63  ;;  %v7788_v15 = vand.u32 4294901760, %v8208_v52 }
  0xd8   :  { %v2657_v13 = vand.u32 4294901760, %v2656_v32  ;;  %v2650_v36 = vsub.f32 %v8207_v21, %v7789_v8  ;;  %4747 = vmatpush1.bf16.msra.mxu1 %v4746_v47  ;;  %v7792_v45 = vand.u32 4294901760, %v8209_v57  ;;  %v7790_v25 = vand.u32 4294901760, %v8210_v4  ;;  %v8211_v32 = vld [vmem:[#allocation181_spill] sm:$0xff]  ;;  %v8275_v21 = vld [vmem:[#allocation72_spill] sm:$0xff] }
  0xd9   :  { %v598_v60 = vand.u32 4294901760, %v597_v31  ;;  %v610_v9 = vand.u32 4294901760, %v609_v48  ;;  %4269 = vmatprep.subr.bf16.mxu0 %v4268_v19  ;;  %v2662_v17 = vsub.f32 %v8208_v52, %v7788_v15  ;;  %v7791_v63 = vand.u32 4294901760, %v8211_v32  ;;  %v8277_v52 = vld [vmem:[#allocation69_spill] sm:$0xff] }
  0xda   :  { %v4748_v6 = vpack.c.bf16 %v2657_v13, %v2645_v0  ;;  %v2651_v1 = vand.u32 4294901760, %v2650_v36  ;;  %v615_v47 = vsub.f32 %v8209_v57, %v7792_v45  ;;  %v627_v48 = vsub.f32 %v8210_v4, %v7790_v25  ;;  %v8267_v57 = vld [vmem:[#allocation206_spill] sm:$0xff] }
  0xdb   :  { %v4270_v26 = vpack.c.bf16 %v610_v9, %v598_v60  ;;  %v7793_v31 = vand.u32 4294901760, %v5665_v50  ;;  %v2663_v19 = vand.u32 4294901760, %v2662_v17  ;;  %v2668_v0 = vsub.f32 %v8211_v32, %v7791_v63 }
  0xdc   :  { %4749 = vmatprep.subr.bf16.mxu1 %v4748_v6  ;;  %v7796_v13 = vand.u32 4294901760, %v5669_v37  ;;  %v7799_v60 = vand.u32 4294901760, %v5671_v27  ;;  %v616_v36 = vand.u32 4294901760, %v615_v47  ;;  %v628_v9 = vand.u32 4294901760, %v627_v48 }
  0xdd   :  { %4271 = vmatpush1.bf16.msra.mxu0 %v4270_v26  ;;  %v2680_v15 = vsub.f32 %v5665_v50, %v7793_v31  ;;  %v7801_v8 = vand.u32 4294901760, %v5675_v5  ;;  %v4750_v25 = vpack.c.bf16 %v2663_v19, %v2651_v1  ;;  %v2669_v6 = vand.u32 4294901760, %v2668_v0  ;;  %v8212_v0 = vld [vmem:[#allocation192_spill] sm:$0xff] }
  0xde   :  { %v621_v17 = vsub.f32 %v5669_v37, %v7796_v13  ;;  %v633_v63 = vsub.f32 %v5671_v27, %v7799_v60  ;;  %v4272_v45 = vpack.c.bf16 %v628_v9, %v616_v36  ;;  %v7800_v48 = vand.u32 4294901760, %v5677_v46  ;;  %v8213_v36 = vld [vmem:[#allocation193_spill] sm:$0xff] }
  0xdf   :  { %v2681_v26 = vand.u32 4294901760, %v2680_v15  ;;  %v2674_v47 = vsub.f32 %v5675_v5, %v7801_v8  ;;  %4751 = vmatpush1.bf16.msra.mxu1 %v4750_v25  ;;  %v7804_v19 = vand.u32 4294901760, %v5686_v18  ;;  %v7802_v50 = vand.u32 4294901760, %v8212_v0  ;;  %v8271_v5 = vld [vmem:[#allocation63_spill] sm:$0xff] }
  0xe0   :  { %v622_v31 = vand.u32 4294901760, %v621_v17  ;;  %v634_v1 = vand.u32 4294901760, %v633_v63  ;;  %4273 = vmatprep.subr.bf16.mxu0 %v4272_v45  ;;  %v2686_v15 = vsub.f32 %v5677_v46, %v7800_v48  ;;  %v7803_v9 = vand.u32 4294901760, %v8213_v36  ;;  %v8272_v46 = vld [vmem:[#allocation65_spill] sm:$0xff] }
  0xe1   :  { %v4752_v13 = vpack.c.bf16 %v2681_v26, %v2669_v6  ;;  %v2675_v37 = vand.u32 4294901760, %v2674_v47  ;;  %v639_v25 = vsub.f32 %v5686_v18, %v7804_v19  ;;  %v651_v63 = vsub.f32 %v8212_v0, %v7802_v50  ;;  %v8273_v18 = vld [vmem:[#allocation66_spill] sm:$0xff] }
  0xe2   :  { %v4274_v60 = vpack.c.bf16 %v634_v1, %v622_v31  ;;  %v7805_v17 = vand.u32 4294901760, %v5702_v41  ;;  %v2687_v45 = vand.u32 4294901760, %v2686_v15  ;;  %v2692_v6 = vsub.f32 %v8213_v36, %v7803_v9  ;;  %v8274_v36 = vld [vmem:[#allocation71_spill] sm:$0xff] }
  0xe3   :  { %4753 = vmatprep.subr.bf16.mxu1 %v4752_v13  ;;  %v7808_v26 = vand.u32 4294901760, %v5706_v29  ;;  %v7811_v31 = vand.u32 4294901760, %v5708_v35  ;;  %v640_v47 = vand.u32 4294901760, %v639_v25  ;;  %v652_v1 = vand.u32 4294901760, %v651_v63  ;;  %v8214_v63 = vld [vmem:[#allocation201_spill] sm:$0xff] }
  0xe4   :  { %4275 = vmatpush1.bf16.msra.mxu0 %v4274_v60  ;;  %v2704_v48 = vsub.f32 %v5702_v41, %v7805_v17  ;;  %v7812_v8 = vand.u32 4294901760, %v5712_v14  ;;  %v4754_v50 = vpack.c.bf16 %v2687_v45, %v2675_v37  ;;  %v2693_v13 = vand.u32 4294901760, %v2692_v6 }
  0xe5   :  { %v645_v15 = vsub.f32 %v5706_v29, %v7808_v26  ;;  %v657_v9 = vsub.f32 %v5708_v35, %v7811_v31  ;;  %v4276_v19 = vpack.c.bf16 %v652_v1, %v640_v47  ;;  %v7817_v17 = vand.u32 4294901760, %v8214_v63  ;;  %v8215_v29 = vld [vmem:[#allocation11_spill] sm:$0xff]  ;;  %v8216_v31 = vld [vmem:[#allocation12_spill] sm:$0xff] }
  0xe6   :  { %v2705_v60 = vand.u32 4294901760, %v2704_v48  ;;  %v2698_v25 = vsub.f32 %v5712_v14, %v7812_v8  ;;  %4755 = vmatpush1.bf16.msra.mxu1 %v4754_v50  ;;  %v4280_v47 = vpack.c.bf16 %v8216_v31, %v8215_v29  ;;  %v8217_v8 = vld [vmem:[#allocation13_spill] sm:$0xff]  ;;  %v8218_v14 = vld [vmem:[#allocation15_spill] sm:$0xff]  ;;  %v4282_v50 = vpack.c.bf16 %v5279_v30, %v5276_v28 }
  0xe7   :  { %v646_v41 = vand.u32 4294901760, %v645_v15  ;;  %v658_v37 = vand.u32 4294901760, %v657_v9  ;;  %4277 = vmatprep.subr.bf16.mxu0 %v4276_v19  ;;  %v2710_v26 = vsub.f32 %v8214_v63, %v7817_v17  ;;  %v4760_v35 = vpack.c.bf16 %v8218_v14, %v8217_v8  ;;  %v8222_v17 = vld [vmem:[#allocation116_spill] sm:$0xff]  ;;  %v8250_v28 = vld [vmem:[#allocation203_spill] sm:$0xff]  ;;  %v8253_v8 = vld [vmem:[#allocation161_spill] sm:$0xff] }
  0xe8   :  { %v4756_v45 = vpack.c.bf16 %v2705_v60, %v2693_v13  ;;  %v2699_v6 = vand.u32 4294901760, %v2698_v25  ;;  %v4284_v9 = vpack.c.bf16 %v5293_v49, %v5289_v44  ;;  %v4286_v13 = vpack.c.bf16 %v5308_v2, %v5302_v55  ;;  %v8241_v2 = vld [vmem:[#allocation144_spill] sm:$0xff]  ;;  %v8248_v44 = vld [vmem:[#allocation155_spill] sm:$0xff]  ;;  %v8258_v49 = vld [vmem:[#allocation169_spill] sm:$0xff] }
  0xe9   :  { %v4278_v48 = vpack.c.bf16 %v658_v37, %v646_v41  ;;  %v2711_v1 = vand.u32 4294901760, %v2710_v26  ;;  %v4762_v41 = vpack.c.bf16 %v5287_v43, %v5285_v42  ;;  %v4764_v26 = vpack.c.bf16 %v5300_v53, %v5297_v51  ;;  %v8243_v53 = vld [vmem:[#allocation147_spill] sm:$0xff]  ;;  %v8245_v43 = vld [vmem:[#allocation150_spill] sm:$0xff]  ;;  %v8255_v51 = vld [vmem:[#allocation165_spill] sm:$0xff] }
  0xea   :  { %4757 = vmatprep.subr.bf16.mxu1 %v4756_v45  ;;  %v4766_v15 = vpack.c.bf16 %v5314_v10, %v5310_v3  ;;  %v4288_v60 = vpack.c.bf16 %v5321_v16, %v5318_v12  ;;  %v4768_v25 = vpack.c.bf16 %v5327_v23, %v5325_v22  ;;  %v4770_v37 = vpack.c.bf16 %v5342_v56, %v5340_v54  ;;  %v8225_v54 = vld [vmem:[#allocation120_spill] sm:$0xff]  ;;  %v8234_v22 = vld [vmem:[#allocation133_spill] sm:$0xff]  ;;  %v8235_v56 = vld [vmem:[#allocation135_spill] sm:$0xff] }
  0xeb   :  { %4279 = vmatpush1.bf16.msra.mxu0 %v4278_v48  ;;  %v4758_v19 = vpack.c.bf16 %v2711_v1, %v2699_v6  ;;  %v4292_v45 = vpack.c.bf16 %v5350_v61, %v5346_v58  ;;  %v4772_v6 = vpack.c.bf16 %v5357_v7, %v5354_v24  ;;  %v8219_v48 = vld [vmem:[#allocation60_spill] sm:$0xff]  ;;  %v8226_v61 = vld [vmem:[#allocation121_spill] sm:$0xff]  ;;  %v8227_v58 = vld [vmem:[#allocation123_spill] sm:$0xff]  ;;  %v4300_v14 = vpack.c.bf16 %v8275_v21, %v8274_v36 }
  0xec   :  { %4281 = vmatprep.subr.bf16.mxu0 %v4280_v47  ;;  %v4294_v47 = vpack.c.bf16 %v5364_v38, %v5360_v33  ;;  %v4296_v1 = vpack.c.bf16 %v8219_v48, %v5374_v11  ;;  %v8228_v7 = vld [vmem:[#allocation125_spill] sm:$0xff]  ;;  %v8229_v38 = vld [vmem:[#allocation126_spill] sm:$0xff]  ;;  %v8230_v24 = vld [vmem:[#allocation128_spill] sm:$0xff] }
  0xed   :  { %4759 = vmatpush1.bf16.msra.mxu1 %v4758_v19  ;;  %v8221_v19 = vld [vmem:[#allocation114_spill] sm:$0xff]  ;;  %v8231_v48 = vld [vmem:[#allocation129_spill] sm:$0xff]  ;;  %v8232_v11 = vld [vmem:[#allocation131_spill] sm:$0xff] }
  0xee   :  { %663 = vmatmul.mubr.f32.vlgmr.msra.gmra.mrb[0].mxu0 %v5744_v59  ;;  %4761 = vmatprep.subr.bf16.mxu1 %v4760_v35  ;;  %v4290_v35 = vpack.c.bf16 %v5336_v40, %v5334_v39  ;;  %v8223_v59 = vld [vmem:[#allocation117_spill] sm:$0xff]  ;;  %v8233_v23 = vld [vmem:[#allocation132_spill] sm:$0xff]  ;;  %v8237_v40 = vld [vmem:[#allocation138_spill] sm:$0xff] }
  0xef   :  { %4283 = vmatpush1.bf16.msra.mxu0 %v4282_v50  ;;  %v8220_v50 = vld [vmem:[#allocation113_spill] sm:$0xff]  ;;  %v8238_v12 = vld [vmem:[#allocation140_spill] sm:$0xff]  ;;  %863 = vmatprep.mubr.f32.mxu0 %v8250_v28  ;;  %v8256_v33 = vld [vmem:[#allocation167_spill] sm:$0xff] }
  0xf0   :  { %4285 = vmatprep.subr.bf16.mxu0 %v4284_v9  ;;  %2716 = vmatmul.mubr.f32.vlgmr.msra.gmra.mrb[0].mxu1 %v5773_v20  ;;  %v8224_v20 = vld [vmem:[#allocation119_spill] sm:$0xff]  ;;  %v8236_v3 = vld [vmem:[#allocation137_spill] sm:$0xff]  ;;  %v8249_v10 = vld [vmem:[#allocation156_spill] sm:$0xff] }
  0xf1   :  { %4763 = vmatpush1.bf16.msra.mxu1 %v4762_v41  ;;  %v8239_v39 = vld [vmem:[#allocation141_spill] sm:$0xff]  ;;  %v8257_v42 = vld [vmem:[#allocation168_spill] sm:$0xff]  ;;  %v8259_v9 = vld [vmem:[#allocation171_spill] sm:$0xff]  ;;  %2916 = vmatprep.mubr.f32.mxu1 %v8267_v57  ;;  %v4298_v41 = vpack.c.bf16 %v8273_v18, %v8272_v46 }
  0xf2   :  { %4765 = vmatprep.subr.bf16.mxu1 %v4764_v26  ;;  %v8251_v16 = vld [vmem:[#allocation157_spill] sm:$0xff]  ;;  %v8252_v26 = vld [vmem:[#allocation159_spill] sm:$0xff]  ;;  %v8268_v28 = vld [vmem:[#allocation56_spill] sm:$0xff] }
  0xf3   :  { %4287 = vmatpush1.bf16.msra.mxu0 %v4286_v13  ;;  %v8240_v13 = vld [vmem:[#allocation143_spill] sm:$0xff]  ;;  %v8276_v55 = vld [vmem:[#allocation68_spill] sm:$0xff]  ;;  %v8285_v46 = vld [vmem:[#allocation81_spill] sm:$0xff] }
  0xf4   :  { %4289 = vmatprep.subr.bf16.mxu0 %v4288_v60  ;;  %v8260_v60 = vld [vmem:[#allocation173_spill] sm:$0xff]  ;;  %v8261_v29 = vld [vmem:[#allocation183_spill] sm:$0xff]  ;;  %v4778_v57 = vpack.c.bf16 %v8277_v52, %v8276_v55  ;;  %v8289_v55 = vld [vmem:[#allocation90_spill] sm:$0xff] }
  0xf5   :  { %4767 = vmatpush1.bf16.msra.mxu1 %v4766_v15  ;;  %v8263_v15 = vld [vmem:[#allocation195_spill] sm:$0xff] }
  0xf6   :  { %4769 = vmatprep.subr.bf16.mxu1 %v4768_v25  ;;  %v8269_v25 = vld [vmem:[#allocation57_spill] sm:$0xff]  ;;  %v8287_v52 = vld [vmem:[#allocation87_spill] sm:$0xff] }
  0xf7   :  { %4291 = vmatpush1.bf16.msra.mxu0 %v4290_v35  ;;  %v4774_v31 = vpack.c.bf16 %v8269_v25, %v8268_v28  ;;  %v8270_v35 = vld [vmem:[#allocation61_spill] sm:$0xff]  ;;  %v8279_v25 = vld [vmem:[#allocation75_spill] sm:$0xff]  ;;  %v8281_v28 = vld [vmem:[#allocation78_spill] sm:$0xff] }
  0xf8   :  { %4293 = vmatprep.subr.bf16.mxu0 %v4292_v45  ;;  %v8265_v45 = vld [vmem:[#allocation198_spill] sm:$0xff]  ;;  %v4776_v30 = vpack.c.bf16 %v8271_v5, %v8270_v35  ;;  %v8282_v5 = vld [vmem:[#allocation83_spill] sm:$0xff]  ;;  %v8283_v35 = vld [vmem:[#allocation84_spill] sm:$0xff] }
  0xf9   :  { %4771 = vmatpush1.bf16.msra.mxu1 %v4770_v37  ;;  %v8278_v37 = vld [vmem:[#allocation73_spill] sm:$0xff]  ;;  %v4304_v18 = vpack.c.bf16 %v8283_v35, %v8282_v5 }
  0xfa   :  { %4773 = vmatprep.subr.bf16.mxu1 %v4772_v6  ;;  %v4780_v6 = vpack.c.bf16 %v8279_v25, %v8278_v37  ;;  %v8290_v25 = vld [vmem:[#allocation95_spill] sm:$0xff]  ;;  %v8291_v37 = vld [vmem:[#allocation96_spill] sm:$0xff] }
  0xfb   :  { %4295 = vmatpush1.bf16.msra.mxu0 %v4294_v47  ;;  %v8280_v47 = vld [vmem:[#allocation77_spill] sm:$0xff] }
  0xfc   :  { %4297 = vmatprep.subr.bf16.mxu0 %v4296_v1  ;;  %v4302_v63 = vpack.c.bf16 %v8281_v28, %v8280_v47  ;;  %v8284_v1 = vld [vmem:[#allocation80_spill] sm:$0xff]  ;;  %v4308_v28 = vpack.c.bf16 %v8291_v37, %v8290_v25  ;;  %v8293_v47 = vld [vmem:[#allocation93_spill] sm:$0xff] }
  0xfd   :  { %4775 = vmatpush1.bf16.msra.mxu1 %v4774_v31  ;;  %v4782_v21 = vpack.c.bf16 %v8285_v46, %v8284_v1  ;;  %v8286_v31 = vld [vmem:[#allocation85_spill] sm:$0xff]  ;;  %v8295_v46 = vld [vmem:[#allocation99_spill] sm:$0xff]  ;;  %v8297_v1 = vld [vmem:[#allocation102_spill] sm:$0xff] }
  0xfe   :  { %4777 = vmatprep.subr.bf16.mxu1 %v4776_v30  ;;  %v4784_v30 = vpack.c.bf16 %v8287_v52, %v8286_v31  ;;  %v8298_v52 = vld [vmem:[#allocation107_spill] sm:$0xff]  ;;  %v8299_v31 = vld [vmem:[#allocation108_spill] sm:$0xff] }
  0xff   :  { %4299 = vmatpush1.bf16.msra.mxu0 %v4298_v41  ;;  %v8288_v41 = vld [vmem:[#allocation89_spill] sm:$0xff] }
 0x100   :  { %4301 = vmatprep.subr.bf16.mxu0 %v4300_v14  ;;  %v4306_v36 = vpack.c.bf16 %v8289_v55, %v8288_v41  ;;  %v8292_v14 = vld [vmem:[#allocation92_spill] sm:$0xff]  ;;  %v4312_v55 = vpack.c.bf16 %v8299_v31, %v8298_v52  ;;  %v8301_v41 = vld [vmem:[#allocation105_spill] sm:$0xff] }
 0x101   :  { %4779 = vmatpush1.bf16.msra.mxu1 %v4778_v57  ;;  %v4786_v35 = vpack.c.bf16 %v8293_v47, %v8292_v14  ;;  %v8294_v57 = vld [vmem:[#allocation97_spill] sm:$0xff]  ;;  %v8303_v47 = vld [vmem:[#allocation111_spill] sm:$0xff] }
 0x102   :  { %4781 = vmatprep.subr.bf16.mxu1 %v4780_v6  ;;  %v4788_v6 = vpack.c.bf16 %v8295_v46, %v8294_v57 }
 0x103   :  { %4303 = vmatpush1.bf16.msra.mxu0 %v4302_v63  ;;  %v8296_v63 = vld [vmem:[#allocation101_spill] sm:$0xff] }
 0x104   :  { %4305 = vmatprep.subr.bf16.mxu0 %v4304_v18  ;;  %v4310_v5 = vpack.c.bf16 %v8297_v1, %v8296_v63  ;;  %v8300_v18 = vld [vmem:[#allocation104_spill] sm:$0xff] }
 0x105   :  { %4783 = vmatpush1.bf16.msra.mxu1 %v4782_v21  ;;  %v4790_v37 = vpack.c.bf16 %v8301_v41, %v8300_v18  ;;  %v8302_v21 = vld [vmem:[#allocation109_spill] sm:$0xff] }
 0x106   :  { %4785 = vmatprep.subr.bf16.mxu1 %v4784_v30  ;;  %v4792_v30 = vpack.c.bf16 %v8303_v47, %v8302_v21 }
 0x107   :  { %4307 = vmatpush1.bf16.msra.mxu0 %v4306_v36  ;;  %v8304_v36 = vpack.c.bf16 %v8221_v19, %v8220_v50 }
 0x108   :  { %4309 = vmatprep.subr.bf16.mxu0 %v4308_v28  ;;  %v8305_v28 = vpack.c.bf16 %v8225_v54, %v8224_v20 }
 0x109   :  { %4787 = vmatpush1.bf16.msra.mxu1 %v4786_v35  ;;  %v8306_v35 = vpack.c.bf16 %v8223_v59, %v8222_v17 }
 0x10a   :  { %4789 = vmatprep.subr.bf16.mxu1 %v4788_v6  ;;  %v8310_v6 = vpack.c.bf16 %v8231_v48, %v8230_v24 }
 0x10b   :  { %4311 = vmatpush1.bf16.msra.mxu0 %v4310_v5  ;;  %v8307_v5 = vpack.c.bf16 %v8227_v58, %v8226_v61 }
 0x10c   :  { %4313 = vmatprep.subr.bf16.mxu0 %v4312_v55  ;;  %v8308_v55 = vpack.c.bf16 %v8229_v38, %v8228_v7 }
 0x10d   :  { %4791 = vmatpush1.bf16.msra.mxu1 %v4790_v37  ;;  %v8309_v37 = vpack.c.bf16 %v8233_v23, %v8232_v11 }
 0x10e   :  { %4793 = vmatprep.subr.bf16.mxu1 %v4792_v30  ;;  %v8311_v30 = vpack.c.bf16 %v8235_v56, %v8234_v22 }
 0x10f   :  { %4315 = vmatpush1.bf16.msra.mxu0 %v8304_v36  ;;  %v8312_v36 = vpack.c.bf16 %v8237_v40, %v8236_v3  ;;  %v8321_v40 = vld [vmem:[#allocation152_spill] sm:$0xff] }
 0x110   :  { %4317 = vmatprep.subr.bf16.mxu0 %v8305_v28  ;;  %v8313_v28 = vpack.c.bf16 %v8241_v2, %v8240_v13 }
 0x111   :  { %4795 = vmatpush1.bf16.msra.mxu1 %v8306_v35  ;;  %v8314_v35 = vpack.c.bf16 %v8239_v39, %v8238_v12 }
 0x112   :  { %4797 = vmatprep.subr.bf16.mxu1 %v8307_v5  ;;  %v8315_v5 = vld [vmem:[#allocation145_spill] sm:$0xff] }
 0x113   :  { %4319 = vmatpush1.bf16.msra.mxu0 %v8308_v55  ;;  %v8316_v55 = vpack.c.bf16 %v8243_v53, %v8315_v5 }
 0x114   :  { %4321 = vmatprep.subr.bf16.mxu0 %v8309_v37  ;;  %v8317_v37 = vld [vmem:[#allocation149_spill] sm:$0xff] }
 0x115   :  { %4799 = vmatpush1.bf16.msra.mxu1 %v8310_v6  ;;  %v8318_v6 = vpack.c.bf16 %v8245_v43, %v8317_v37 }
 0x116   :  { %4801 = vmatprep.subr.bf16.mxu1 %v8311_v30  ;;  %v8319_v30 = vpack.c.bf16 %v8249_v10, %v8248_v44 }
 0x117   :  { %4323 = vmatpush1.bf16.msra.mxu0 %v8312_v36  ;;  %v8320_v36 = vld [vmem:[#allocation153_spill] sm:$0xff] }
 0x118   :  { %4325 = vmatprep.subr.bf16.mxu0 %v8313_v28  ;;  %v8322_v2 = vpack.c.bf16 %v8320_v36, %v8321_v40  ;;  %v8323_v28 = vpack.c.bf16 %v8252_v26, %v8251_v16 }
 0x119   :  { %4803 = vmatpush1.bf16.msra.mxu1 %v8314_v35  ;;  %v8324_v35 = vpack.c.bf16 %v8199_v62, %v8253_v8  ;;  %v8333_v8 = vld [vmem:[#allocation176_spill] sm:$0xff] }
 0x11a   :  { %4805 = vmatprep.subr.bf16.mxu1 %v8316_v55  ;;  %v8325_v55 = vpack.c.bf16 %v8257_v42, %v8256_v33 }
 0x11b   :  { %4327 = vmatpush1.bf16.msra.mxu0 %v8318_v6  ;;  %v8326_v6 = vld [vmem:[#allocation164_spill] sm:$0xff] }
 0x11c   :  { %4329 = vmatprep.subr.bf16.mxu0 %v8319_v30  ;;  %v8327_v10 = vpack.c.bf16 %v8255_v51, %v8326_v6  ;;  %v8328_v30 = vpack.c.bf16 %v8259_v9, %v8258_v49  ;;  %v8435_v51 = vld [vmem:[#allocation199_spill] sm:$0xff]  ;;  %v8451_v6 = vld [vmem:[#allocation36_spill] sm:$0xff] }
 0x11d   :  { %4807 = vmatpush1.bf16.msra.mxu1 %v8322_v2  ;;  %v8329_v2 = vpack.c.bf16 %v8206_v34, %v8260_v60  ;;  %v8341_v60 = vld [vmem:[#allocation188_spill] sm:$0xff] }
 0x11e   :  { %4809 = vmatprep.subr.bf16.mxu1 %v8323_v28  ;;  %v8330_v28 = vld [vmem:[#allocation179_spill] sm:$0xff] }
 0x11f   :  { %4331 = vmatpush1.bf16.msra.mxu0 %v8324_v35  ;;  %v8331_v62 = vpack.c.bf16 %v8210_v4, %v8330_v28  ;;  %v8332_v35 = vld [vmem:[#allocation177_spill] sm:$0xff]  ;;  %v8429_v28 = vld [vmem:[#allocation18_spill] sm:$0xff] }
 0x120   :  { %4333 = vmatprep.subr.bf16.mxu0 %v8325_v55  ;;  %v8334_v42 = vpack.c.bf16 %v8332_v35, %v8333_v8  ;;  %v8335_v55 = vpack.c.bf16 %v8261_v29, %v8211_v32  ;;  %v8427_v8 = vld [vmem:[#allocation17_spill] sm:$0xff] }
 0x121   :  { %4811 = vmatpush1.bf16.msra.mxu1 %v8327_v10  ;;  %v8336_v10 = vld [vmem:[#allocation185_spill] sm:$0xff] }
 0x122   :  { %4813 = vmatprep.subr.bf16.mxu1 %v8328_v30  ;;  %v8337_v9 = vpack.c.bf16 %v5671_v27, %v8336_v10  ;;  %v8338_v30 = vld [vmem:[#allocation191_spill] sm:$0xff]  ;;  %v8348_v27 = vld [vmem:[#allocation201_spill] sm:$0xff] }
 0x123   :  { %4335 = vmatpush1.bf16.msra.mxu0 %v8329_v2  ;;  %v8339_v34 = vpack.c.bf16 %v8212_v0, %v8338_v30  ;;  %v8340_v2 = vld [vmem:[#allocation189_spill] sm:$0xff]  ;;  %v8351_v0 = vld [vmem:[#allocation207_spill] sm:$0xff] }
 0x124   :  { %4337 = vmatprep.subr.bf16.mxu0 %v8331_v62  ;;  %v8342_v4 = vpack.c.bf16 %v8340_v2, %v8341_v60  ;;  %v8343_v62 = vld [vmem:[#allocation193_spill] sm:$0xff]  ;;  %v8353_v2 = vld [vmem:[#allocation16_spill] sm:$0xff] }
 0x125   :  { %4815 = vmatpush1.bf16.msra.mxu1 %v8334_v42  ;;  %v8344_v35 = vpack.c.bf16 %v8263_v15, %v8343_v62  ;;  %v8345_v42 = vld [vmem:[#allocation197_spill] sm:$0xff]  ;;  %v8355_v15 = vld [vmem:[#allocation203_spill] sm:$0xff] }
 0x126   :  { %4817 = vmatprep.subr.bf16.mxu1 %v8335_v55  ;;  %v8346_v29 = vpack.c.bf16 %v8265_v45, %v8345_v42  ;;  %v8347_v55 = vld [vmem:[#allocation10_spill] sm:$0xff]  ;;  %v8357_v62 = vld [vmem:[#allocation209_spill] sm:$0xff]  ;;  %v8418_v42 = vld [vmem:[#allocation12_spill] sm:$0xff] }
 0x127   :  { %4339 = vmatpush1.bf16.msra.mxu0 %v8337_v9  ;;  %v8349_v9 = vld [vmem:[#allocation200_spill] sm:$0xff] }
 0x128   :  { %4341 = vmatprep.subr.bf16.mxu0 %v8339_v34  ;;  %v8350_v10 = vpack.c.bf16 %v8348_v27, %v8349_v9  ;;  %v8352_v34 = vld [vmem:[#allocation14_spill] sm:$0xff]  ;;  %v8361_v27 = vld [vmem:[#allocation25_spill] sm:$0xff] }
 0x129   :  { %4819 = vmatpush1.bf16.msra.mxu1 %v8342_v4  ;;  %v8354_v4 = vld [vmem:[#allocation23_spill] sm:$0xff]  ;;  %v8363_v9 = vld [vmem:[#allocation34_spill] sm:$0xff] }
 0x12a   :  { %4821 = vmatprep.subr.bf16.mxu1 %v8344_v35  ;;  %v8356_v35 = vand.u32 4294901760, %v8355_v15  ;;  %v8367_v15 = vld [vmem:[#allocation46_spill] sm:$0xff] }
 0x12b   :  { %4343 = vmatpush1.bf16.msra.mxu0 %v8346_v29  ;;  %v8358_v29 = vld [vmem:[#allocation19_spill] sm:$0xff] }
 0x12c   :  { %4345 = vmatprep.subr.bf16.mxu0 %v8347_v55  ;;  %v8359_v55 = vld [vmem:[#allocation206_spill] sm:$0xff] }
 0x12d   :  { %4823 = vmatpush1.bf16.msra.mxu1 %v8350_v10  ;;  %v8360_v45 = vand.u32 4294901760, %v8359_v55  ;;  %v8362_v10 = vld [vmem:[#allocation29_spill] sm:$0xff] }
 0x12e   :  { %866 = vmatmul.mubr.f32.vlgmr.msra.gmra.mrb[0].mxu0 %v8351_v0  ;;  %4825 = vmatprep.subr.bf16.mxu1 %v8352_v34  ;;  %v8364_v34 = vld [vmem:[#allocation32_spill] sm:$0xff]  ;;  %v8370_v55 = vld [vmem:[#allocation53_spill] sm:$0xff] }
 0x12f   :  { %4347 = vmatpush1.bf16.msra.mxu0 %v8353_v2  ;;  %1003 = vmatprep.mubr.f32.mxu0 %v8356_v35  ;;  %v8365_v2 = vld [vmem:[#allocation37_spill] sm:$0xff]  ;;  %v8368_v35 = vld [vmem:[#allocation43_spill] sm:$0xff] }
 0x130   :  { %4349 = vmatprep.subr.bf16.mxu0 %v8354_v4  ;;  %2919 = vmatmul.mubr.f32.vlgmr.msra.gmra.mrb[0].mxu1 %v8357_v62  ;;  %v8366_v4 = vld [vmem:[#allocation40_spill] sm:$0xff] }
 0x131   :  { %4827 = vmatpush1.bf16.msra.mxu1 %v8358_v29  ;;  %3056 = vmatprep.mubr.f32.mxu1 %v8360_v45  ;;  %v8369_v29 = vld [vmem:[#allocation49_spill] sm:$0xff]  ;;  %v8371_v45 = vld [vmem:[#allocation58_spill] sm:$0xff] }
 0x132   :  { %4829 = vmatprep.subr.bf16.mxu1 %v8361_v27  ;;  %v8372_v27 = vld [vmem:[#allocation55_spill] sm:$0xff] }
 0x133   :  { %4351 = vmatpush1.bf16.msra.mxu0 %v8362_v10  ;;  %v8373_v10 = vld [vmem:[#allocation62_spill] sm:$0xff] }
 0x134   :  { %4353 = vmatprep.subr.bf16.mxu0 %v8363_v9  ;;  %v8374_v9 = vld [vmem:[#allocation64_spill] sm:$0xff] }
 0x135   :  { %4831 = vmatpush1.bf16.msra.mxu1 %v8364_v34  ;;  %v8375_v34 = vld [vmem:[#allocation70_spill] sm:$0xff] }
 0x136   :  { %4833 = vmatprep.subr.bf16.mxu1 %v8365_v2  ;;  %v8376_v2 = vld [vmem:[#allocation67_spill] sm:$0xff] }
 0x137   :  { %4355 = vmatpush1.bf16.msra.mxu0 %v8366_v4  ;;  %v8377_v4 = vld [vmem:[#allocation74_spill] sm:$0xff] }
 0x138   :  { %4357 = vmatprep.subr.bf16.mxu0 %v8367_v15  ;;  %v8378_v15 = vld [vmem:[#allocation76_spill] sm:$0xff] }
 0x139   :  { %4835 = vmatpush1.bf16.msra.mxu1 %v8368_v35  ;;  %v8379_v35 = vld [vmem:[#allocation82_spill] sm:$0xff] }
 0x13a   :  { %4837 = vmatprep.subr.bf16.mxu1 %v8369_v29  ;;  %v8380_v29 = vld [vmem:[#allocation79_spill] sm:$0xff] }
 0x13b   :  { %4359 = vmatpush1.bf16.msra.mxu0 %v8370_v55  ;;  %v8381_v55 = vld [vmem:[#allocation86_spill] sm:$0xff] }
 0x13c   :  { %4361 = vmatprep.subr.bf16.mxu0 %v8371_v45  ;;  %v8382_v45 = vld [vmem:[#allocation88_spill] sm:$0xff] }
 0x13d   :  { %4839 = vmatpush1.bf16.msra.mxu1 %v8372_v27  ;;  %v8383_v27 = vld [vmem:[#allocation94_spill] sm:$0xff] }
 0x13e   :  { %4841 = vmatprep.subr.bf16.mxu1 %v8373_v10  ;;  %v8384_v10 = vld [vmem:[#allocation91_spill] sm:$0xff] }
 0x13f   :  { %4363 = vmatpush1.bf16.msra.mxu0 %v8374_v9  ;;  %v8385_v9 = vld [vmem:[#allocation98_spill] sm:$0xff] }
 0x140   :  { %4365 = vmatprep.subr.bf16.mxu0 %v8375_v34  ;;  %v8386_v34 = vld [vmem:[#allocation100_spill] sm:$0xff] }
 0x141   :  { %4843 = vmatpush1.bf16.msra.mxu1 %v8376_v2  ;;  %v8387_v2 = vld [vmem:[#allocation106_spill] sm:$0xff] }
 0x142   :  { %4845 = vmatprep.subr.bf16.mxu1 %v8377_v4  ;;  %v8388_v4 = vld [vmem:[#allocation103_spill] sm:$0xff] }
 0x143   :  { %4367 = vmatpush1.bf16.msra.mxu0 %v8378_v15  ;;  %v8389_v15 = vld [vmem:[#allocation110_spill] sm:$0xff] }
 0x144   :  { %4369 = vmatprep.subr.bf16.mxu0 %v8379_v35  ;;  %v8390_v35 = vld [vmem:[#allocation112_spill] sm:$0xff] }
 0x145   :  { %4847 = vmatpush1.bf16.msra.mxu1 %v8380_v29  ;;  %v8391_v29 = vld [vmem:[#allocation118_spill] sm:$0xff] }
 0x146   :  { %4849 = vmatprep.subr.bf16.mxu1 %v8381_v55  ;;  %v8392_v55 = vld [vmem:[#allocation115_spill] sm:$0xff] }
 0x147   :  { %4371 = vmatpush1.bf16.msra.mxu0 %v8382_v45  ;;  %v8393_v45 = vld [vmem:[#allocation122_spill] sm:$0xff] }
 0x148   :  { %4373 = vmatprep.subr.bf16.mxu0 %v8383_v27  ;;  %v8394_v27 = vld [vmem:[#allocation124_spill] sm:$0xff] }
 0x149   :  { %4851 = vmatpush1.bf16.msra.mxu1 %v8384_v10  ;;  %v8395_v10 = vld [vmem:[#allocation130_spill] sm:$0xff] }
 0x14a   :  { %4853 = vmatprep.subr.bf16.mxu1 %v8385_v9  ;;  %v8396_v9 = vld [vmem:[#allocation127_spill] sm:$0xff] }
 0x14b   :  { %4375 = vmatpush1.bf16.msra.mxu0 %v8386_v34  ;;  %v8397_v34 = vld [vmem:[#allocation134_spill] sm:$0xff] }
 0x14c   :  { %4377 = vmatprep.subr.bf16.mxu0 %v8387_v2  ;;  %v8398_v2 = vld [vmem:[#allocation136_spill] sm:$0xff] }
 0x14d   :  { %4855 = vmatpush1.bf16.msra.mxu1 %v8388_v4  ;;  %v8399_v4 = vld [vmem:[#allocation142_spill] sm:$0xff] }
 0x14e   :  { %4857 = vmatprep.subr.bf16.mxu1 %v8389_v15  ;;  %v8400_v15 = vld [vmem:[#allocation139_spill] sm:$0xff] }
 0x14f   :  { %4379 = vmatpush1.bf16.msra.mxu0 %v8390_v35  ;;  %v8401_v35 = vld [vmem:[#allocation146_spill] sm:$0xff] }
 0x150   :  { %4381 = vmatprep.subr.bf16.mxu0 %v8391_v29  ;;  %v8402_v29 = vld [vmem:[#allocation148_spill] sm:$0xff] }
 0x151   :  { %4859 = vmatpush1.bf16.msra.mxu1 %v8392_v55  ;;  %v8403_v55 = vld [vmem:[#allocation154_spill] sm:$0xff] }
 0x152   :  { %4861 = vmatprep.subr.bf16.mxu1 %v8393_v45  ;;  %v8404_v45 = vld [vmem:[#allocation151_spill] sm:$0xff] }
 0x153   :  { %4383 = vmatpush1.bf16.msra.mxu0 %v8394_v27  ;;  %v8405_v27 = vld [vmem:[#allocation158_spill] sm:$0xff] }
 0x154   :  { %4385 = vmatprep.subr.bf16.mxu0 %v8395_v10  ;;  %v8406_v10 = vld [vmem:[#allocation160_spill] sm:$0xff] }
 0x155   :  { %4863 = vmatpush1.bf16.msra.mxu1 %v8396_v9  ;;  %v8407_v9 = vld [vmem:[#allocation166_spill] sm:$0xff] }
 0x156   :  { %4865 = vmatprep.subr.bf16.mxu1 %v8397_v34  ;;  %v8408_v34 = vld [vmem:[#allocation163_spill] sm:$0xff] }
 0x157   :  { %4387 = vmatpush1.bf16.msra.mxu0 %v8398_v2  ;;  %v8409_v2 = vld [vmem:[#allocation170_spill] sm:$0xff] }
 0x158   :  { %4389 = vmatprep.subr.bf16.mxu0 %v8399_v4  ;;  %v8410_v4 = vld [vmem:[#allocation172_spill] sm:$0xff] }
 0x159   :  { %4867 = vmatpush1.bf16.msra.mxu1 %v8400_v15  ;;  %v8411_v15 = vld [vmem:[#allocation178_spill] sm:$0xff] }
 0x15a   :  { %4869 = vmatprep.subr.bf16.mxu1 %v8401_v35  ;;  %v8412_v35 = vld [vmem:[#allocation175_spill] sm:$0xff] }
 0x15b   :  { %4391 = vmatpush1.bf16.msra.mxu0 %v8402_v29  ;;  %v8413_v29 = vld [vmem:[#allocation182_spill] sm:$0xff] }
 0x15c   :  { %4393 = vmatprep.subr.bf16.mxu0 %v8403_v55  ;;  %v8414_v55 = vld [vmem:[#allocation184_spill] sm:$0xff] }
 0x15d   :  { %4871 = vmatpush1.bf16.msra.mxu1 %v8404_v45  ;;  %v8415_v45 = vld [vmem:[#allocation190_spill] sm:$0xff] }
 0x15e   :  { %4873 = vmatprep.subr.bf16.mxu1 %v8405_v27  ;;  %v8416_v27 = vld [vmem:[#allocation11_spill] sm:$0xff] }
 0x15f   :  { %4395 = vmatpush1.bf16.msra.mxu0 %v8406_v10  ;;  %v8417_v10 = vand.u32 4294901760, %v8416_v27  ;;  %v8431_v27 = vld [vmem:[#allocation22_spill] sm:$0xff] }
 0x160   :  { %4397 = vmatprep.subr.bf16.mxu0 %v8407_v9  ;;  %v8419_v9 = vand.u32 4294901760, %v8418_v42  ;;  %v8432_v42 = vand.u32 4294901760, %v8431_v27  ;;  %v8445_v27 = vld [vmem:[#allocation28_spill] sm:$0xff] }
 0x161   :  { %4875 = vmatpush1.bf16.msra.mxu1 %v8408_v34  ;;  %v8420_v34 = vld [vmem:[#allocation187_spill] sm:$0xff] }
 0x162   :  { %4877 = vmatprep.subr.bf16.mxu1 %v8409_v2  ;;  %v4408_v60 = vpack.c.bf16 %v8419_v9, %v8417_v10  ;;  %v8421_v2 = vld [vmem:[#allocation194_spill] sm:$0xff]  ;;  %v8433_v9 = vld [vmem:[#allocation24_spill] sm:$0xff] }
 0x163   :  { %4399 = vmatpush1.bf16.msra.mxu0 %v8410_v4  ;;  %v8422_v4 = vld [vmem:[#allocation196_spill] sm:$0xff]  ;;  %v8434_v10 = vand.u32 4294901760, %v8433_v9  ;;  %v8446_v9 = vand.u32 4294901760, %v8445_v27  ;;  %v8462_v27 = vld [vmem:[#allocation39_spill] sm:$0xff] }
 0x164   :  { %4401 = vmatprep.subr.bf16.mxu0 %v8411_v15  ;;  %v8423_v15 = vld [vmem:[#allocation13_spill] sm:$0xff] }
 0x165   :  { %4879 = vmatpush1.bf16.msra.mxu1 %v8412_v35  ;;  %v8424_v30 = vand.u32 4294901760, %v8423_v15  ;;  %v8425_v35 = vld [vmem:[#allocation15_spill] sm:$0xff]  ;;  %v8437_v15 = vld [vmem:[#allocation20_spill] sm:$0xff] }
 0x166   :  { %4881 = vmatprep.subr.bf16.mxu1 %v8413_v29  ;;  %v8426_v32 = vand.u32 4294901760, %v8425_v35  ;;  %v8439_v35 = vld [vmem:[#allocation21_spill] sm:$0xff] }
 0x167   :  { %4403 = vmatpush1.bf16.msra.mxu0 %v8414_v55  ;;  %v8428_v55 = vand.u32 4294901760, %v8427_v8  ;;  %v8441_v8 = vld [vmem:[#allocation26_spill] sm:$0xff] }
 0x168   :  { %4405 = vmatprep.subr.bf16.mxu0 %v8415_v45  ;;  %v4888_v29 = vpack.c.bf16 %v8426_v32, %v8424_v30  ;;  %v8430_v45 = vand.u32 4294901760, %v8429_v28  ;;  %v8440_v32 = vand.u32 4294901760, %v8439_v35  ;;  %v8442_v28 = vand.u32 4294901760, %v8441_v8  ;;  %v8453_v35 = vld [vmem:[#allocation202_spill] sm:$0xff] }
 0x169   :  { %4883 = vmatpush1.bf16.msra.mxu1 %v8420_v34  ;;  %v4412_v34 = vpack.c.bf16 %v8434_v10, %v8432_v42  ;;  %v8447_v42 = vld [vmem:[#allocation30_spill] sm:$0xff] }
 0x16a   :  { %4885 = vmatprep.subr.bf16.mxu1 %v8421_v2  ;;  %v4410_v49 = vpack.c.bf16 %v8430_v45, %v8428_v55  ;;  %v8438_v2 = vand.u32 4294901760, %v8437_v15  ;;  %v8448_v10 = vand.u32 4294901760, %v8447_v42  ;;  %v8452_v15 = vand.u32 4294901760, %v8451_v6  ;;  %v8464_v42 = vld [vmem:[#allocation41_spill] sm:$0xff] }
 0x16b   :  { %4407 = vmatpush1.bf16.msra.mxu0 %v8422_v4  ;;  %v8436_v4 = vand.u32 4294901760, %v8351_v0  ;;  %v8449_v0 = vld [vmem:[#allocation35_spill] sm:$0xff]  ;;  %v8463_v6 = vand.u32 4294901760, %v8462_v27 }
 0x16c   :  { %4409 = vmatprep.subr.bf16.mxu0 %v4408_v60  ;;  %v4890_v30 = vpack.c.bf16 %v8440_v32, %v8438_v2  ;;  %v8443_v60 = vld [vmem:[#allocation27_spill] sm:$0xff]  ;;  %v8457_v32 = vld [vmem:[#allocation33_spill] sm:$0xff] }
 0x16d   :  { %4887 = vmatpush1.bf16.msra.mxu1 %v8435_v51  ;;  %v8444_v55 = vand.u32 4294901760, %v8443_v60  ;;  %v4414_v51 = vpack.c.bf16 %v8448_v10, %v8446_v9  ;;  %v8455_v2 = vld [vmem:[#allocation31_spill] sm:$0xff]  ;;  %v8458_v8 = vand.u32 4294901760, %v8457_v32  ;;  %v8459_v60 = vld [vmem:[#allocation204_spill] sm:$0xff]  ;;  %v8465_v10 = vand.u32 4294901760, %v8464_v42 }
 0x16e   :  { %1007 = vmatmul.mubr.f32.vlgmr.msra.gmra.mrb[0].mxu0 %v8436_v4  ;;  %4889 = vmatprep.subr.bf16.mxu1 %v4888_v29  ;;  %v8450_v4 = vand.u32 4294901760, %v8449_v0  ;;  %v8456_v29 = vand.u32 4294901760, %v8455_v2  ;;  %v8466_v0 = vld [vmem:[#allocation42_spill] sm:$0xff]  ;;  %v8472_v32 = vld [vmem:[#allocation44_spill] sm:$0xff] }
 0x16f   :  { %4411 = vmatpush1.bf16.msra.mxu0 %v4410_v49  ;;  %v4892_v45 = vpack.c.bf16 %v8444_v55, %v8442_v28  ;;  %1270 = vmatprep.mubr.f32.mxu0 %v8453_v35  ;;  %v8454_v49 = vand.u32 4294901760, %v8357_v62  ;;  %v8467_v62 = vand.u32 4294901760, %v8466_v0 }
 0x170   :  { %4413 = vmatprep.subr.bf16.mxu0 %v4412_v34  ;;  %v4416_v33 = vpack.c.bf16 %v8452_v15, %v8450_v4  ;;  %v4894_v28 = vpack.c.bf16 %v8458_v8, %v8456_v29  ;;  %v8460_v34 = vld [vmem:[#allocation38_spill] sm:$0xff] }
 0x171   :  { %3060 = vmatmul.mubr.f32.vlgmr.msra.gmra.mrb[0].mxu1 %v8454_v49  ;;  %v8461_v55 = vand.u32 4294901760, %v8460_v34  ;;  %v4418_v4 = vpack.c.bf16 %v8467_v62, %v8465_v10  ;;  %v8470_v49 = vld [vmem:[#allocation48_spill] sm:$0xff]  ;;  %v8482_v62 = vld [vmem:[#allocation54_spill] sm:$0xff] }
 0x172   :  { %4891 = vmatpush1.bf16.msra.mxu1 %v4890_v30  ;;  %3323 = vmatprep.mubr.f32.mxu1 %v8459_v60  ;;  %v8468_v30 = vld [vmem:[#allocation47_spill] sm:$0xff]  ;;  %v8471_v2 = vand.u32 4294901760, %v8470_v49  ;;  %v8480_v10 = vld [vmem:[#allocation52_spill] sm:$0xff] }
 0x173   :  { %4893 = vmatprep.subr.bf16.mxu1 %v4892_v45  ;;  %4415 = vmatpush1.bf16.msra.mxu0 %v4414_v51  ;;  %v4896_v9 = vpack.c.bf16 %v8463_v6, %v8461_v55  ;;  %v8469_v15 = vand.u32 4294901760, %v8468_v30  ;;  %v8473_v45 = vand.u32 4294901760, %v8472_v32  ;;  %v8474_v51 = vld [vmem:[#allocation45_spill] sm:$0xff]  ;;  %v8476_v55 = vld [vmem:[#allocation50_spill] sm:$0xff]  ;;  %v8478_v6 = vld [vmem:[#allocation51_spill] sm:$0xff]  ;;  %v8483_v30 = vand.u32 4294901760, %v8482_v62 }
 0x174   :  { %4417 = vmatprep.subr.bf16.mxu0 %v4416_v33  ;;  %v8475_v8 = vand.u32 4294901760, %v8474_v51  ;;  %v8477_v27 = vand.u32 4294901760, %v8476_v55  ;;  %v8479_v42 = vand.u32 4294901760, %v8478_v6  ;;  %v8481_v33 = vand.u32 4294901760, %v8480_v10  ;;  %v8486_v49 = vld [vmem:[#allocation60_spill] sm:$0xff]  ;;  %v8492_v55 = vld [vmem:[#allocation61_spill] sm:$0xff] }
 0x175   :  { %v4420_v29 = vpack.c.bf16 %v8471_v2, %v8469_v15  ;;  %v8484_v15 = vld [vmem:[#allocation59_spill] sm:$0xff]  ;;  %v8487_v2 = vand.u32 4294901760, %v8486_v49  ;;  %v8498_v62 = vld [vmem:[#allocation66_spill] sm:$0xff]  ;;  %v8502_v49 = vld [vmem:[#allocation72_spill] sm:$0xff] }
 0x176   :  { %4895 = vmatpush1.bf16.msra.mxu1 %v4894_v28  ;;  %v4898_v34 = vpack.c.bf16 %v8475_v8, %v8473_v45  ;;  %v4900_v0 = vpack.c.bf16 %v8479_v42, %v8477_v27  ;;  %v4422_v60 = vpack.c.bf16 %v8483_v30, %v8481_v33  ;;  %v8485_v28 = vand.u32 4294901760, %v8484_v15  ;;  %v8488_v45 = vld [vmem:[#allocation56_spill] sm:$0xff]  ;;  %v8494_v6 = vld [vmem:[#allocation63_spill] sm:$0xff]  ;;  %v8496_v33 = vld [vmem:[#allocation65_spill] sm:$0xff] }
 0x177   :  { %4897 = vmatprep.subr.bf16.mxu1 %v4896_v9  ;;  %4419 = vmatpush1.bf16.msra.mxu0 %v4418_v4  ;;  %v8489_v9 = vand.u32 4294901760, %v8488_v45  ;;  %v8490_v4 = vld [vmem:[#allocation57_spill] sm:$0xff]  ;;  %v8493_v27 = vand.u32 4294901760, %v8492_v55  ;;  %v8495_v42 = vand.u32 4294901760, %v8494_v6  ;;  %v8499_v30 = vand.u32 4294901760, %v8498_v62  ;;  %v8510_v6 = vld [vmem:[#allocation75_spill] sm:$0xff] }
 0x178   :  { %4421 = vmatprep.subr.bf16.mxu0 %v4420_v29  ;;  %v4424_v32 = vpack.c.bf16 %v8487_v2, %v8485_v28  ;;  %v8491_v51 = vand.u32 4294901760, %v8490_v4  ;;  %v8497_v29 = vand.u32 4294901760, %v8496_v33  ;;  %v8500_v28 = vld [vmem:[#allocation71_spill] sm:$0xff]  ;;  %v8503_v2 = vand.u32 4294901760, %v8502_v49  ;;  %v8508_v55 = vld [vmem:[#allocation73_spill] sm:$0xff]  ;;  %v8514_v62 = vld [vmem:[#allocation78_spill] sm:$0xff] }
 0x179   :  { %v4904_v10 = vpack.c.bf16 %v8495_v42, %v8493_v27  ;;  %v8509_v27 = vand.u32 4294901760, %v8508_v55  ;;  %v8511_v42 = vand.u32 4294901760, %v8510_v6  ;;  %v8518_v49 = vld [vmem:[#allocation84_spill] sm:$0xff]  ;;  %v8524_v55 = vld [vmem:[#allocation85_spill] sm:$0xff]  ;;  %v8526_v6 = vld [vmem:[#allocation87_spill] sm:$0xff] }
 0x17a   :  { %4899 = vmatpush1.bf16.msra.mxu1 %v4898_v34  ;;  %v4902_v8 = vpack.c.bf16 %v8491_v51, %v8489_v9  ;;  %v4426_v15 = vpack.c.bf16 %v8499_v30, %v8497_v29  ;;  %v8501_v34 = vand.u32 4294901760, %v8500_v28  ;;  %v8504_v9 = vld [vmem:[#allocation68_spill] sm:$0xff]  ;;  %v8512_v29 = vld [vmem:[#allocation77_spill] sm:$0xff]  ;;  %v8515_v30 = vand.u32 4294901760, %v8514_v62  ;;  %v8530_v62 = vld [vmem:[#allocation90_spill] sm:$0xff] }
 0x17b   :  { %4901 = vmatprep.subr.bf16.mxu1 %v4900_v0  ;;  %4423 = vmatpush1.bf16.msra.mxu0 %v4422_v60  ;;  %v8505_v0 = vand.u32 4294901760, %v8504_v9  ;;  %v8506_v60 = vld [vmem:[#allocation69_spill] sm:$0xff]  ;;  %v4908_v33 = vpack.c.bf16 %v8511_v42, %v8509_v27  ;;  %v8525_v27 = vand.u32 4294901760, %v8524_v55  ;;  %v8527_v42 = vand.u32 4294901760, %v8526_v6 }
 0x17c   :  { %4425 = vmatprep.subr.bf16.mxu0 %v4424_v32  ;;  %v4428_v45 = vpack.c.bf16 %v8503_v2, %v8501_v34  ;;  %v8507_v4 = vand.u32 4294901760, %v8506_v60  ;;  %v8513_v32 = vand.u32 4294901760, %v8512_v29  ;;  %v8516_v34 = vld [vmem:[#allocation83_spill] sm:$0xff]  ;;  %v8519_v2 = vand.u32 4294901760, %v8518_v49 }
 0x17d   :  { %v4912_v29 = vpack.c.bf16 %v8527_v42, %v8525_v27  ;;  %v8544_v42 = vand.u32 4294901760, %v8300_v18  ;;  %v8551_v18 = vand.u32 4294901760, %v8225_v54  ;;  %v8558_v54 = vand.u32 4294901760, %v8232_v11 }
 0x17e   :  { %4903 = vmatpush1.bf16.msra.mxu1 %v4902_v8  ;;  %v4906_v51 = vpack.c.bf16 %v8507_v4, %v8505_v0  ;;  %v4430_v28 = vpack.c.bf16 %v8515_v30, %v8513_v32  ;;  %v8517_v8 = vand.u32 4294901760, %v8516_v34  ;;  %v8520_v0 = vld [vmem:[#allocation80_spill] sm:$0xff]  ;;  %v8528_v32 = vld [vmem:[#allocation89_spill] sm:$0xff]  ;;  %v8531_v30 = vand.u32 4294901760, %v8530_v62 }
 0x17f   :  { %4905 = vmatprep.subr.bf16.mxu1 %v4904_v10  ;;  %4427 = vmatpush1.bf16.msra.mxu0 %v4426_v15  ;;  %v8521_v10 = vand.u32 4294901760, %v8520_v0  ;;  %v8522_v15 = vld [vmem:[#allocation81_spill] sm:$0xff] }
 0x180   :  { %4429 = vmatprep.subr.bf16.mxu0 %v4428_v45  ;;  %v4432_v9 = vpack.c.bf16 %v8519_v2, %v8517_v8  ;;  %v8523_v60 = vand.u32 4294901760, %v8522_v15  ;;  %v8529_v45 = vand.u32 4294901760, %v8528_v32  ;;  %v8533_v8 = vld [vmem:[#allocation96_spill] sm:$0xff]  ;;  %v8538_v15 = vand.u32 4294901760, %v8294_v57 }
 0x181   :  { %v8534_v49 = vand.u32 4294901760, %v8533_v8  ;;  %v8548_v32 = vand.u32 4294901760, %v8220_v50  ;;  %v8555_v50 = vand.u32 4294901760, %v8227_v58  ;;  %v8562_v58 = vand.u32 4294901760, %v8234_v22 }
 0x182   :  { %4907 = vmatpush1.bf16.msra.mxu1 %v4906_v51  ;;  %v4910_v4 = vpack.c.bf16 %v8523_v60, %v8521_v10  ;;  %v4434_v34 = vpack.c.bf16 %v8531_v30, %v8529_v45  ;;  %v8532_v51 = vand.u32 4294901760, %v8290_v25  ;;  %v8539_v60 = vand.u32 4294901760, %v8295_v46 }
 0x183   :  { %4909 = vmatprep.subr.bf16.mxu1 %v4908_v33  ;;  %4431 = vmatpush1.bf16.msra.mxu0 %v4430_v28  ;;  %v8535_v33 = vand.u32 4294901760, %v8292_v14  ;;  %v8536_v28 = vld [vmem:[#allocation93_spill] sm:$0xff]  ;;  %v8541_v25 = vand.u32 4294901760, %v8297_v1  ;;  %v8543_v14 = vand.u32 4294901760, %v8299_v31  ;;  %v8546_v46 = vand.u32 4294901760, %v8302_v21 }
 0x184   :  { %4433 = vmatprep.subr.bf16.mxu0 %v4432_v9  ;;  %v4436_v2 = vpack.c.bf16 %v8534_v49, %v8532_v51  ;;  %v8537_v0 = vand.u32 4294901760, %v8536_v28  ;;  %v4916_v55 = vpack.c.bf16 %v8539_v60, %v8538_v15  ;;  %v8540_v9 = vand.u32 4294901760, %v8296_v63 }
 0x185   :  { %v8547_v63 = vand.u32 4294901760, %v8303_v47  ;;  %v8550_v31 = vand.u32 4294901760, %v8224_v20  ;;  %v8553_v30 = vand.u32 4294901760, %v8223_v59  ;;  %v8554_v47 = vand.u32 4294901760, %v8226_v61 }
 0x186   :  { %4911 = vmatpush1.bf16.msra.mxu1 %v4910_v4  ;;  %v4914_v10 = vpack.c.bf16 %v8537_v0, %v8535_v33  ;;  %v4438_v27 = vpack.c.bf16 %v8541_v25, %v8540_v9  ;;  %v8542_v4 = vand.u32 4294901760, %v8298_v52  ;;  %v8549_v52 = vand.u32 4294901760, %v8221_v19  ;;  %v8565_v33 = vld [vmem:[#allocation138_spill] sm:$0xff]  ;;  %v8568_v0 = vld [vmem:[#allocation144_spill] sm:$0xff] }
 0x187   :  { %4913 = vmatprep.subr.bf16.mxu1 %v4912_v29  ;;  %4435 = vmatpush1.bf16.msra.mxu0 %v4434_v34  ;;  %v8545_v29 = vand.u32 4294901760, %v8301_v41  ;;  %v4920_v1 = vpack.c.bf16 %v8547_v63, %v8546_v46  ;;  %v4444_v62 = vpack.c.bf16 %v8551_v18, %v8550_v31  ;;  %v8552_v41 = vand.u32 4294901760, %v8222_v17  ;;  %v8587_v46 = vld [vmem:[#allocation167_spill] sm:$0xff] }
 0x188   :  { %4437 = vmatprep.subr.bf16.mxu0 %v4436_v2  ;;  %v4440_v6 = vpack.c.bf16 %v8543_v14, %v8542_v4  ;;  %v4442_v45 = vpack.c.bf16 %v8549_v52, %v8548_v32  ;;  %v4924_v19 = vpack.c.bf16 %v8555_v50, %v8554_v47  ;;  %v8556_v34 = vand.u32 4294901760, %v8228_v7  ;;  %v8601_v50 = vld [vmem:[#allocation174_spill] sm:$0xff] }
 0x189   :  { %v4918_v57 = vpack.c.bf16 %v8545_v29, %v8544_v42  ;;  %v4922_v21 = vpack.c.bf16 %v8553_v30, %v8552_v41  ;;  %v8557_v20 = vand.u32 4294901760, %v8229_v38  ;;  %v8559_v17 = vand.u32 4294901760, %v8233_v23  ;;  %v8585_v29 = vld [vmem:[#allocation162_spill] sm:$0xff] }
 0x18a   :  { %4915 = vmatpush1.bf16.msra.mxu1 %v4914_v10  ;;  %v8560_v59 = vand.u32 4294901760, %v8230_v24  ;;  %v8561_v49 = vand.u32 4294901760, %v8231_v48  ;;  %v8563_v7 = vand.u32 4294901760, %v8235_v56  ;;  %v8564_v2 = vand.u32 4294901760, %v8236_v3 }
 0x18b   :  { %4917 = vmatprep.subr.bf16.mxu1 %v4916_v55  ;;  %4439 = vmatpush1.bf16.msra.mxu0 %v4438_v27  ;;  %v4446_v51 = vpack.c.bf16 %v8557_v20, %v8556_v34  ;;  %v4448_v8 = vpack.c.bf16 %v8559_v17, %v8558_v54  ;;  %v8566_v11 = vand.u32 4294901760, %v8565_v33  ;;  %v8567_v23 = vand.u32 4294901760, %v8240_v13  ;;  %v8577_v27 = vld [vmem:[#allocation156_spill] sm:$0xff]  ;;  %v8603_v20 = vld [vmem:[#allocation179_spill] sm:$0xff] }
 0x18c   :  { %4441 = vmatprep.subr.bf16.mxu0 %v4440_v6  ;;  %v4926_v61 = vpack.c.bf16 %v8561_v49, %v8560_v59  ;;  %v4928_v38 = vpack.c.bf16 %v8563_v7, %v8562_v58  ;;  %v8569_v24 = vand.u32 4294901760, %v8568_v0  ;;  %v8570_v48 = vand.u32 4294901760, %v8238_v12  ;;  %v8583_v6 = vld [vmem:[#allocation161_spill] sm:$0xff]  ;;  %v8605_v54 = vld [vmem:[#allocation180_spill] sm:$0xff]  ;;  %v8613_v33 = vld [vmem:[#allocation183_spill] sm:$0xff] }
 0x18d   :  { %v4450_v28 = vpack.c.bf16 %v8566_v11, %v8564_v2  ;;  %v8571_v15 = vand.u32 4294901760, %v8239_v39  ;;  %v8572_v56 = vand.u32 4294901760, %v8315_v5  ;;  %v8573_v3 = vand.u32 4294901760, %v8243_v53  ;;  %v8607_v59 = vld [vmem:[#allocation176_spill] sm:$0xff] }
 0x18e   :  { %4919 = vmatpush1.bf16.msra.mxu1 %v4918_v57  ;;  %v4452_v10 = vpack.c.bf16 %v8569_v24, %v8567_v23  ;;  %v8574_v55 = vand.u32 4294901760, %v8317_v37  ;;  %v8575_v13 = vand.u32 4294901760, %v8245_v43  ;;  %v8576_v25 = vand.u32 4294901760, %v8248_v44  ;;  %v8615_v23 = vld [vmem:[#allocation185_spill] sm:$0xff]  ;;  %v8617_v24 = vld [vmem:[#allocation186_spill] sm:$0xff] }
 0x18f   :  { %4921 = vmatprep.subr.bf16.mxu1 %v4920_v1  ;;  %4443 = vmatpush1.bf16.msra.mxu0 %v4442_v45  ;;  %v4930_v22 = vpack.c.bf16 %v8571_v15, %v8570_v48  ;;  %v4932_v60 = vpack.c.bf16 %v8573_v3, %v8572_v56  ;;  %v8578_v12 = vand.u32 4294901760, %v8577_v27  ;;  %v8579_v39 = vand.u32 4294901760, %v8321_v40  ;;  %v8589_v1 = vld [vmem:[#allocation168_spill] sm:$0xff]  ;;  %v8593_v45 = vld [vmem:[#allocation165_spill] sm:$0xff]  ;;  %v8619_v15 = vld [vmem:[#allocation191_spill] sm:$0xff] }
 0x190   :  { %4445 = vmatprep.subr.bf16.mxu0 %v4444_v62  ;;  %v4454_v9 = vpack.c.bf16 %v8575_v13, %v8574_v55  ;;  %v8580_v14 = vand.u32 4294901760, %v8320_v36  ;;  %v8581_v53 = vand.u32 4294901760, %v8251_v16  ;;  %v8582_v37 = vand.u32 4294901760, %v8252_v26  ;;  %v8591_v36 = vld [vmem:[#allocation164_spill] sm:$0xff]  ;;  %v8595_v26 = vld [vmem:[#allocation169_spill] sm:$0xff]  ;;  %v8597_v62 = vld [vmem:[#allocation171_spill] sm:$0xff] }
 0x191   :  { %v4456_v4 = vpack.c.bf16 %v8578_v12, %v8576_v25  ;;  %v8584_v42 = vand.u32 4294901760, %v8583_v6  ;;  %v8586_v44 = vand.u32 4294901760, %v8585_v29  ;;  %v8588_v63 = vand.u32 4294901760, %v8587_v46  ;;  %v8621_v56 = vld [vmem:[#allocation192_spill] sm:$0xff]  ;;  %v8627_v12 = vld [vmem:[#allocation193_spill] sm:$0xff] }
 0x192   :  { %4923 = vmatpush1.bf16.msra.mxu1 %v4922_v21  ;;  %v4934_v5 = vpack.c.bf16 %v8580_v14, %v8579_v39  ;;  %v4936_v43 = vpack.c.bf16 %v8582_v37, %v8581_v53  ;;  %v8590_v40 = vand.u32 4294901760, %v8589_v1  ;;  %v8592_v52 = vand.u32 4294901760, %v8591_v36  ;;  %v8599_v21 = vld [vmem:[#allocation173_spill] sm:$0xff]  ;;  %v8623_v55 = vld [vmem:[#allocation188_spill] sm:$0xff]  ;;  %v8629_v39 = vld [vmem:[#allocation195_spill] sm:$0xff] }
 0x193   :  { %4925 = vmatprep.subr.bf16.mxu1 %v4924_v19  ;;  %4447 = vmatpush1.bf16.msra.mxu0 %v4446_v51  ;;  %v4458_v57 = vpack.c.bf16 %v8586_v44, %v8584_v42  ;;  %v8594_v31 = vand.u32 4294901760, %v8593_v45  ;;  %v8596_v18 = vand.u32 4294901760, %v8595_v26  ;;  %v8598_v41 = vand.u32 4294901760, %v8597_v62  ;;  %v8631_v53 = vld [vmem:[#allocation197_spill] sm:$0xff]  ;;  %v8635_v29 = vld [vmem:[#allocation200_spill] sm:$0xff]  ;;  %v8639_v1 = vld [vmem:[#allocation10_spill] sm:$0xff] }
 0x194   :  { %4449 = vmatprep.subr.bf16.mxu0 %v4448_v8  ;;  %v4460_v32 = vpack.c.bf16 %v8590_v40, %v8588_v63  ;;  %v8600_v47 = vand.u32 4294901760, %v8599_v21  ;;  %v8602_v19 = vand.u32 4294901760, %v8601_v50  ;;  %v8604_v51 = vand.u32 4294901760, %v8603_v20  ;;  %v8640_v40 = vld [vmem:[#allocation205_spill] sm:$0xff]  ;;  %v8642_v36 = vld [vmem:[#allocation16_spill] sm:$0xff]  ;;  %v8649_v62 = vld [vmem:[#allocation34_spill] sm:$0xff] }
 0x195   :  { %v4938_v16 = vpack.c.bf16 %v8594_v31, %v8592_v52  ;;  %v4940_v30 = vpack.c.bf16 %v8598_v41, %v8596_v18  ;;  %v8606_v17 = vand.u32 4294901760, %v8605_v54  ;;  %v8608_v49 = vand.u32 4294901760, %v8607_v59  ;;  %v8643_v52 = vld [vmem:[#allocation23_spill] sm:$0xff]  ;;  %v8644_v45 = vld [vmem:[#allocation208_spill] sm:$0xff]  ;;  %v8647_v26 = vld [vmem:[#allocation25_spill] sm:$0xff] }
 0x196   :  { %4927 = vmatpush1.bf16.msra.mxu1 %v4926_v61  ;;  %v4462_v34 = vpack.c.bf16 %v8602_v19, %v8600_v47  ;;  %v8609_v61 = vld [vmem:[#allocation177_spill] sm:$0xff]  ;;  %v8614_v11 = vand.u32 4294901760, %v8613_v33  ;;  %v8616_v0 = vand.u32 4294901760, %v8615_v23  ;;  %v8622_v3 = vand.u32 4294901760, %v8621_v56  ;;  %v8645_v31 = vld [vmem:[#allocation19_spill] sm:$0xff]  ;;  %v8650_v41 = vld [vmem:[#allocation32_spill] sm:$0xff] }
 0x197   :  { %4929 = vmatprep.subr.bf16.mxu1 %v4928_v38  ;;  %4451 = vmatpush1.bf16.msra.mxu0 %v4450_v28  ;;  %v4464_v8 = vpack.c.bf16 %v8606_v17, %v8604_v51  ;;  %v8610_v58 = vand.u32 4294901760, %v8609_v61  ;;  %v8611_v38 = vld [vmem:[#allocation181_spill] sm:$0xff]  ;;  %v8624_v13 = vand.u32 4294901760, %v8623_v55  ;;  %v8630_v14 = vand.u32 4294901760, %v8629_v39  ;;  %v8652_v21 = vld [vmem:[#allocation40_spill] sm:$0xff]  ;;  %v8653_v47 = vld [vmem:[#allocation46_spill] sm:$0xff] }
 0x198   :  { %4453 = vmatprep.subr.bf16.mxu0 %v4452_v10  ;;  %v8612_v2 = vand.u32 4294901760, %v8611_v38  ;;  %v8618_v10 = vand.u32 4294901760, %v8617_v24  ;;  %v8632_v37 = vand.u32 4294901760, %v8631_v53  ;;  %v8636_v44 = vand.u32 4294901760, %v8635_v29  ;;  %v8648_v18 = vld [vmem:[#allocation29_spill] sm:$0xff]  ;;  %v8658_v20 = vld [vmem:[#allocation55_spill] sm:$0xff] }
 0x199   :  { %v4942_v7 = vpack.c.bf16 %v8610_v58, %v8608_v49  ;;  %v8655_v50 = vld [vmem:[#allocation49_spill] sm:$0xff]  ;;  %v8659_v51 = vld [vmem:[#allocation62_spill] sm:$0xff]  ;;  %v8660_v54 = vld [vmem:[#allocation64_spill] sm:$0xff] }
 0x19a   :  { %4931 = vmatpush1.bf16.msra.mxu1 %v4930_v22  ;;  %v4944_v28 = vpack.c.bf16 %v8614_v11, %v8612_v2  ;;  %v4466_v48 = vpack.c.bf16 %v8618_v10, %v8616_v0  ;;  %v8620_v22 = vand.u32 4294901760, %v8619_v15  ;;  %v8656_v19 = vld [vmem:[#allocation53_spill] sm:$0xff]  ;;  %v8661_v17 = vld [vmem:[#allocation70_spill] sm:$0xff]  ;;  %v8664_v49 = vld [vmem:[#allocation76_spill] sm:$0xff] }
 0x19b   :  { %4933 = vmatprep.subr.bf16.mxu1 %v4932_v60  ;;  %4455 = vmatpush1.bf16.msra.mxu0 %v4454_v9  ;;  %v8625_v9 = vld [vmem:[#allocation189_spill] sm:$0xff]  ;;  %v8663_v59 = vld [vmem:[#allocation74_spill] sm:$0xff]  ;;  %v8666_v58 = vld [vmem:[#allocation79_spill] sm:$0xff] }
 0x19c   :  { %4457 = vmatprep.subr.bf16.mxu0 %v4456_v4  ;;  %v4468_v60 = vpack.c.bf16 %v8622_v3, %v8620_v22  ;;  %v8626_v25 = vand.u32 4294901760, %v8625_v9  ;;  %v8628_v4 = vand.u32 4294901760, %v8627_v12  ;;  %v8665_v61 = vld [vmem:[#allocation82_spill] sm:$0xff]  ;;  %v8668_v38 = vld [vmem:[#allocation88_spill] sm:$0xff]  ;;  %v8670_v33 = vld [vmem:[#allocation91_spill] sm:$0xff] }
 0x19d   :  { %v8669_v2 = vld [vmem:[#allocation94_spill] sm:$0xff]  ;;  %v99_v24 = vld [vmem:[#allocation3 + $0x218] sm:$0xff]  ;;  %v8674_v10 = vld [vmem:[#allocation9_spill] sm:$0xff] }
 0x19e   :  { %4935 = vmatpush1.bf16.msra.mxu1 %v4934_v5  ;;  %v4946_v27 = vpack.c.bf16 %v8626_v25, %v8624_v13  ;;  %v4948_v5 = vpack.c.bf16 %v8630_v14, %v8628_v4  ;;  %v8671_v11 = vld [vmem:[#allocation98_spill] sm:$0xff]  ;;  %v2154_v22 = vld [vmem:[#allocation3 + $0x498] sm:$0xff]  ;;  %v96_v3 = vld [vmem:[#allocation3 + $0x200] sm:$0xff]  ;;  %v1419_v9 = vand.u32 4294901760, %v99_v24 }
 0x19f   :  { %4937 = vmatprep.subr.bf16.mxu1 %v4936_v43  ;;  %4459 = vmatpush1.bf16.msra.mxu0 %v4458_v57  ;;  %v8633_v43 = vld [vmem:[#allocation198_spill] sm:$0xff]  ;;  %v8637_v57 = vld [vmem:[#allocation201_spill] sm:$0xff]  ;;  %v8675_v56 = vld [vmem:[#allocation103_spill] sm:$0xff]  ;;  %v3472_v14 = vand.u32 4294901760, %v2154_v22 }
 0x1a0   :  { %4461 = vmatprep.subr.bf16.mxu0 %v4460_v32  ;;  %v8634_v6 = vand.u32 4294901760, %v8633_v43  ;;  %v8638_v46 = vand.u32 4294901760, %v8637_v57  ;;  %v8641_v32 = vld [vmem:[#allocation14_spill] sm:$0xff]  ;;  %v8677_v55 = vld [vmem:[#allocation112_spill] sm:$0xff] }
 0x1a1   :  { %v8673_v23 = vld [vmem:[#allocation106_spill] sm:$0xff]  ;;  %v103_v43 = vld [vmem:[#allocation3 + $0x238] sm:$0xff] }
 0x1a2   :  { %4939 = vmatpush1.bf16.msra.mxu1 %v4938_v16  ;;  %v4470_v42 = vpack.c.bf16 %v8634_v6, %v8632_v37  ;;  %v4950_v63 = vpack.c.bf16 %v8638_v46, %v8636_v44  ;;  %v8646_v16 = vld [vmem:[#allocation204_spill] sm:$0xff]  ;;  %v97_v0 = vld [vmem:[#allocation3 + $0x208] sm:$0xff]  ;;  %v98_v25 = vld [vmem:[#allocation3 + $0x210] sm:$0xff] }
 0x1a3   :  { %4941 = vmatprep.subr.bf16.mxu1 %v4940_v30  ;;  %4463 = vmatpush1.bf16.msra.mxu0 %v4462_v34  ;;  %v8651_v30 = vld [vmem:[#allocation37_spill] sm:$0xff]  ;;  %v8657_v34 = vld [vmem:[#allocation58_spill] sm:$0xff]  ;;  %v1415_v13 = vand.u32 4294901760, %v97_v0  ;;  %v8679_v6 = vld [vmem:[#allocation115_spill] sm:$0xff]  ;;  %v1421_v29 = vand.u32 4294901760, %v98_v25 }
 0x1a4   :  { %4465 = vmatprep.subr.bf16.mxu0 %v4464_v8  ;;  %v8662_v8 = vld [vmem:[#allocation67_spill] sm:$0xff]  ;;  %v2152_v15 = vld [vmem:[#allocation3 + $0x488] sm:$0xff] }
 0x1a5   :  { %v2153_v12 = vld [vmem:[#allocation3 + $0x490] sm:$0xff]  ;;  %v3468_v39 = vand.u32 4294901760, %v2152_v15  ;;  %v101_v37 = vld [vmem:[#allocation3 + $0x228] sm:$0xff] }
 0x1a6   :  { %4943 = vmatpush1.bf16.msra.mxu1 %v4942_v7  ;;  %v8667_v7 = vld [vmem:[#allocation86_spill] sm:$0xff]  ;;  %v3474_v57 = vand.u32 4294901760, %v2153_v12 }
 0x1a7   :  { %4945 = vmatprep.subr.bf16.mxu1 %v4944_v28  ;;  %4467 = vmatpush1.bf16.msra.mxu0 %v4466_v48  ;;  %v8672_v28 = vld [vmem:[#allocation100_spill] sm:$0xff]  ;;  %v124_v48 = vsub.s32 2, %v8674_v10  ;;  %v8678_v4 = vld [vmem:[#allocation118_spill] sm:$0xff] }
 0x1a8   :  { %4469 = vmatprep.subr.bf16.mxu0 %v4468_v60  ;;  %v8676_v60 = vld [vmem:[#allocation110_spill] sm:$0xff] }
 0x1a9   :  { %v2156_v46 = vld [vmem:[#allocation3 + $0x4a8] sm:$0xff] }
 0x1aa   :  { %4947 = vmatpush1.bf16.msra.mxu1 %v4946_v27  ;;  %v2151_v27 = vld [vmem:[#allocation3 + $0x480] sm:$0xff] }
 0x1ab   :  { %4949 = vmatprep.subr.bf16.mxu1 %v4948_v5  ;;  %4471 = vmatpush1.bf16.msra.mxu0 %v4470_v42  ;;  %v5168_v5 = vld [vmem:[%s7356_s1] sm:$0x7]  ;;  %v1417_v42 = vand.u32 4294901760, %v96_v3  ;;  %v3470_v44 = vand.u32 4294901760, %v2151_v27 }
 0x1ac   :  { %4473 = vmatprep.subr.bf16.mxu0 %v8639_v1  ;;  %v6869_v53 = vrot.slane %v5168_v5, %v124_v48  ;;  %v5169_v1 = vld [vmem:[%s7356_s1] sm:$0x7] }
 0x1ad   :  { %v2159_v5 = vld [vmem:[#allocation3 + $0x4c0] sm:$0xff] }
 0x1ae   :  { %4951 = vmatpush1.bf16.msra.mxu1 %v4950_v63  ;;  %1272 = vmatmul.mubr.f32.vlgmr.msra.gmra.mrb[0].mxu0 %v8640_v40  ;;  %v2158_v63 = vld [vmem:[#allocation3 + $0x4b8] sm:$0xff] }
 0x1af   :  { %4953 = vmatprep.subr.bf16.mxu1 %v8641_v32  ;;  %4475 = vmatpush1.bf16.msra.mxu0 %v8642_v36  ;;  %v6875_v32 = vrot.slane %v5169_v1, %v124_v48  ;;  %v8680_v36 = vld [vmem:[#allocation122_spill] sm:$0xff] }
 0x1b0   :  { %4477 = vmatprep.subr.bf16.mxu0 %v8643_v52  ;;  %1407 = vmatprep.mubr.f32.mxu0 %v8453_v35  ;;  %v8654_v35 = vld [vmem:[#allocation43_spill] sm:$0xff]  ;;  %v8681_v52 = vld [vmem:[#allocation124_spill] sm:$0xff]  ;;  %v8699_v1 = vld [vmem:[#allocation154_spill] sm:$0xff] }
 0x1b1   :  { %3325 = vmatmul.mubr.f32.vlgmr.msra.gmra.mrb[0].mxu1 %v8644_v45 }
 0x1b2   :  { %4955 = vmatpush1.bf16.msra.mxu1 %v8645_v31  ;;  %3460 = vmatprep.mubr.f32.mxu1 %v8646_v16  ;;  %v6879_v31 = vpack.c.bf16 %v1419_v9, %v1415_v13  ;;  %v6881_v16 = vsub.f32 %v97_v0, %v1415_v13  ;;  %v2162_v0 = vld [vmem:[#allocation3 + $0x4d8] sm:$0xff] }
 0x1b3   :  { %4957 = vmatprep.subr.bf16.mxu1 %v8647_v26  ;;  %4479 = vmatpush1.bf16.msra.mxu0 %v8648_v18  ;;  %v8683_v26 = vld [vmem:[#allocation130_spill] sm:$0xff]  ;;  %v6884_v18 = vsub.f32 %v99_v24, %v1419_v9 }
 0x1b4   :  { %4481 = vmatprep.subr.bf16.mxu0 %v8649_v62  ;;  %8682 = vst [vmem:[#allocation113_spill] sm:$0xff] %v6879_v31  ;;  %v6886_v62 = vpack.c.bf16 %v3472_v14, %v3468_v39  ;;  %v8692_v24 = vld [vmem:[#allocation142_spill] sm:$0xff] }
 0x1b5   :  { %8684 = vst [vmem:[#allocation114_spill] sm:$0xff] %v6884_v18 }
 0x1b6   :  { %4959 = vmatpush1.bf16.msra.mxu1 %v8650_v41  ;;  %8685 = vst [vmem:[#allocation116_spill] sm:$0xff] %v6886_v62  ;;  %v1423_v41 = vand.u32 4294901760, %v101_v37 }
 0x1b7   :  { %4961 = vmatprep.subr.bf16.mxu1 %v8651_v30  ;;  %4483 = vmatpush1.bf16.msra.mxu0 %v8652_v21  ;;  %v1427_v30 = vand.u32 4294901760, %v103_v43  ;;  %v100_v21 = vld [vmem:[#allocation3 + $0x220] sm:$0xff] }
 0x1b8   :  { %4485 = vmatprep.subr.bf16.mxu0 %v8653_v47  ;;  %v102_v47 = vld [vmem:[#allocation3 + $0x230] sm:$0xff] }
 0x1b9   :  { %v6908_v48 = vpack.c.bf16 %v1427_v30, %v1423_v41 }
 0x1ba   :  { %4963 = vmatpush1.bf16.msra.mxu1 %v8654_v35  ;;  %v6888_v35 = vsub.f32 %v2152_v15, %v3468_v39  ;;  %v6910_v15 = vsub.f32 %v101_v37, %v1423_v41  ;;  %v2161_v37 = vld [vmem:[#allocation3 + $0x4d0] sm:$0xff]  ;;  %v111_v41 = vld [vmem:[#allocation3 + $0x278] sm:$0xff] }
 0x1bb   :  { %4965 = vmatprep.subr.bf16.mxu1 %v8655_v50  ;;  %4487 = vmatpush1.bf16.msra.mxu0 %v8656_v19  ;;  %v6890_v50 = vsub.f32 %v2154_v22, %v3472_v14  ;;  %v3476_v19 = vand.u32 4294901760, %v2156_v46  ;;  %8693 = vst [vmem:[#allocation121_spill] sm:$0xff] %v6908_v48  ;;  %v3488_v14 = vand.u32 4294901760, %v2162_v0 }
 0x1bc   :  { %4489 = vmatprep.subr.bf16.mxu0 %v8657_v34  ;;  %8686 = vst [vmem:[#allocation117_spill] sm:$0xff] %v6888_v35  ;;  %v3480_v34 = vand.u32 4294901760, %v2158_v63 }
 0x1be   :  { %4967 = vmatpush1.bf16.msra.mxu1 %v8658_v20  ;;  %v2155_v20 = vld [vmem:[#allocation3 + $0x4a0] sm:$0xff]  ;;  %v6914_v13 = vpack.c.bf16 %v3480_v34, %v3476_v19 }
 0x1bf   :  { %4969 = vmatprep.subr.bf16.mxu1 %v8659_v51  ;;  %4491 = vmatpush1.bf16.msra.mxu0 %v8660_v54  ;;  %v2157_v51 = vld [vmem:[#allocation3 + $0x4b0] sm:$0xff]  ;;  %v3478_v22 = vand.u32 4294901760, %v2155_v20 }
 0x1c0   :  { %4493 = vmatprep.subr.bf16.mxu0 %v8661_v17  ;;  %v8687_v54 = vld [vmem:[#allocation127_spill] sm:$0xff]  ;;  %v6893_v17 = vpack.c.bf16 %v1421_v29, %v1417_v42  ;;  %8694 = vst [vmem:[#allocation123_spill] sm:$0xff] %v6914_v13 }
 0x1c2   :  { %4971 = vmatpush1.bf16.msra.mxu1 %v8662_v8  ;;  %8688 = vst [vmem:[#allocation119_spill] sm:$0xff] %v6893_v17  ;;  %v6895_v8 = vsub.f32 %v96_v3, %v1417_v42  ;;  %v104_v3 = vld [vmem:[#allocation3 + $0x240] sm:$0xff] }
 0x1c3   :  { %4973 = vmatprep.subr.bf16.mxu1 %v8663_v59  ;;  %4495 = vmatpush1.bf16.msra.mxu0 %v8664_v49  ;;  %v6897_v59 = vsub.f32 %v98_v25, %v1421_v29  ;;  %v6899_v49 = vpack.c.bf16 %v3474_v57, %v3470_v44  ;;  %v8697_v42 = vld [vmem:[#allocation148_spill] sm:$0xff] }
 0x1c4   :  { %4497 = vmatprep.subr.bf16.mxu0 %v8665_v61  ;;  %v105_v61 = vld [vmem:[#allocation3 + $0x248] sm:$0xff] }
 0x1c5   :  { %8689 = vst [vmem:[#allocation120_spill] sm:$0xff] %v6899_v49  ;;  %v1431_v9 = vand.u32 4294901760, %v105_v61 }
 0x1c6   :  { %4975 = vmatpush1.bf16.msra.mxu1 %v8666_v58  ;;  %v107_v58 = vld [vmem:[#allocation3 + $0x258] sm:$0xff] }
 0x1c7   :  { %4977 = vmatprep.subr.bf16.mxu1 %v8667_v7  ;;  %4499 = vmatpush1.bf16.msra.mxu0 %v8668_v38  ;;  %v8690_v7 = vld [vmem:[#allocation134_spill] sm:$0xff]  ;;  %v8691_v38 = vld [vmem:[#allocation136_spill] sm:$0xff]  ;;  %v1435_v25 = vand.u32 4294901760, %v107_v58 }
 0x1c8   :  { %4501 = vmatprep.subr.bf16.mxu0 %v8669_v2  ;;  %v6903_v2 = vsub.f32 %v2151_v27, %v3470_v44  ;;  %v8695_v27 = vld [vmem:[#allocation139_spill] sm:$0xff]  ;;  %v1433_v44 = vand.u32 4294901760, %v104_v3 }
 0x1ca   :  { %4979 = vmatpush1.bf16.msra.mxu1 %v8670_v33  ;;  %v6905_v33 = vsub.f32 %v2153_v12, %v3474_v57  ;;  %v6917_v12 = vsub.f32 %v2156_v46, %v3476_v19  ;;  %v6938_v19 = vsub.f32 %v105_v61, %v1431_v9  ;;  %v6949_v61 = vsub.f32 %v2162_v0, %v3488_v14 }
 0x1cb   :  { %4981 = vmatprep.subr.bf16.mxu1 %v8671_v11  ;;  %4503 = vmatpush1.bf16.msra.mxu0 %v8672_v28  ;;  %v1425_v11 = vand.u32 4294901760, %v100_v21  ;;  %v1429_v28 = vand.u32 4294901760, %v102_v47  ;;  %v129_v0 = vsel %vm128_vm0, %v6869_v53, 0  ;;  %v2165_v53 = vld [vmem:[#allocation3 + $0x4f0] sm:$0xff] }
 0x1cc   :  { %4505 = vmatprep.subr.bf16.mxu0 %v8673_v23  ;;  %v2160_v23 = vld [vmem:[#allocation3 + $0x4c8] sm:$0xff] }
 0x1cd   :  { %v3484_v39 = vand.u32 4294901760, %v2160_v23  ;;  %v6925_v29 = vsub.f32 %v100_v21, %v1425_v11  ;;  %v6928_v46 = vsub.f32 %v102_v47, %v1429_v28  ;;  %v3486_v21 = vand.u32 4294901760, %v2159_v5 }
 0x1ce   :  { %4983 = vmatpush1.bf16.msra.mxu1 %v8675_v56  ;;  %v3482_v56 = vand.u32 4294901760, %v2157_v51  ;;  %v6941_v47 = vsub.f32 %v107_v58, %v1435_v25  ;;  %v6954_v58 = vsub.f32 %v104_v3, %v1433_v44 }
 0x1cf   :  { %4985 = vmatprep.subr.bf16.mxu1 %v8676_v60  ;;  %4507 = vmatpush1.bf16.msra.mxu0 %v8677_v55  ;;  %v106_v60 = vld [vmem:[#allocation3 + $0x250] sm:$0xff]  ;;  %v6912_v55 = vsub.f32 %v103_v43, %v1427_v30  ;;  %v6923_v43 = vpack.c.bf16 %v1429_v28, %v1425_v11  ;;  %v6936_v30 = vpack.c.bf16 %v1435_v25, %v1431_v9  ;;  %v1443_v9 = vand.u32 4294901760, %v111_v41 }
 0x1d0   :  { %4509 = vmatprep.subr.bf16.mxu0 %v8678_v4  ;;  %v6919_v4 = vsub.f32 %v2158_v63, %v3480_v34  ;;  %v1437_v57 = vand.u32 4294901760, %v106_v60  ;;  %v6930_v63 = vpack.c.bf16 %v3482_v56, %v3478_v22  ;;  %v3490_v34 = vand.u32 4294901760, %v2161_v37  ;;  %v8704_v28 = vld [vmem:[#allocation158_spill] sm:$0xff] }
 0x1d1   :  { %8698 = vst [vmem:[#allocation125_spill] sm:$0xff] %v6923_v43  ;;  %8701 = vst [vmem:[#allocation128_spill] sm:$0xff] %v6936_v30  ;;  %v6943_v11 = vpack.c.bf16 %v3488_v14, %v3484_v39  ;;  %v8709_v14 = vld [vmem:[#allocation163_spill] sm:$0xff]  ;;  %v6979_v3 = vsub.f32 %v111_v41, %v1443_v9 }
 0x1d2   :  { %4987 = vmatpush1.bf16.msra.mxu1 %v8679_v6  ;;  %v8696_v6 = vld [vmem:[#allocation146_spill] sm:$0xff]  ;;  %8700 = vst [vmem:[#allocation126_spill] sm:$0xff] %v6930_v63  ;;  %v6956_v25 = vsub.f32 %v106_v60, %v1437_v57  ;;  %v2182_v60 = vsel %vm128_vm0, %v6875_v32, 0 }
 0x1d3   :  { %4989 = vmatprep.subr.bf16.mxu1 %v8680_v36  ;;  %4511 = vmatpush1.bf16.msra.mxu0 %v8681_v52  ;;  %v6932_v36 = vsub.f32 %v2155_v20, %v3478_v22  ;;  %v6934_v52 = vsub.f32 %v2157_v51, %v3482_v56  ;;  %8703 = vst [vmem:[#allocation129_spill] sm:$0xff] %v6943_v11  ;;  %v108_v51 = vld [vmem:[#allocation3 + $0x260] sm:$0xff] }
 0x1d4   :  { %4513 = vmatprep.subr.bf16.mxu0 %v8683_v26  ;;  %v109_v26 = vld [vmem:[#allocation3 + $0x268] sm:$0xff]  ;;  %v6945_v20 = vsub.f32 %v2160_v23, %v3484_v39  ;;  %v6951_v22 = vpack.c.bf16 %v1437_v57, %v1433_v44  ;;  %v8712_v57 = vld [vmem:[#allocation172_spill] sm:$0xff] }
 0x1d5   :  { %v1439_v56 = vand.u32 4294901760, %v109_v26  ;;  %v8711_v44 = vld [vmem:[#allocation170_spill] sm:$0xff] }
 0x1d6   :  { %4991 = vmatpush1.bf16.msra.mxu1 %v8687_v54  ;;  %v2164_v54 = vld [vmem:[#allocation3 + $0x4e8] sm:$0xff]  ;;  %8706 = vst [vmem:[#allocation131_spill] sm:$0xff] %v6951_v22 }
 0x1d7   :  { %4993 = vmatprep.subr.bf16.mxu1 %v8690_v7  ;;  %4515 = vmatpush1.bf16.msra.mxu0 %v8691_v38  ;;  %v2166_v7 = vld [vmem:[#allocation3 + $0x4f8] sm:$0xff]  ;;  %v3492_v23 = vand.u32 4294901760, %v2164_v54 }
 0x1d8   :  { %4517 = vmatprep.subr.bf16.mxu0 %v8692_v24  ;;  %v8702_v38 = vld [vmem:[#allocation151_spill] sm:$0xff]  ;;  %v8705_v24 = vld [vmem:[#allocation160_spill] sm:$0xff]  ;;  %v3496_v39 = vand.u32 4294901760, %v2166_v7 }
 0x1da   :  { %4995 = vmatpush1.bf16.msra.mxu1 %v8695_v27  ;;  %v110_v27 = vld [vmem:[#allocation3 + $0x270] sm:$0xff]  ;;  %v6981_v10 = vpack.c.bf16 %v3496_v39, %v3492_v23 }
 0x1db   :  { %4997 = vmatprep.subr.bf16.mxu1 %v8696_v6  ;;  %4519 = vmatpush1.bf16.msra.mxu0 %v8697_v42  ;;  %v8707_v6 = vld [vmem:[#allocation166_spill] sm:$0xff]  ;;  %v6958_v42 = vpack.c.bf16 %v3490_v34, %v3486_v21 }
 0x1dc   :  { %4521 = vmatprep.subr.bf16.mxu0 %v8699_v1  ;;  %v6960_v1 = vsub.f32 %v2159_v5, %v3486_v21  ;;  %v6972_v5 = vpack.c.bf16 %v1443_v9, %v1439_v56  ;;  %v6974_v21 = vsub.f32 %v109_v26, %v1439_v56  ;;  %8715 = vst [vmem:[#allocation137_spill] sm:$0xff] %v6981_v10  ;;  %v3498_v9 = vand.u32 4294901760, %v2165_v53  ;;  %v8722_v10 = vld [vmem:[#allocation182_spill] sm:$0xff] }
 0x1dd   :  { %8708 = vst [vmem:[#allocation132_spill] sm:$0xff] %v6958_v42  ;;  %v6988_v26 = vsub.f32 %v2166_v7, %v3496_v39  ;;  %v8725_v39 = vand.u32 4294901760, %v6888_v35 }
 0x1de   :  { %4999 = vmatpush1.bf16.msra.mxu1 %v8702_v38  ;;  %v1441_v38 = vand.u32 4294901760, %v108_v51  ;;  %8713 = vst [vmem:[#allocation135_spill] sm:$0xff] %v6972_v5 }
 0x1df   :  { %5001 = vmatprep.subr.bf16.mxu1 %v8704_v28  ;;  %4523 = vmatpush1.bf16.msra.mxu0 %v8705_v24  ;;  %v6965_v28 = vsub.f32 %v2161_v37, %v3490_v34  ;;  %v1445_v24 = vand.u32 4294901760, %v110_v27  ;;  %v8714_v34 = vld [vmem:[#allocation178_spill] sm:$0xff] }
 0x1e0   :  { %4525 = vmatprep.subr.bf16.mxu0 %v8707_v6  ;;  %v2163_v6 = vld [vmem:[#allocation3 + $0x4e0] sm:$0xff]  ;;  %v6990_v56 = vsub.f32 %v108_v51, %v1441_v38  ;;  %v8724_v51 = vand.u32 4294901760, %v6884_v18 }
 0x1e1   :  { %8710 = vst [vmem:[#allocation133_spill] sm:$0xff] %v6965_v28  ;;  %v6992_v28 = vand.u32 4294901760, %v2182_v60  ;;  %v6995_v37 = vpack.c.bf16 %v1445_v24, %v1441_v38  ;;  %v3494_v41 = vand.u32 4294901760, %v2163_v6  ;;  %v7002_v7 = vsub.f32 %v110_v27, %v1445_v24  ;;  %v8732_v24 = vld [vmem:[#allocation196_spill] sm:$0xff]  ;;  %v8738_v27 = vld [vmem:[#allocation199_spill] sm:$0xff] }
 0x1e2   :  { %5003 = vmatpush1.bf16.msra.mxu1 %v8709_v14  ;;  %8717 = vst [vmem:[#allocation141_spill] sm:$0xff] %v6990_v56  ;;  %v8719_v14 = vld [vmem:[#allocation175_spill] sm:$0xff]  ;;  %v3563_v38 = vsub.f32 %v6888_v35, %v8725_v39  ;;  %v8727_v56 = vand.u32 4294901760, %v6890_v50  ;;  %v8736_v39 = vand.u32 4294901760, %v6905_v33 }
 0x1e3   :  { %5005 = vmatprep.subr.bf16.mxu1 %v8711_v44  ;;  %4527 = vmatpush1.bf16.msra.mxu0 %v8712_v57  ;;  %v6984_v44 = vand.u32 4294901760, %v129_v0  ;;  %v6986_v57 = vsub.f32 %v2164_v54, %v3492_v23  ;;  %8718 = vst [vmem:[#allocation143_spill] sm:$0xff] %v6992_v28  ;;  %8720 = vst [vmem:[#allocation147_spill] sm:$0xff] %v6995_v37  ;;  %v8723_v54 = vld [vmem:[#allocation184_spill] sm:$0xff]  ;;  %v1522_v23 = vsub.f32 %v6884_v18, %v8724_v51  ;;  %v8729_v35 = vld [vmem:[#allocation187_spill] sm:$0xff] }
 0x1e4   :  { %4529 = vmatprep.subr.bf16.mxu0 %v8714_v34  ;;  %v8721_v34 = vand.u32 4294901760, %v6881_v16  ;;  %v7026_v18 = vpack.c.bf16 %v3498_v9, %v3494_v41 }
 0x1e5   :  { %8716 = vst [vmem:[#allocation140_spill] sm:$0xff] %v6984_v44 }
 0x1e6   :  { %5007 = vmatpush1.bf16.msra.mxu1 %v8719_v14  ;;  %v1510_v32 = vsub.f32 %v6881_v16, %v8721_v34  ;;  %v8726_v14 = vld [vmem:[#allocation190_spill] sm:$0xff]  ;;  %v3575_v34 = vsub.f32 %v6890_v50, %v8727_v56  ;;  %8730 = vst [vmem:[#allocation155_spill] sm:$0xff] %v7026_v18  ;;  %v7028_v56 = vsub.f32 %v2163_v6, %v3494_v41  ;;  %v8733_v6 = vand.u32 4294901760, %v6895_v8 }
 0x1e7   :  { %5009 = vmatprep.subr.bf16.mxu1 %v8722_v10  ;;  %4531 = vmatpush1.bf16.msra.mxu0 %v8723_v54  ;;  %v7015_v10 = vsub.f32 %v129_v0, %v6984_v44  ;;  %v7020_v54 = vsub.f32 %v2182_v60, %v6992_v28  ;;  %v8731_v44 = vld [vmem:[#allocation194_spill] sm:$0xff]  ;;  %v1523_v60 = vand.u32 4294901760, %v1522_v23  ;;  %v3564_v28 = vand.u32 4294901760, %v3563_v38 }
 0x1e8   :  { %4533 = vmatprep.subr.bf16.mxu0 %v8726_v14  ;;  %v1511_v0 = vand.u32 4294901760, %v1510_v32  ;;  %v1516_v32 = vsub.f32 %v6895_v8, %v8733_v6  ;;  %v8734_v41 = vand.u32 4294901760, %v6897_v59  ;;  %v8735_v38 = vand.u32 4294901760, %v6903_v2 }
 0x1e9   :  { %8728 = vst [vmem:[#allocation150_spill] sm:$0xff] %v7020_v54  ;;  %v8737_v14 = vand.u32 4294901760, %v6910_v15  ;;  %v7055_v6 = vsub.f32 %v2165_v53, %v3498_v9  ;;  %v8741_v53 = vand.u32 4294901760, %v6919_v4 }
 0x1ea   :  { %5011 = vmatpush1.bf16.msra.mxu1 %v8729_v35  ;;  %v3576_v35 = vand.u32 4294901760, %v3575_v34  ;;  %v3581_v34 = vsub.f32 %v6905_v33, %v8736_v39  ;;  %v7064_v39 = vpack.c.bf16 %v1523_v60, %v1511_v0  ;;  %v8742_v0 = vand.u32 4294901760, %v7015_v10 }
 0x1eb   :  { %5013 = vmatprep.subr.bf16.mxu1 %v8731_v44  ;;  %4535 = vmatpush1.bf16.msra.mxu0 %v8732_v24  ;;  %v1528_v44 = vsub.f32 %v6897_v59, %v8734_v41  ;;  %v3569_v24 = vsub.f32 %v6903_v2, %v8735_v38  ;;  %v1534_v51 = vsub.f32 %v6910_v15, %v8737_v14  ;;  %v8739_v41 = vand.u32 4294901760, %v6912_v55 }
 0x1ec   :  { %4537 = vmatprep.subr.bf16.mxu0 %v6879_v31  ;;  %v3599_v9 = vsub.f32 %v6919_v4, %v8741_v53  ;;  %v7075_v31 = vpack.c.bf16 %v3576_v35, %v3564_v28  ;;  %v7080_v60 = vsub.f32 %v7015_v10, %v8742_v0  ;;  %v1517_v38 = vand.u32 4294901760, %v1516_v32 }
 0x1ed   :  { %v1546_v23 = vsub.f32 %v6912_v55, %v8739_v41  ;;  %v7898_v41 = vmov 0.0   ;;  %v8743_v53 = vand.u32 4294901760, %v7020_v54  ;;  %v8744_v35 = vand.u32 4294901760, %v6925_v29 }
 0x1ee   :  { %5015 = vmatpush1.bf16.msra.mxu1 %v8738_v27  ;;  %1409 = vmatmul.mubr.f32.vlgmr.msra.gmra.mrb[0].mxu0 %v8640_v40  ;;  %v8740_v27 = vand.u32 4294901760, %v6917_v12  ;;  %v7906_v0 = vand.u32 4294901760, %v6945_v20 }
 0x1ef   :  { %5017 = vmatprep.subr.bf16.mxu1 %v6886_v62  ;;  %4539 = vmatpush1.bf16.msra.mxu0 %v6893_v17  ;;  %v7086_v14 = vsub.f32 %v7020_v54, %v8743_v53  ;;  %v3582_v17 = vand.u32 4294901760, %v3581_v34  ;;  %v1535_v62 = vand.u32 4294901760, %v1534_v51  ;;  %v1547_v28 = vand.u32 4294901760, %v1546_v23 }
 0x1f0   :  { %v3587_v40 = vsub.f32 %v6917_v12, %v8740_v27  ;;  %4541 = vmatprep.subr.bf16.mxu0 %v6908_v48  ;;  %1495 = vmatprep.mubr.f32.mxu0 %v7898_v41  ;;  %v1529_v27 = vand.u32 4294901760, %v1528_v44  ;;  %v3570_v48 = vand.u32 4294901760, %v3569_v24  ;;  %v1540_v32 = vsub.f32 %v6925_v29, %v8744_v35 }
 0x1f1   :  { %3462 = vmatmul.mubr.f32.vlgmr.msra.gmra.mrb[0].mxu1 %v8644_v45  ;;  %v8745_v44 = vand.u32 4294901760, %v6928_v46  ;;  %v3600_v24 = vand.u32 4294901760, %v3599_v9  ;;  %v8746_v34 = vand.u32 4294901760, %v6932_v36  ;;  %v1500_v35 = vand.u32 4294901760, %v7080_v60 }
 0x1f2   :  { %5019 = vmatpush1.bf16.msra.mxu1 %v6899_v49  ;;  %3548 = vmatprep.mubr.f32.mxu1 %v7898_v41  ;;  %v3588_v51 = vand.u32 4294901760, %v3587_v40  ;;  %v7907_v41 = vand.u32 4294901760, %v6941_v47  ;;  %v7912_v40 = vand.u32 4294901760, %v6949_v61  ;;  %v3553_v53 = vand.u32 4294901760, %v7086_v14 }
 0x1f3   :  { %v1552_v45 = vsub.f32 %v6928_v46, %v8745_v44  ;;  %5021 = vmatprep.subr.bf16.mxu1 %v6914_v13  ;;  %4543 = vmatpush1.bf16.msra.mxu0 %v6923_v43  ;;  %v7102_v23 = vsub.f32 %v6932_v36, %v8746_v34  ;;  %v4554_v44 = vpack.c.bf16 %v1529_v27, %v1517_v38  ;;  %v8747_v38 = vand.u32 4294901760, %v6934_v52 }
 0x1f4   :  { %4545 = vmatprep.subr.bf16.mxu0 %v6936_v30  ;;  %v7109_v13 = vpack.c.bf16 %v3582_v17, %v3570_v48  ;;  %v1541_v30 = vand.u32 4294901760, %v1540_v32  ;;  %v4556_v17 = vpack.c.bf16 %v1547_v28, %v1535_v62  ;;  %v5036_v48 = vpack.c.bf16 %v3600_v24, %v3588_v51 }
 0x1f5   :  { %v1553_v43 = vand.u32 4294901760, %v1552_v45  ;;  %v3605_v60 = vsub.f32 %v6934_v52, %v8747_v38  ;;  %v3594_v27 = vand.u32 4294901760, %v7102_v23  ;;  %v8748_v34 = vand.u32 4294901760, %v6938_v19  ;;  %v8751_v45 = vld [vmem:[#allocation133_spill] sm:$0xff] }
 0x1f6   :  { %5023 = vmatpush1.bf16.msra.mxu1 %v6930_v63  ;;  %v1570_v14 = vsub.f32 %v6941_v47, %v7907_v41  ;;  %v3611_v32 = vsub.f32 %v6945_v20, %v7906_v0  ;;  %v3623_v28 = vsub.f32 %v6949_v61, %v7912_v40  ;;  %v8749_v51 = vand.u32 4294901760, %v6954_v58 }
 0x1f7   :  { %5025 = vmatprep.subr.bf16.mxu1 %v6943_v11  ;;  %4547 = vmatpush1.bf16.msra.mxu0 %v6951_v22  ;;  %v1558_v9 = vsub.f32 %v6938_v19, %v8748_v34  ;;  %v8750_v23 = vand.u32 4294901760, %v6956_v25  ;;  %v4558_v0 = vpack.c.bf16 %v1553_v43, %v1541_v30  ;;  %v3606_v41 = vand.u32 4294901760, %v3605_v60  ;;  %v8752_v22 = vld [vmem:[#allocation137_spill] sm:$0xff] }
 0x1f8   :  { %4549 = vmatprep.subr.bf16.mxu0 %v6972_v5  ;;  %v1564_v24 = vsub.f32 %v6954_v58, %v8749_v51  ;;  %v8753_v11 = vld [vmem:[#allocation141_spill] sm:$0xff]  ;;  %v1571_v38 = vand.u32 4294901760, %v1570_v14  ;;  %v3612_v43 = vand.u32 4294901760, %v3611_v32  ;;  %v8754_v30 = vand.u32 4294901760, %v6974_v21 }
 0x1f9   :  { %v1576_v34 = vsub.f32 %v6956_v25, %v8750_v23  ;;  %v1559_v40 = vand.u32 4294901760, %v1558_v9  ;;  %v7927_v23 = vand.u32 4294901760, %v7002_v7  ;;  %v8755_v5 = vand.u32 4294901760, %v6979_v3 }
 0x1fa   :  { %5027 = vmatpush1.bf16.msra.mxu1 %v6958_v42  ;;  %v1582_v60 = vsub.f32 %v6974_v21, %v8754_v30  ;;  %v1565_v9 = vand.u32 4294901760, %v1564_v24  ;;  %v8756_v51 = vand.u32 4294901760, %v6960_v1  ;;  %v8758_v32 = vand.u32 4294901760, %v6986_v57 }
 0x1fb   :  { %5029 = vmatprep.subr.bf16.mxu1 %v8752_v22  ;;  %4551 = vmatpush1.bf16.msra.mxu0 %v6995_v37  ;;  %v1594_v62 = vsub.f32 %v6979_v3, %v8755_v5  ;;  %v3624_v37 = vand.u32 4294901760, %v3623_v28  ;;  %v1577_v22 = vand.u32 4294901760, %v1576_v34  ;;  %v8759_v24 = vand.u32 4294901760, %v6988_v26 }
 0x1fc   :  { %4553 = vmatprep.subr.bf16.mxu0 %v7064_v39  ;;  %v3617_v63 = vsub.f32 %v6960_v1, %v8756_v51  ;;  %v8757_v39 = vand.u32 4294901760, %v8751_v45  ;;  %v3635_v30 = vsub.f32 %v6986_v57, %v8758_v32  ;;  %v4560_v32 = vpack.c.bf16 %v1571_v38, %v1559_v40 }
 0x1fd   :  { %v3647_v34 = vsub.f32 %v6988_v26, %v8759_v24  ;;  %v1583_v5 = vand.u32 4294901760, %v1582_v60  ;;  %v8761_v28 = vmov 0.0   ;;  %v4562_v24 = vpack.c.bf16 %v1577_v22, %v1565_v9 }
 0x1fe   :  { %5031 = vmatpush1.bf16.msra.mxu1 %v7026_v18  ;;  %1501 = vmatmul.mubr.f32.vlgmr.msra.gmra.mrb[0].mxu0 %v1500_v35  ;;  %v3629_v14 = vsub.f32 %v8751_v45, %v8757_v39  ;;  %v8760_v35 = vand.u32 4294901760, %v8753_v11  ;;  %v1600_v39 = vsub.f32 %v7002_v7, %v7927_v23  ;;  %v1595_v18 = vand.u32 4294901760, %v1594_v62 }
 0x1ff   :  { %5033 = vmatprep.subr.bf16.mxu1 %v7075_v31  ;;  %4555 = vmatpush1.bf16.msra.mxu0 %v4554_v44  ;;  %v5038_v31 = vpack.c.bf16 %v3606_v41, %v3594_v27  ;;  %v5040_v44 = vpack.c.bf16 %v3624_v37, %v3612_v43  ;;  %v3618_v42 = vand.u32 4294901760, %v3617_v63  ;;  %v8763_v23 = vand.u32 4294901760, %v7055_v6 }
 0x200   :  { %v1588_v51 = vsub.f32 %v8753_v11, %v8760_v35  ;;  %4557 = vmatprep.subr.bf16.mxu0 %v4556_v17  ;;  %1651 = vmatprep.mubr.f32.mxu0 %v8761_v28  ;;  %v3630_v49 = vand.u32 4294901760, %v3629_v14  ;;  %v8762_v35 = vand.u32 4294901760, %v7028_v56  ;;  %v3648_v41 = vand.u32 4294901760, %v3647_v34 }
 0x201   :  { %3554 = vmatmul.mubr.f32.vlgmr.msra.gmra.mrb[0].mxu1 %v3553_v53  ;;  %v3653_v40 = vsub.f32 %v7055_v6, %v8763_v23  ;;  %v3636_v53 = vand.u32 4294901760, %v3635_v30  ;;  %v1601_v63 = vand.u32 4294901760, %v1600_v39  ;;  %v8764_v23 = vld [vmem:[#allocation114_spill] sm:$0xff]  ;;  %v5052_v9 = vpack.c.bf16 %v6919_v4, %v6917_v12 }
 0x202   :  { %5035 = vmatpush1.bf16.msra.mxu1 %v7109_v13  ;;  %v3641_v54 = vsub.f32 %v7028_v56, %v8762_v35  ;;  %3704 = vmatprep.mubr.f32.mxu1 %v8761_v28  ;;  %v1589_v37 = vand.u32 4294901760, %v1588_v51  ;;  %v4564_v13 = vpack.c.bf16 %v1595_v18, %v1583_v5  ;;  %v5042_v22 = vpack.c.bf16 %v3630_v49, %v3618_v42  ;;  %v8766_v42 = vld [vmem:[#allocation140_spill] sm:$0xff]  ;;  %v8767_v5 = vld [vmem:[#allocation143_spill] sm:$0xff] }
 0x203   :  { %5037 = vmatprep.subr.bf16.mxu1 %v5036_v48  ;;  %4559 = vmatpush1.bf16.msra.mxu0 %v4558_v0  ;;  %v3654_v27 = vand.u32 4294901760, %v3653_v40  ;;  %v5044_v62 = vpack.c.bf16 %v3648_v41, %v3636_v53  ;;  %v4568_v43 = vpack.c.bf16 %v8764_v23, %v6881_v16  ;;  %v8765_v48 = vld [vmem:[#allocation117_spill] sm:$0xff]  ;;  %v4570_v18 = vpack.c.bf16 %v6897_v59, %v6895_v8  ;;  %v8769_v53 = vld [vmem:[#allocation116_spill] sm:$0xff]  ;;  %v8770_v41 = vld [vmem:[#allocation119_spill] sm:$0xff] }
 0x204   :  { %4561 = vmatprep.subr.bf16.mxu0 %v4560_v32  ;;  %v3642_v17 = vand.u32 4294901760, %v3641_v54  ;;  %v4566_v38 = vpack.c.bf16 %v1601_v63, %v1589_v37  ;;  %v5048_v60 = vpack.c.bf16 %v6890_v50, %v8765_v48  ;;  %v4572_v49 = vpack.c.bf16 %v6912_v55, %v6910_v15  ;;  %v8768_v40 = vld [vmem:[#allocation113_spill] sm:$0xff]  ;;  %v8772_v63 = vld [vmem:[#allocation150_spill] sm:$0xff] }
 0x205   :  { %v5050_v54 = vpack.c.bf16 %v6905_v33, %v6903_v2  ;;  %v4574_v14 = vpack.c.bf16 %v6928_v46, %v6925_v29  ;;  %v4576_v30 = vpack.c.bf16 %v6941_v47, %v6938_v19  ;;  %v5054_v34 = vpack.c.bf16 %v6934_v52, %v6932_v36  ;;  %v8771_v37 = vld [vmem:[#allocation121_spill] sm:$0xff] }
 0x206   :  { %5039 = vmatpush1.bf16.msra.mxu1 %v5038_v31  ;;  %v5046_v0 = vpack.c.bf16 %v3654_v27, %v3642_v17  ;;  %v5056_v51 = vpack.c.bf16 %v6949_v61, %v6945_v20  ;;  %v4578_v39 = vpack.c.bf16 %v6956_v25, %v6954_v58  ;;  %v4580_v32 = vpack.c.bf16 %v6979_v3, %v6974_v21  ;;  %v8775_v17 = vld [vmem:[#allocation125_spill] sm:$0xff]  ;;  %v8776_v27 = vld [vmem:[#allocation128_spill] sm:$0xff] }
 0x207   :  { %5041 = vmatprep.subr.bf16.mxu1 %v5040_v44  ;;  %4563 = vmatpush1.bf16.msra.mxu0 %v4562_v24  ;;  %v5058_v31 = vpack.c.bf16 %v8751_v45, %v6960_v1  ;;  %v5060_v44 = vpack.c.bf16 %v6988_v26, %v6986_v57  ;;  %v4582_v24 = vpack.c.bf16 %v7002_v7, %v8753_v11 }
 0x208   :  { %4565 = vmatprep.subr.bf16.mxu0 %v4564_v13  ;;  %v5062_v35 = vpack.c.bf16 %v7055_v6, %v7028_v56  ;;  %v8773_v13 = vld [vmem:[#allocation120_spill] sm:$0xff] }
 0x20a   :  { %5043 = vmatpush1.bf16.msra.mxu1 %v5042_v22  ;;  %v8774_v22 = vld [vmem:[#allocation123_spill] sm:$0xff] }
 0x20b   :  { %5045 = vmatprep.subr.bf16.mxu1 %v5044_v62  ;;  %4567 = vmatpush1.bf16.msra.mxu0 %v4566_v38  ;;  %v8777_v62 = vld [vmem:[#allocation126_spill] sm:$0xff]  ;;  %v8778_v38 = vld [vmem:[#allocation129_spill] sm:$0xff] }
 0x20c   :  { %4569 = vmatprep.subr.bf16.mxu0 %v4568_v43  ;;  %v8779_v43 = vld [vmem:[#allocation131_spill] sm:$0xff] }
 0x20e   :  { %5047 = vmatpush1.bf16.msra.mxu1 %v5046_v0  ;;  %1653 = vmatmul.mubr.f32.vlgmr.msra.gmra.mrb[0].mxu0 %v8766_v42  ;;  %v8780_v0 = vld [vmem:[#allocation135_spill] sm:$0xff] }
 0x20f   :  { %5049 = vmatprep.subr.bf16.mxu1 %v5048_v60  ;;  %4571 = vmatpush1.bf16.msra.mxu0 %v4570_v18  ;;  %v8781_v60 = vand.u32 4294901760, %v6881_v16  ;;  %v8782_v18 = vand.u32 4294901760, %v8764_v23  ;;  %v8790_v16 = vand.u32 4294901760, %v6910_v15  ;;  %v8791_v23 = vand.u32 4294901760, %v6912_v55 }
 0x210   :  { %4573 = vmatprep.subr.bf16.mxu0 %v4572_v49  ;;  %1755 = vmatprep.mubr.f32.mxu0 %v8761_v28  ;;  %v8798_v55 = vand.u32 4294901760, %v6925_v29 }
 0x211   :  { %3706 = vmatmul.mubr.f32.vlgmr.msra.gmra.mrb[0].mxu1 %v8767_v5  ;;  %v4600_v49 = vpack.c.bf16 %v8782_v18, %v8781_v60  ;;  %v8799_v18 = vand.u32 4294901760, %v6928_v46  ;;  %v8805_v46 = vand.u32 4294901760, %v6945_v20 }
 0x212   :  { %5051 = vmatpush1.bf16.msra.mxu1 %v5050_v54  ;;  %3808 = vmatprep.mubr.f32.mxu1 %v8761_v28  ;;  %v8783_v54 = vld [vmem:[#allocation132_spill] sm:$0xff] }
 0x213   :  { %5053 = vmatprep.subr.bf16.mxu1 %v5052_v9  ;;  %4575 = vmatpush1.bf16.msra.mxu0 %v4574_v14  ;;  %v8784_v9 = vld [vmem:[#allocation137_spill] sm:$0xff]  ;;  %v8785_v14 = vld [vmem:[#allocation147_spill] sm:$0xff] }
 0x214   :  { %4577 = vmatprep.subr.bf16.mxu0 %v4576_v30  ;;  %v8786_v30 = vand.u32 4294901760, %v8765_v48  ;;  %v8794_v48 = vand.u32 4294901760, %v6903_v2  ;;  %v8801_v2 = vand.u32 4294901760, %v6941_v47 }
 0x216   :  { %5055 = vmatpush1.bf16.msra.mxu1 %v5054_v34  ;;  %v8787_v34 = vand.u32 4294901760, %v6890_v50  ;;  %v8795_v50 = vand.u32 4294901760, %v6905_v33  ;;  %v8802_v33 = vand.u32 4294901760, %v8772_v63 }
 0x217   :  { %5057 = vmatprep.subr.bf16.mxu1 %v5056_v51  ;;  %4579 = vmatpush1.bf16.msra.mxu0 %v4578_v39  ;;  %v8788_v39 = vand.u32 4294901760, %v6895_v8  ;;  %v8796_v8 = vand.u32 4294901760, %v6917_v12  ;;  %v8803_v12 = vand.u32 4294901760, %v6932_v36  ;;  %v8809_v36 = vand.u32 4294901760, %v6974_v21 }
 0x218   :  { %4581 = vmatprep.subr.bf16.mxu0 %v4580_v32  ;;  %v5080_v51 = vpack.c.bf16 %v8787_v34, %v8786_v30  ;;  %v8789_v32 = vand.u32 4294901760, %v6897_v59  ;;  %v5082_v60 = vpack.c.bf16 %v8795_v50, %v8794_v48  ;;  %v8797_v59 = vand.u32 4294901760, %v6919_v4 }
 0x219   :  { %v8804_v4 = vand.u32 4294901760, %v6934_v52  ;;  %v8807_v34 = vand.u32 4294901760, %v6954_v58  ;;  %v8810_v52 = vand.u32 4294901760, %v6979_v3  ;;  %v8814_v58 = vand.u32 4294901760, %v6988_v26 }
 0x21a   :  { %5059 = vmatpush1.bf16.msra.mxu1 %v5058_v31  ;;  %v4602_v31 = vpack.c.bf16 %v8789_v32, %v8788_v39  ;;  %v5084_v15 = vpack.c.bf16 %v8797_v59, %v8796_v8  ;;  %v8811_v32 = vand.u32 4294901760, %v6960_v1  ;;  %v8816_v21 = vand.u32 4294901760, %v7002_v7 }
 0x21b   :  { %5061 = vmatprep.subr.bf16.mxu1 %v5060_v44  ;;  %4583 = vmatpush1.bf16.msra.mxu0 %v4582_v24  ;;  %v4604_v44 = vpack.c.bf16 %v8791_v23, %v8790_v16  ;;  %v8792_v24 = vld [vmem:[#allocation155_spill] sm:$0xff]  ;;  %v5086_v29 = vpack.c.bf16 %v8804_v4, %v8803_v12  ;;  %v4612_v39 = vpack.c.bf16 %v8810_v52, %v8809_v36  ;;  %v8815_v16 = vand.u32 4294901760, %v8753_v11 }
 0x21c   :  { %4585 = vmatprep.subr.bf16.mxu0 %v8768_v40  ;;  %v8817_v3 = vand.u32 4294901760, %v7028_v56  ;;  %v8818_v1 = vand.u32 4294901760, %v7055_v6  ;;  %v5222_v11 = vmov 1966171168   ;;  %v112_v26 = vstv %s7357_s2  ;;  %s5192_s2 = scalar_lea.vmem %s4141_s8, 64 }
 0x21d   :  { %v4614_v23 = vpack.c.bf16 %v8816_v21, %v8815_v16  ;;  %p5193_p8 = scmp.ne.s32.totalorder %s4141_s8, %s5192_s2  ;;  %p5198_p10 = scmp.lt.s32.totalorder %s5192_s2, %s5192_s2 }
 0x21e   :  { %5063 = vmatpush1.bf16.msra.mxu1 %v5062_v35  ;;  %1758 = vmatmul.mubr.f32.vlgmr.msra.gmra.mrb[0].mxu0 %v7015_v10  ;;  %v8793_v35 = vand.u32 4294901760, %v7015_v10  ;;  %v8800_v10 = vand.u32 4294901760, %v6938_v19  ;;  %v8806_v19 = vand.u32 4294901760, %v6949_v61  ;;  %v8813_v61 = vand.u32 4294901760, %v6986_v57 }
 0x21f   :  { %5065 = vmatprep.subr.bf16.mxu1 %v8769_v53  ;;  %4587 = vmatpush1.bf16.msra.mxu0 %v8770_v41  ;;  %v2066_v57 = vunpack.c.l.s4 %v5222_v11  ;;  %p5199_p11 = por %p5198_p10, %p5197_p9 }
 0x220   :  { %4589 = vmatprep.subr.bf16.mxu0 %v8771_v37  ;;  %1844 = vmatprep.mubr.f32.mxu0 %v8761_v28  ;;  %v4608_v30 = vpack.c.bf16 %v8801_v2, %v8800_v10  ;;  %v5088_v47 = vpack.c.bf16 %v8806_v19, %v8805_v46 }
 0x221   :  { %3811 = vmatmul.mubr.f32.vlgmr.msra.gmra.mrb[0].mxu1 %v8772_v63  ;;  %v8808_v63 = vand.u32 4294901760, %v6956_v25  ;;  %v5092_v25 = vpack.c.bf16 %v8814_v58, %v8813_v61  ;;  %v2067_v7 = vunpack.c.0.s8 %v2066_v57  ;;  %p5200_p12 = pnand %p5199_p11, %p5193_p8 }
 0x222   :  { %5067 = vmatpush1.bf16.msra.mxu1 %v8773_v13  ;;  %3897 = vmatprep.mubr.f32.mxu1 %v8761_v28 }
 0x223   :  { %5069 = vmatprep.subr.bf16.mxu1 %v8774_v22  ;;  %4591 = vmatpush1.bf16.msra.mxu0 %v8775_v17 }
 0x224   :  { %4593 = vmatprep.subr.bf16.mxu0 %v8776_v27 }
 0x226   :  { %5071 = vmatpush1.bf16.msra.mxu1 %v8777_v62 }
 0x227   :  { %5073 = vmatprep.subr.bf16.mxu1 %v8778_v38  ;;  %4595 = vmatpush1.bf16.msra.mxu0 %v8779_v43 }
 0x228   :  { %4597 = vmatprep.subr.bf16.mxu0 %v8780_v0 }
 0x22a   :  { %5075 = vmatpush1.bf16.msra.mxu1 %v8783_v54 }
 0x22b   :  { %5077 = vmatprep.subr.bf16.mxu1 %v8784_v9  ;;  %4599 = vmatpush1.bf16.msra.mxu0 %v8785_v14 }
 0x22c   :  { %4601 = vmatprep.subr.bf16.mxu0 %v4600_v49  ;;  %v4606_v49 = vpack.c.bf16 %v8799_v18, %v8798_v55 }
 0x22e   :  { %5079 = vmatpush1.bf16.msra.mxu1 %v8792_v24  ;;  %1848 = vmatmul.mubr.f32.vlgmr.msra.gmra.mrb[0].mxu0 %v8793_v35 }
 0x22f   :  { %5081 = vmatprep.subr.bf16.mxu1 %v5080_v51  ;;  %4603 = vmatpush1.bf16.msra.mxu0 %v4602_v31  ;;  %v4610_v51 = vpack.c.bf16 %v8808_v63, %v8807_v34  ;;  %v8812_v31 = vand.u32 4294901760, %v8751_v45  ;;  %v5094_v45 = vpack.c.bf16 %v8818_v1, %v8817_v3 }
 0x230   :  { %4605 = vmatprep.subr.bf16.mxu0 %v4604_v44  ;;  %1966 = vmatprep.mubr.f32.mxu0 %v8761_v28 }
 0x231   :  { %3901 = vmatmul.mubr.f32.vlgmr.msra.gmra.mrb[0].mxu1 %v8802_v33  ;;  %v5090_v20 = vpack.c.bf16 %v8812_v31, %v8811_v32 }
 0x232   :  { %5083 = vmatpush1.bf16.msra.mxu1 %v5082_v60  ;;  %4019 = vmatprep.mubr.f32.mxu1 %v8761_v28 }
 0x233   :  { %5085 = vmatprep.subr.bf16.mxu1 %v5084_v15  ;;  %4607 = vmatpush1.bf16.msra.mxu0 %v4606_v49 }
 0x234   :  { %4609 = vmatprep.subr.bf16.mxu0 %v4608_v30 }
 0x236   :  { %5087 = vmatpush1.bf16.msra.mxu1 %v5086_v29 }
 0x237   :  { %5089 = vmatprep.subr.bf16.mxu1 %v5088_v47  ;;  %4611 = vmatpush1.bf16.msra.mxu0 %v4610_v51 }
 0x238   :  { %4613 = vmatprep.subr.bf16.mxu0 %v4612_v39 }
 0x23a   :  { %5091 = vmatpush1.bf16.msra.mxu1 %v5090_v20 }
 0x23b   :  { %5093 = vmatprep.subr.bf16.mxu1 %v5092_v25  ;;  %4615 = vmatpush1.bf16.msra.mxu0 %v4614_v23 }
 0x23c   :  { %4617 = vmatprep.subr.bf16.mxu0 %v8768_v40 }
 0x23e   :  { %5095 = vmatpush1.bf16.msra.mxu1 %v5094_v45  ;;  %1968 = vmatmul.mubr.f32.vlgmr.msra.gmra.mrb[0].mxu0 %v8766_v42 }
 0x23f   :  { %5097 = vmatprep.subr.bf16.mxu1 %v8769_v53  ;;  %4619 = vmatpush1.bf16.msra.mxu0 %v8770_v41  ;;  %v8819_v53 = vld [vmem:[#allocation9_spill] sm:$0xff] }
 0x240   :  { %4621 = vmatprep.subr.bf16.mxu0 %v8771_v37  ;;  %2054 = vmatprep.mubr.f32.mxu0 %v8761_v28  ;;  %v2070_v41 = vsub.s32 %v2067_v7, %v8819_v53 }
 0x241   :  { %4021 = vmatmul.mubr.f32.vlgmr.msra.gmra.mrb[0].mxu1 %v8767_v5 }
 0x242   :  { %5099 = vmatpush1.bf16.msra.mxu1 %v8773_v13  ;;  %4107 = vmatprep.mubr.f32.mxu1 %v8761_v28 }
 0x243   :  { %5101 = vmatprep.subr.bf16.mxu1 %v8774_v22  ;;  %4623 = vmatpush1.bf16.msra.mxu0 %v8775_v17 }
 0x244   :  { %4625 = vmatprep.subr.bf16.mxu0 %v8776_v27 }
 0x246   :  { %5103 = vmatpush1.bf16.msra.mxu1 %v8777_v62  ;;  %v8820_v62 = vlaneseq }
 0x247   :  { %5105 = vmatprep.subr.bf16.mxu1 %v8778_v38  ;;  %4627 = vmatpush1.bf16.msra.mxu0 %v8779_v43 }
 0x248   :  { %4629 = vmatprep.subr.bf16.mxu0 %v8780_v0  ;;  %vm2082_vm1 = vcmp.lt.s32.totalorder %v8820_v62, 256 }
 0x24a   :  { %5107 = vmatpush1.bf16.msra.mxu1 %v8783_v54 }
 0x24b   :  { %5109 = vmatprep.subr.bf16.mxu1 %v8784_v9  ;;  %4631 = vmatpush1.bf16.msra.mxu0 %v8785_v14 }
 0x24e   :  { %5111 = vmatpush1.bf16.msra.mxu1 %v8792_v24  ;;  %2056 = vmatmul.mubr.f32.vlgmr.msra.gmra.mrb[0].mxu0 %v8766_v42 }
 0x251   :  { %4109 = vmatmul.mubr.f32.vlgmr.msra.gmra.mrb[0].mxu1 %v8767_v5 }
 0x321   :  { %v2057_v56 = vpop.f32.mrb[0].mxu0 }
 0x322   :  { %v5112_v6 = vadd.f32 %v2057_v56, %v112_v26  ;;  %v2059_v28 = vpop.f32.mrb[1].mxu0 }
 0x323   :  { %v5113_v40 = vadd.f32 %v2059_v28, %v112_v26 }
 0x324   :  { %v4110_v37 = vpop.f32.mrb[0].mxu1 }
 0x325   :  { %v5114_v13 = vadd.f32 %v4110_v37, %v112_v26  ;;  %v2064_v22 = vcombine.low %v5112_v6, %v5113_v40  ;;  %v4112_v17 = vpop.f32.mrb[1].mxu1 }
 0x326   :  { %v5115_v42 = vadd.f32 %v4112_v17, %v112_v26 }
 0x327   :  { %v2071_v27 = vrot.slane %v2064_v22, %v2070_v41 }
 0x328   :  { %v4117_v5 = vcombine.low %v5114_v13, %v5115_v42 }
 0x329   :  { %v2078_v38 = vrot.slane %v2071_v27, %v2070_v41 }
 0x32a   :  { %v4124_v43 = vrot.slane %v4117_v5, %v2070_v41 }
 0x32b   :  { %2084 = vst.msk [vmem:[#allocation6] sm:$0x3] %vm2082_vm1, %v2078_v38 }
 0x32c   :  { %v4131_v0 = vrot.slane %v4124_v43, %v2070_v41 }
 0x32e   :  { %4134 = vst.msk [vmem:[#allocation6 + $0x2] sm:$0x3] %vm2082_vm1, %v4131_v0 }
 0x32f   :  { %5203 = shalt.err (!%p5200_p12)
}
 0x330   :  { %s5204_s11 = scalar_lea.hbm %s7358_s3, 64 }
 0x331   :  { %p5205_p13 = scmp.ne.s32.totalorder %s7358_s3, %s5204_s11  ;;  %p5208_p0 = scmp.lt.u32.totalorder %s5204_s11, %s7358_s3 }
 0x333   :  { %p5210_p1 = pnand %p5208_p0, %p5205_p13 }
 0x335   :  { %5213 = shalt.err (!%p5210_p1)
}
 0x336   :  { %s5224_s16 = smov 32   ;;  %s5225_s17 = smov 2  }
 0x337   :  { %4146 = dma.vmem_to_hbm [thread:$0]  %s4141_s8, 64, %s7358_s3, [#allocation5], %s5224_s16, %s5224_s16, %s5225_s17  }
 0x338   :  { %5216 = dma.done.wait [#allocation5], 64  }
 0x339   :  { %5217 = vsyncadd [#allocation5], 4294967232 }
 0x33a   :  { %4150 = vsyncpa [#allocation4], 1 }
 0x33b   :  { %4151 = vsyncpa [#allocation5], 1 }

</bundles_post_ra>
